<compile_context>
chip_gen: v7x
topology: tpu7x:2x2x1
jax: 0.10.0
libtpu: 0.0.40
codegen_flags: <defaults>
</compile_context>

<pallas_src>
import functools
import math

import jax
import jax.numpy as jnp
from jax import lax
from jax.experimental import pallas as pl
from jax.experimental.pallas import tpu as pltpu

# ----------------------------- config (small, synthetic) -----------------------------
VOCAB_SIZE = 64
EMBED_SIZE = 32
HIDDEN_SIZE = 32            # bidirectional: each direction hidden_size // 2
NUM_TAGS = 16
TAG_PAD_IDX = 0
NUM_HEADS = 4

HALF_H = HIDDEN_SIZE // 2
NEG_BIG = -1e32             # matches the PyTorch reference (-1e+32)


# ----------------------------- fused kernel -----------------------------
def slu_fused_kernel(ids_ref, mask_ref, labels_ref,
                     emb_ref, wih_ref, b_ref, whh_ref,
                     ln_g_ref, ln_b_ref,
                     wq_ref, wk_ref, wv_ref,
                     w_out_ref, b_out_ref,
                     prob_ref, loss_ref,
                     rnn_ref,
                     *, num_heads, pad_id):
    B, T = ids_ref.shape
    V, E = emb_ref.shape
    Hh = whh_ref.shape[0] // 2          # per-direction hidden
    H = 2 * Hh
    G = 8 * Hh                          # gate columns: [i_f i_b | f_f f_b | g_f g_b | o_f o_b]
    N = w_out_ref.shape[1]

    mask = mask_ref[...]                                            # (B, T) float32

    # ---- embedding lookup fused in-kernel (one-hot matmul; padding row 0 is zero) ----
    ids = ids_ref[...]                                              # (B, T) int32
    v_iota = lax.broadcasted_iota(jnp.int32, (B, T, V), 2)
    onehot = (ids[:, :, None] == v_iota).astype(jnp.float32)        # (B, T, V)
    x2d = jnp.dot(onehot.reshape(B * T, V), emb_ref[...],
                  preferred_element_type=jnp.float32)               # (B*T, E)

    # ---- hoisted LSTM input projection: both directions, all 4 gates, all timesteps ----
    gx = (jnp.dot(x2d, wih_ref[...], preferred_element_type=jnp.float32)
          + b_ref[...]).reshape(B, T, G)                            # (B, T, 128)

    # 0/1 lane masks: first Hh lanes of each 2*Hh group (and of the 2*Hh state) = fwd direction
    lane_s = lax.broadcasted_iota(jnp.int32, (B, 2 * Hh), 1)
    fwd_state = (lane_s < Hh).astype(jnp.float32)                   # (B, 32)
    fwd_gate = jnp.concatenate([fwd_state] * 4, axis=-1)            # (B, 128)

    # Per-step gate inputs / masks (fwd uses time t, bwd uses time T-1-t); hoisted off the
    # recurrent dependency chain so the scheduler can prefetch them ahead of each step.
    gx_steps, m_steps = [], []
    for t in range(T):
        s = T - 1 - t
        gx_steps.append(fwd_gate * gx[:, t, :] + (1.0 - fwd_gate) * gx[:, s, :])
        m_steps.append(fwd_state * mask[:, t:t + 1] + (1.0 - fwd_state) * mask[:, s:s + 1])

    whh = whh_ref[...]                                              # (32, 128) block-structured

    # ---- interleaved fwd/bwd recurrence: ONE (B,32)@(32,128) matmul per unrolled step ----
    h = jnp.zeros((B, 2 * Hh), jnp.float32)                         # [h_fwd | h_bwd]
    c = jnp.zeros((B, 2 * Hh), jnp.float32)
    outs = []
    for t in range(T):
        gates = gx_steps[t] + jnp.dot(h, whh, preferred_element_type=jnp.float32)   # (B, 128)
        sg = jax.nn.sigmoid(gates)                                   # one pass over the full vreg
        i_g = sg[:, 0 * 2 * Hh:1 * 2 * Hh]                           # lanes [  0: 32]
        f_g = sg[:, 1 * 2 * Hh:2 * 2 * Hh]                           # lanes [ 32: 64]
        g_g = jnp.tanh(gates[:, 2 * 2 * Hh:3 * 2 * Hh])              # lanes [ 64: 96]
        o_g = sg[:, 3 * 2 * Hh:4 * 2 * Hh]                           # lanes [ 96:128]
        c_new = f_g * c + i_g * g_g
        h_new = o_g * jnp.tanh(c_new)
        m_t = m_steps[t]
        out = m_t * h_new                                            # zero outputs past seq end
        h = out + (1.0 - m_t) * h                                    # freeze carry past seq end
        c = m_t * c_new + (1.0 - m_t) * c
        outs.append(out)                                             # [fwd(t) | bwd(T-1-t)]

    # Assembly relayout (register rows -> batch-major (B,T,H)) happens AFTER the serial chain;
    # the scratch is only used as a tiny relayout buffer, never touched inside the loop.
    for t in range(T):
        rnn_ref[:, t, :] = jnp.concatenate(
            [outs[t][:, :Hh], outs[T - 1 - t][:, Hh:]], axis=-1)     # [fwd(t) | bwd(t)]
    rnn_out = rnn_ref[...]                                           # (B, T, H)

    # ---- LayerNorm (eps = torch default 1e-5) ----
    mu = jnp.mean(rnn_out, axis=-1, keepdims=True)
    var = jnp.mean(jnp.square(rnn_out - mu), axis=-1, keepdims=True)
    xn = (rnn_out - mu) * lax.rsqrt(var + 1e-5) * ln_g_ref[...] + ln_b_ref[...]

    # ---- Multi-head self-attention: heads isolated by lane masks (no sub-128 lane extracts) ----
    x2 = xn.reshape(B * T, H)
    q = jnp.dot(x2, wq_ref[...], preferred_element_type=jnp.float32).reshape(B, T, H)
    k = jnp.dot(x2, wk_ref[...], preferred_element_type=jnp.float32).reshape(B, T, H)
    v = jnp.dot(x2, wv_ref[...], preferred_element_type=jnp.float32).reshape(B, T, H)

    dk = H // num_heads
    scale = 1.0 / math.sqrt(dk)
    lane_h = lax.broadcasted_iota(jnp.int32, (1, 1, H), 2)
    head_masks = [(lane_h >= hh * dk).astype(jnp.float32) *
                  (lane_h < (hh + 1) * dk).astype(jnp.float32)
                  for hh in range(num_heads)]                        # (1,1,H) each, 0/1

    # masking q to a head's lanes makes the full-H contraction equal that head's dk-contraction
    q_hm = jnp.concatenate([q * head_masks[hh] for hh in range(num_heads)], axis=0)  # (nh*B,T,H)
    k_rep = jnp.concatenate([k] * num_heads, axis=0)
    v_rep = jnp.concatenate([v] * num_heads, axis=0)

    s_att = jnp.einsum("xtd,xsd->xts", q_hm, k_rep,
                       preferred_element_type=jnp.float32) * scale
    s_att = s_att - jnp.max(s_att, axis=-1, keepdims=True)
    e_att = jnp.exp(s_att)
    p_att = e_att * pl.reciprocal(jnp.sum(e_att, axis=-1, keepdims=True), approx=True)
    o_all = jnp.einsum("xts,xsd->xtd", p_att, v_rep, preferred_element_type=jnp.float32)

    att = head_masks[0] * o_all[0:B]
    for hh in range(1, num_heads):
        att = att + head_masks[hh] * o_all[hh * B:(hh + 1) * B]      # (B, T, H)

    # TODO(synk): nn.Dropout is a no-op here (inference mode).

    # ---- TaggingFNNDecoder: linear + mask + softmax + CrossEntropyLoss(ignore_index) ----
    logits = jnp.einsum("bth,hn->btn", att, w_out_ref[...],
                        preferred_element_type=jnp.float32) + b_out_ref[...]
    logits = logits + (1.0 - mask)[:, :, None] * NEG_BIG             # mask padded positions

    mx = jnp.max(logits, axis=-1, keepdims=True)
    e = jnp.exp(logits - mx)
    ssum = jnp.sum(e, axis=-1, keepdims=True)
    prob = e / ssum                                                   # exact reciprocal (review)
    # lane-dense output slab: (B, T*NUM_TAGS) = (2, 128); wrapper reshapes back to (B, T, NUM_TAGS)
    prob_ref[...] = jnp.concatenate([prob[:, t, :] for t in range(T)], axis=-1)

    lse = mx[..., 0] + jnp.log(ssum[..., 0])                          # (B, T), exact
    labels = labels_ref[...]                                          # (B, T) int32
    tag_iota = lax.broadcasted_iota(jnp.int32, (B, T, N), 2)
    onehot_lab = (labels[:, :, None] == tag_iota).astype(jnp.float32)
    picked = jnp.sum(logits * onehot_lab, axis=-1)                    # (B, T)
    nll = lse - picked
    valid = (labels != pad_id).astype(jnp.float32)
    # NOTE: like torch CrossEntropyLoss(ignore_index), an all-ignored batch would yield NaN (0/0).
    loss_ref[0, 0] = jnp.sum(nll * valid) / jnp.sum(valid)            # scalar -> SMEM


# ----------------------------- parameters (deterministic, synthetic) -----------------------------
def init_params(key):
    ks = jax.random.split(key, 12)

    def rnd(k, shape, scale=0.1):
        return scale * jax.random.normal(k, shape, dtype=jnp.float32)

    emb = rnd(ks[0], (VOCAB_SIZE, EMBED_SIZE))
    emb = emb.at[0].set(0.0)                                          # padding_idx = 0

    Hh = HALF_H
    # Per-direction weights in torch gate order (i, f, g, o), stored pre-transposed (in, out).
    wih_f = rnd(ks[1], (EMBED_SIZE, 4 * Hh))
    wih_b = rnd(ks[2], (EMBED_SIZE, 4 * Hh))
    whh_f = rnd(ks[3], (Hh, 4 * Hh))
    whh_b = rnd(ks[4], (Hh, 4 * Hh))
    # When porting real torch weights: b_* = bias_ih + bias_hh per direction (pre-summed),
    # same (i, f, g, o) gate order as the weights.
    b_f = rnd(ks[5], (1, 4 * Hh))
    b_b = rnd(ks[6], (1, 4 * Hh))

    def interleave(wf, wb):
        # (..., 4*Hh) x 2  ->  (..., 8*Hh) in kernel column order [i_f i_b f_f f_b g_f g_b o_f o_b]
        parts = []
        for g in range(4):
            parts.append(wf[..., g * Hh:(g + 1) * Hh])
            parts.append(wb[..., g * Hh:(g + 1) * Hh])
        return jnp.concatenate(parts, axis=-1)

    wih_all = interleave(wih_f, wih_b)                                # (E, 128)
    b_all = interleave(b_f, b_b)                                      # (1, 128)

    # Block-structured recurrent weight (32, 128): rows 0:Hh (h_fwd) feed only the fwd gate
    # columns, rows Hh:2Hh (h_bwd) feed only the bwd gate columns. The zero off-blocks keep the
    # two directions independent inside the single fused per-step matmul.
    whh_all = jnp.zeros((2 * Hh, 8 * Hh), jnp.float32)
    for g in range(4):
        whh_all = whh_all.at[:Hh, (2 * g) * Hh:(2 * g + 1) * Hh].set(
            whh_f[:, g * Hh:(g + 1) * Hh])
        whh_all = whh_all.at[Hh:, (2 * g + 1) * Hh:(2 * g + 2) * Hh].set(
            whh_b[:, g * Hh:(g + 1) * Hh])

    return {
        "embedding": emb,
        "wih_all": wih_all,
        "b_all": b_all,
        "whh_all": whh_all,
        # LayerNorm (torch default init)
        "ln1_g": jnp.ones((1, HIDDEN_SIZE), jnp.float32),
        "ln1_b": jnp.zeros((1, HIDDEN_SIZE), jnp.float32),
        # MultiHeadAttention projections (no bias), stored as W^T: (H_in, H_out)
        "wq": rnd(ks[7], (HIDDEN_SIZE, HIDDEN_SIZE)),
        "wk": rnd(ks[8], (HIDDEN_SIZE, HIDDEN_SIZE)),
        "wv": rnd(ks[9], (HIDDEN_SIZE, HIDDEN_SIZE)),
        # Tag decoder linear
        "w_out": rnd(ks[10], (HIDDEN_SIZE, NUM_TAGS)),
        "b_out": rnd(ks[11], (1, NUM_TAGS)),
    }


# ----------------------------- forward (single fused pallas_call) -----------------------------
@jax.jit
def slu_forward(params, input_ids, tag_ids, tag_mask):
    B, T = input_ids.shape

    vmem = pl.BlockSpec(memory_space=pltpu.MemorySpace.VMEM)
    smem = pl.BlockSpec(memory_space=pltpu.MemorySpace.SMEM)
    prob_wide, loss = pl.pallas_call(
        functools.partial(slu_fused_kernel, num_heads=NUM_HEADS, pad_id=TAG_PAD_IDX),
        out_shape=(jax.ShapeDtypeStruct((B, T * NUM_TAGS), jnp.float32),   # lane-dense prob slab
                   jax.ShapeDtypeStruct((1, 1), jnp.float32)),
        in_specs=[vmem] * 14,
        out_specs=(vmem, smem),
        scratch_shapes=[pltpu.VMEM((B, T, HIDDEN_SIZE), jnp.float32)],      # post-loop relayout buf
    )(input_ids, tag_mask, tag_ids,
      params["embedding"], params["wih_all"], params["b_all"], params["whh_all"],
      params["ln1_g"], params["ln1_b"],
      params["wq"], params["wk"], params["wv"],
      params["w_out"], params["b_out"])
    return prob_wide.reshape(B, T, NUM_TAGS), loss[0, 0]


# ----------------------------- main -----------------------------
if __name__ == "__main__":
    B, T = 2, 8
    key = jax.random.PRNGKey(0)
    k_param, k_ids, k_tags = jax.random.split(key, 3)

    params = init_params(k_param)

    lengths = jnp.array([8, 5], dtype=jnp.int32)
    pos = jnp.arange(T, dtype=jnp.int32)[None, :]
    tag_mask = (pos < lengths[:, None]).astype(jnp.float32)           # (B, T)

    input_ids = jax.random.randint(k_ids, (B, T), 1, VOCAB_SIZE, dtype=jnp.int32)
    input_ids = jnp.where(tag_mask > 0, input_ids, 0)                 # pad token id = 0

    tag_ids = jax.random.randint(k_tags, (B, T), 1, NUM_TAGS, dtype=jnp.int32)
    tag_ids = jnp.where(tag_mask > 0, tag_ids, TAG_PAD_IDX)           # padded labels ignored

    prob, loss = slu_forward(params, input_ids, tag_ids, tag_mask)
    prob, loss = jax.block_until_ready((prob, loss))

    assert prob.shape == (B, T, NUM_TAGS)
    assert bool(jnp.all(jnp.isfinite(prob)))
    assert bool(jnp.isfinite(loss))
    row_sums = jnp.sum(prob, axis=-1)
    # exact reciprocal in the tag softmax -> tight tolerance
    assert bool(jnp.all(jnp.abs(row_sums - 1.0) < 1e-5))

    print("KERNEL_OK")
</pallas_src>

<mosaic_0001>
module attributes {stable_mosaic.version = 11 : i64} {
  func.func @slu_fused_kernel(%arg0: memref<2x8xi32, #tpu.memory_space<vmem>>, %arg1: memref<2x8xf32, #tpu.memory_space<vmem>>, %arg2: memref<2x8xi32, #tpu.memory_space<vmem>>, %arg3: memref<64x32xf32, #tpu.memory_space<vmem>>, %arg4: memref<32x128xf32, #tpu.memory_space<vmem>>, %arg5: memref<1x128xf32, #tpu.memory_space<vmem>>, %arg6: memref<32x128xf32, #tpu.memory_space<vmem>>, %arg7: memref<1x32xf32, #tpu.memory_space<vmem>>, %arg8: memref<1x32xf32, #tpu.memory_space<vmem>>, %arg9: memref<32x32xf32, #tpu.memory_space<vmem>>, %arg10: memref<32x32xf32, #tpu.memory_space<vmem>>, %arg11: memref<32x32xf32, #tpu.memory_space<vmem>>, %arg12: memref<32x16xf32, #tpu.memory_space<vmem>>, %arg13: memref<1x16xf32, #tpu.memory_space<vmem>>, %arg14: memref<2x128xf32, #tpu.memory_space<vmem>>, %arg15: memref<1x1xf32, #tpu.memory_space<smem>>, %arg16: memref<2x8x32xf32, #tpu.memory_space<vmem>>) attributes {dimension_semantics = [], scalar_prefetch = 0 : i64, scratch_operands = 1 : i64, tpu.core_type = #tpu.core_type<tc>} {
    %c0 = arith.constant 0 : index
    %c0_0 = arith.constant 0 : index
    %0 = vector.load %arg1[%c0, %c0_0] : memref<2x8xf32, #tpu.memory_space<vmem>>, vector<2x8xf32>
    %c0_1 = arith.constant 0 : index
    %c0_2 = arith.constant 0 : index
    %1 = vector.load %arg0[%c0_1, %c0_2] : memref<2x8xi32, #tpu.memory_space<vmem>>, vector<2x8xi32>
    %2 = tpu.iota {dimensions = array<i32: 2>} : vector<2x8x64xi32>
    %3 = vector.shape_cast %1 : vector<2x8xi32> to vector<2x8x1xi32>
    %4 = vector.broadcast %3 : vector<2x8x1xi32> to vector<2x8x64xi32>
    %5 = arith.cmpi eq, %4, %2 : vector<2x8x64xi32>
    %6 = arith.extui %5 : vector<2x8x64xi1> to vector<2x8x64xi32>
    %7 = arith.sitofp %6 : vector<2x8x64xi32> to vector<2x8x64xf32>
    %8 = vector.shape_cast %7 : vector<2x8x64xf32> to vector<16x64xf32>
    %c0_3 = arith.constant 0 : index
    %c0_4 = arith.constant 0 : index
    %9 = vector.load %arg3[%c0_3, %c0_4] : memref<64x32xf32, #tpu.memory_space<vmem>>, vector<64x32xf32>
    %cst = arith.constant dense<0.000000e+00> : vector<16x32xf32>
    %10 = tpu.matmul %8, %9, %cst {dimension_numbers = #tpu.dot_dimension_numbers<[1], [0], [0], [1], [0, 0, 1, 1], [], []>} : vector<16x64xf32>, vector<64x32xf32>, vector<16x32xf32> -> vector<16x32xf32>
    %c0_5 = arith.constant 0 : index
    %c0_6 = arith.constant 0 : index
    %11 = vector.load %arg4[%c0_5, %c0_6] : memref<32x128xf32, #tpu.memory_space<vmem>>, vector<32x128xf32>
    %cst_7 = arith.constant dense<0.000000e+00> : vector<16x128xf32>
    %12 = tpu.matmul %10, %11, %cst_7 {dimension_numbers = #tpu.dot_dimension_numbers<[1], [0], [0], [1], [0, 0, 1, 1], [], []>} : vector<16x32xf32>, vector<32x128xf32>, vector<16x128xf32> -> vector<16x128xf32>
    %c0_8 = arith.constant 0 : index
    %c0_9 = arith.constant 0 : index
    %13 = vector.load %arg5[%c0_8, %c0_9] : memref<1x128xf32, #tpu.memory_space<vmem>>, vector<1x128xf32>
    %14 = vector.broadcast %13 : vector<1x128xf32> to vector<16x128xf32>
    %15 = arith.addf %12, %14 : vector<16x128xf32>
    %16 = vector.shape_cast %15 : vector<16x128xf32> to vector<2x8x128xf32>
    %17 = tpu.iota {dimensions = array<i32: 1>} : vector<2x32xi32>
    %c16_i32 = arith.constant 16 : i32
    %18 = vector.broadcast %c16_i32 : i32 to vector<2x32xi32>
    %19 = arith.cmpi slt, %17, %18 : vector<2x32xi32>
    %20 = arith.extui %19 : vector<2x32xi1> to vector<2x32xi32>
    %21 = arith.sitofp %20 : vector<2x32xi32> to vector<2x32xf32>
    %22 = tpu.concatenate %21, %21, %21, %21 in 1 : vector<2x32xf32>, vector<2x32xf32>, vector<2x32xf32>, vector<2x32xf32> -> vector<2x128xf32>
    %23 = vector.extract_strided_slice %16 {offsets = [0, 0, 0], sizes = [2, 1, 128], strides = [1, 1, 1]} : vector<2x8x128xf32> to vector<2x1x128xf32>
    %24 = vector.shape_cast %23 : vector<2x1x128xf32> to vector<2x128xf32>
    %25 = arith.mulf %22, %24 : vector<2x128xf32>
    %cst_10 = arith.constant 1.000000e+00 : f32
    %26 = vector.broadcast %cst_10 : f32 to vector<2x128xf32>
    %27 = arith.subf %26, %22 : vector<2x128xf32>
    %28 = vector.extract_strided_slice %16 {offsets = [0, 7, 0], sizes = [2, 1, 128], strides = [1, 1, 1]} : vector<2x8x128xf32> to vector<2x1x128xf32>
    %29 = vector.shape_cast %28 : vector<2x1x128xf32> to vector<2x128xf32>
    %30 = arith.mulf %27, %29 : vector<2x128xf32>
    %31 = arith.addf %25, %30 : vector<2x128xf32>
    %32 = vector.extract_strided_slice %0 {offsets = [0, 0], sizes = [2, 1], strides = [1, 1]} : vector<2x8xf32> to vector<2x1xf32>
    %33 = vector.broadcast %32 : vector<2x1xf32> to vector<2x32xf32>
    %34 = arith.mulf %21, %33 : vector<2x32xf32>
    %cst_11 = arith.constant 1.000000e+00 : f32
    %35 = vector.broadcast %cst_11 : f32 to vector<2x32xf32>
    %36 = arith.subf %35, %21 : vector<2x32xf32>
    %37 = vector.extract_strided_slice %0 {offsets = [0, 7], sizes = [2, 1], strides = [1, 1]} : vector<2x8xf32> to vector<2x1xf32>
    %38 = vector.broadcast %37 : vector<2x1xf32> to vector<2x32xf32>
    %39 = arith.mulf %36, %38 : vector<2x32xf32>
    %40 = arith.addf %34, %39 : vector<2x32xf32>
    %41 = vector.extract_strided_slice %16 {offsets = [0, 1, 0], sizes = [2, 1, 128], strides = [1, 1, 1]} : vector<2x8x128xf32> to vector<2x1x128xf32>
    %42 = vector.shape_cast %41 : vector<2x1x128xf32> to vector<2x128xf32>
    %43 = arith.mulf %22, %42 : vector<2x128xf32>
    %cst_12 = arith.constant 1.000000e+00 : f32
    %44 = vector.broadcast %cst_12 : f32 to vector<2x128xf32>
    %45 = arith.subf %44, %22 : vector<2x128xf32>
    %46 = vector.extract_strided_slice %16 {offsets = [0, 6, 0], sizes = [2, 1, 128], strides = [1, 1, 1]} : vector<2x8x128xf32> to vector<2x1x128xf32>
    %47 = vector.shape_cast %46 : vector<2x1x128xf32> to vector<2x128xf32>
    %48 = arith.mulf %45, %47 : vector<2x128xf32>
    %49 = arith.addf %43, %48 : vector<2x128xf32>
    %50 = vector.extract_strided_slice %0 {offsets = [0, 1], sizes = [2, 1], strides = [1, 1]} : vector<2x8xf32> to vector<2x1xf32>
    %51 = vector.broadcast %50 : vector<2x1xf32> to vector<2x32xf32>
    %52 = arith.mulf %21, %51 : vector<2x32xf32>
    %cst_13 = arith.constant 1.000000e+00 : f32
    %53 = vector.broadcast %cst_13 : f32 to vector<2x32xf32>
    %54 = arith.subf %53, %21 : vector<2x32xf32>
    %55 = vector.extract_strided_slice %0 {offsets = [0, 6], sizes = [2, 1], strides = [1, 1]} : vector<2x8xf32> to vector<2x1xf32>
    %56 = vector.broadcast %55 : vector<2x1xf32> to vector<2x32xf32>
    %57 = arith.mulf %54, %56 : vector<2x32xf32>
    %58 = arith.addf %52, %57 : vector<2x32xf32>
    %59 = vector.extract_strided_slice %16 {offsets = [0, 2, 0], sizes = [2, 1, 128], strides = [1, 1, 1]} : vector<2x8x128xf32> to vector<2x1x128xf32>
    %60 = vector.shape_cast %59 : vector<2x1x128xf32> to vector<2x128xf32>
    %61 = arith.mulf %22, %60 : vector<2x128xf32>
    %cst_14 = arith.constant 1.000000e+00 : f32
    %62 = vector.broadcast %cst_14 : f32 to vector<2x128xf32>
    %63 = arith.subf %62, %22 : vector<2x128xf32>
    %64 = vector.extract_strided_slice %16 {offsets = [0, 5, 0], sizes = [2, 1, 128], strides = [1, 1, 1]} : vector<2x8x128xf32> to vector<2x1x128xf32>
    %65 = vector.shape_cast %64 : vector<2x1x128xf32> to vector<2x128xf32>
    %66 = arith.mulf %63, %65 : vector<2x128xf32>
    %67 = arith.addf %61, %66 : vector<2x128xf32>
    %68 = vector.extract_strided_slice %0 {offsets = [0, 2], sizes = [2, 1], strides = [1, 1]} : vector<2x8xf32> to vector<2x1xf32>
    %69 = vector.broadcast %68 : vector<2x1xf32> to vector<2x32xf32>
    %70 = arith.mulf %21, %69 : vector<2x32xf32>
    %cst_15 = arith.constant 1.000000e+00 : f32
    %71 = vector.broadcast %cst_15 : f32 to vector<2x32xf32>
    %72 = arith.subf %71, %21 : vector<2x32xf32>
    %73 = vector.extract_strided_slice %0 {offsets = [0, 5], sizes = [2, 1], strides = [1, 1]} : vector<2x8xf32> to vector<2x1xf32>
    %74 = vector.broadcast %73 : vector<2x1xf32> to vector<2x32xf32>
    %75 = arith.mulf %72, %74 : vector<2x32xf32>
    %76 = arith.addf %70, %75 : vector<2x32xf32>
    %77 = vector.extract_strided_slice %16 {offsets = [0, 3, 0], sizes = [2, 1, 128], strides = [1, 1, 1]} : vector<2x8x128xf32> to vector<2x1x128xf32>
    %78 = vector.shape_cast %77 : vector<2x1x128xf32> to vector<2x128xf32>
    %79 = arith.mulf %22, %78 : vector<2x128xf32>
    %cst_16 = arith.constant 1.000000e+00 : f32
    %80 = vector.broadcast %cst_16 : f32 to vector<2x128xf32>
    %81 = arith.subf %80, %22 : vector<2x128xf32>
    %82 = vector.extract_strided_slice %16 {offsets = [0, 4, 0], sizes = [2, 1, 128], strides = [1, 1, 1]} : vector<2x8x128xf32> to vector<2x1x128xf32>
    %83 = vector.shape_cast %82 : vector<2x1x128xf32> to vector<2x128xf32>
    %84 = arith.mulf %81, %83 : vector<2x128xf32>
    %85 = arith.addf %79, %84 : vector<2x128xf32>
    %86 = vector.extract_strided_slice %0 {offsets = [0, 3], sizes = [2, 1], strides = [1, 1]} : vector<2x8xf32> to vector<2x1xf32>
    %87 = vector.broadcast %86 : vector<2x1xf32> to vector<2x32xf32>
    %88 = arith.mulf %21, %87 : vector<2x32xf32>
    %cst_17 = arith.constant 1.000000e+00 : f32
    %89 = vector.broadcast %cst_17 : f32 to vector<2x32xf32>
    %90 = arith.subf %89, %21 : vector<2x32xf32>
    %91 = vector.extract_strided_slice %0 {offsets = [0, 4], sizes = [2, 1], strides = [1, 1]} : vector<2x8xf32> to vector<2x1xf32>
    %92 = vector.broadcast %91 : vector<2x1xf32> to vector<2x32xf32>
    %93 = arith.mulf %90, %92 : vector<2x32xf32>
    %94 = arith.addf %88, %93 : vector<2x32xf32>
    %95 = vector.extract_strided_slice %16 {offsets = [0, 4, 0], sizes = [2, 1, 128], strides = [1, 1, 1]} : vector<2x8x128xf32> to vector<2x1x128xf32>
    %96 = vector.shape_cast %95 : vector<2x1x128xf32> to vector<2x128xf32>
    %97 = arith.mulf %22, %96 : vector<2x128xf32>
    %cst_18 = arith.constant 1.000000e+00 : f32
    %98 = vector.broadcast %cst_18 : f32 to vector<2x128xf32>
    %99 = arith.subf %98, %22 : vector<2x128xf32>
    %100 = vector.extract_strided_slice %16 {offsets = [0, 3, 0], sizes = [2, 1, 128], strides = [1, 1, 1]} : vector<2x8x128xf32> to vector<2x1x128xf32>
    %101 = vector.shape_cast %100 : vector<2x1x128xf32> to vector<2x128xf32>
    %102 = arith.mulf %99, %101 : vector<2x128xf32>
    %103 = arith.addf %97, %102 : vector<2x128xf32>
    %104 = vector.extract_strided_slice %0 {offsets = [0, 4], sizes = [2, 1], strides = [1, 1]} : vector<2x8xf32> to vector<2x1xf32>
    %105 = vector.broadcast %104 : vector<2x1xf32> to vector<2x32xf32>
    %106 = arith.mulf %21, %105 : vector<2x32xf32>
    %cst_19 = arith.constant 1.000000e+00 : f32
    %107 = vector.broadcast %cst_19 : f32 to vector<2x32xf32>
    %108 = arith.subf %107, %21 : vector<2x32xf32>
    %109 = vector.extract_strided_slice %0 {offsets = [0, 3], sizes = [2, 1], strides = [1, 1]} : vector<2x8xf32> to vector<2x1xf32>
    %110 = vector.broadcast %109 : vector<2x1xf32> to vector<2x32xf32>
    %111 = arith.mulf %108, %110 : vector<2x32xf32>
    %112 = arith.addf %106, %111 : vector<2x32xf32>
    %113 = vector.extract_strided_slice %16 {offsets = [0, 5, 0], sizes = [2, 1, 128], strides = [1, 1, 1]} : vector<2x8x128xf32> to vector<2x1x128xf32>
    %114 = vector.shape_cast %113 : vector<2x1x128xf32> to vector<2x128xf32>
    %115 = arith.mulf %22, %114 : vector<2x128xf32>
    %cst_20 = arith.constant 1.000000e+00 : f32
    %116 = vector.broadcast %cst_20 : f32 to vector<2x128xf32>
    %117 = arith.subf %116, %22 : vector<2x128xf32>
    %118 = vector.extract_strided_slice %16 {offsets = [0, 2, 0], sizes = [2, 1, 128], strides = [1, 1, 1]} : vector<2x8x128xf32> to vector<2x1x128xf32>
    %119 = vector.shape_cast %118 : vector<2x1x128xf32> to vector<2x128xf32>
    %120 = arith.mulf %117, %119 : vector<2x128xf32>
    %121 = arith.addf %115, %120 : vector<2x128xf32>
    %122 = vector.extract_strided_slice %0 {offsets = [0, 5], sizes = [2, 1], strides = [1, 1]} : vector<2x8xf32> to vector<2x1xf32>
    %123 = vector.broadcast %122 : vector<2x1xf32> to vector<2x32xf32>
    %124 = arith.mulf %21, %123 : vector<2x32xf32>
    %cst_21 = arith.constant 1.000000e+00 : f32
    %125 = vector.broadcast %cst_21 : f32 to vector<2x32xf32>
    %126 = arith.subf %125, %21 : vector<2x32xf32>
    %127 = vector.extract_strided_slice %0 {offsets = [0, 2], sizes = [2, 1], strides = [1, 1]} : vector<2x8xf32> to vector<2x1xf32>
    %128 = vector.broadcast %127 : vector<2x1xf32> to vector<2x32xf32>
    %129 = arith.mulf %126, %128 : vector<2x32xf32>
    %130 = arith.addf %124, %129 : vector<2x32xf32>
    %131 = vector.extract_strided_slice %16 {offsets = [0, 6, 0], sizes = [2, 1, 128], strides = [1, 1, 1]} : vector<2x8x128xf32> to vector<2x1x128xf32>
    %132 = vector.shape_cast %131 : vector<2x1x128xf32> to vector<2x128xf32>
    %133 = arith.mulf %22, %132 : vector<2x128xf32>
    %cst_22 = arith.constant 1.000000e+00 : f32
    %134 = vector.broadcast %cst_22 : f32 to vector<2x128xf32>
    %135 = arith.subf %134, %22 : vector<2x128xf32>
    %136 = vector.extract_strided_slice %16 {offsets = [0, 1, 0], sizes = [2, 1, 128], strides = [1, 1, 1]} : vector<2x8x128xf32> to vector<2x1x128xf32>
    %137 = vector.shape_cast %136 : vector<2x1x128xf32> to vector<2x128xf32>
    %138 = arith.mulf %135, %137 : vector<2x128xf32>
    %139 = arith.addf %133, %138 : vector<2x128xf32>
    %140 = vector.extract_strided_slice %0 {offsets = [0, 6], sizes = [2, 1], strides = [1, 1]} : vector<2x8xf32> to vector<2x1xf32>
    %141 = vector.broadcast %140 : vector<2x1xf32> to vector<2x32xf32>
    %142 = arith.mulf %21, %141 : vector<2x32xf32>
    %cst_23 = arith.constant 1.000000e+00 : f32
    %143 = vector.broadcast %cst_23 : f32 to vector<2x32xf32>
    %144 = arith.subf %143, %21 : vector<2x32xf32>
    %145 = vector.extract_strided_slice %0 {offsets = [0, 1], sizes = [2, 1], strides = [1, 1]} : vector<2x8xf32> to vector<2x1xf32>
    %146 = vector.broadcast %145 : vector<2x1xf32> to vector<2x32xf32>
    %147 = arith.mulf %144, %146 : vector<2x32xf32>
    %148 = arith.addf %142, %147 : vector<2x32xf32>
    %149 = vector.extract_strided_slice %16 {offsets = [0, 7, 0], sizes = [2, 1, 128], strides = [1, 1, 1]} : vector<2x8x128xf32> to vector<2x1x128xf32>
    %150 = vector.shape_cast %149 : vector<2x1x128xf32> to vector<2x128xf32>
    %151 = arith.mulf %22, %150 : vector<2x128xf32>
    %cst_24 = arith.constant 1.000000e+00 : f32
    %152 = vector.broadcast %cst_24 : f32 to vector<2x128xf32>
    %153 = arith.subf %152, %22 : vector<2x128xf32>
    %154 = vector.extract_strided_slice %16 {offsets = [0, 0, 0], sizes = [2, 1, 128], strides = [1, 1, 1]} : vector<2x8x128xf32> to vector<2x1x128xf32>
    %155 = vector.shape_cast %154 : vector<2x1x128xf32> to vector<2x128xf32>
    %156 = arith.mulf %153, %155 : vector<2x128xf32>
    %157 = arith.addf %151, %156 : vector<2x128xf32>
    %158 = vector.extract_strided_slice %0 {offsets = [0, 7], sizes = [2, 1], strides = [1, 1]} : vector<2x8xf32> to vector<2x1xf32>
    %159 = vector.broadcast %158 : vector<2x1xf32> to vector<2x32xf32>
    %160 = arith.mulf %21, %159 : vector<2x32xf32>
    %cst_25 = arith.constant 1.000000e+00 : f32
    %161 = vector.broadcast %cst_25 : f32 to vector<2x32xf32>
    %162 = arith.subf %161, %21 : vector<2x32xf32>
    %163 = vector.extract_strided_slice %0 {offsets = [0, 0], sizes = [2, 1], strides = [1, 1]} : vector<2x8xf32> to vector<2x1xf32>
    %164 = vector.broadcast %163 : vector<2x1xf32> to vector<2x32xf32>
    %165 = arith.mulf %162, %164 : vector<2x32xf32>
    %166 = arith.addf %160, %165 : vector<2x32xf32>
    %c0_26 = arith.constant 0 : index
    %c0_27 = arith.constant 0 : index
    %167 = vector.load %arg6[%c0_26, %c0_27] : memref<32x128xf32, #tpu.memory_space<vmem>>, vector<32x128xf32>
    %cst_28 = arith.constant 0.000000e+00 : f32
    %168 = vector.broadcast %cst_28 : f32 to vector<2x32xf32>
    %cst_29 = arith.constant 0.000000e+00 : f32
    %169 = vector.broadcast %cst_29 : f32 to vector<2x32xf32>
    %cst_30 = arith.constant dense<0.000000e+00> : vector<2x128xf32>
    %170 = tpu.matmul %168, %167, %cst_30 {dimension_numbers = #tpu.dot_dimension_numbers<[1], [0], [0], [1], [0, 0, 1, 1], [], []>} : vector<2x32xf32>, vector<32x128xf32>, vector<2x128xf32> -> vector<2x128xf32>
    %171 = arith.addf %31, %170 : vector<2x128xf32>
    %172 = arith.negf %171 : vector<2x128xf32>
    %173 = math.exp %172 : vector<2x128xf32>
    %cst_31 = arith.constant 1.000000e+00 : f32
    %174 = vector.broadcast %cst_31 : f32 to vector<2x128xf32>
    %175 = arith.addf %174, %173 : vector<2x128xf32>
    %176 = arith.divf %174, %175 : vector<2x128xf32>
    %177 = vector.extract_strided_slice %176 {offsets = [0, 0], sizes = [2, 32], strides = [1, 1]} : vector<2x128xf32> to vector<2x32xf32>
    %178 = vector.extract_strided_slice %176 {offsets = [0, 32], sizes = [2, 32], strides = [1, 1]} : vector<2x128xf32> to vector<2x32xf32>
    %179 = vector.extract_strided_slice %171 {offsets = [0, 64], sizes = [2, 32], strides = [1, 1]} : vector<2x128xf32> to vector<2x32xf32>
    %180 = math.tanh %179 : vector<2x32xf32>
    %181 = vector.extract_strided_slice %176 {offsets = [0, 96], sizes = [2, 32], strides = [1, 1]} : vector<2x128xf32> to vector<2x32xf32>
    %182 = arith.mulf %178, %169 : vector<2x32xf32>
    %183 = arith.mulf %177, %180 : vector<2x32xf32>
    %184 = arith.addf %182, %183 : vector<2x32xf32>
    %185 = math.tanh %184 : vector<2x32xf32>
    %186 = arith.mulf %181, %185 : vector<2x32xf32>
    %187 = arith.mulf %40, %186 : vector<2x32xf32>
    %cst_32 = arith.constant 1.000000e+00 : f32
    %188 = vector.broadcast %cst_32 : f32 to vector<2x32xf32>
    %189 = arith.subf %188, %40 : vector<2x32xf32>
    %190 = arith.mulf %189, %168 : vector<2x32xf32>
    %191 = arith.addf %187, %190 : vector<2x32xf32>
    %192 = arith.mulf %40, %184 : vector<2x32xf32>
    %cst_33 = arith.constant 1.000000e+00 : f32
    %193 = vector.broadcast %cst_33 : f32 to vector<2x32xf32>
    %194 = arith.subf %193, %40 : vector<2x32xf32>
    %195 = arith.mulf %194, %169 : vector<2x32xf32>
    %196 = arith.addf %192, %195 : vector<2x32xf32>
    %cst_34 = arith.constant dense<0.000000e+00> : vector<2x128xf32>
    %197 = tpu.matmul %191, %167, %cst_34 {dimension_numbers = #tpu.dot_dimension_numbers<[1], [0], [0], [1], [0, 0, 1, 1], [], []>} : vector<2x32xf32>, vector<32x128xf32>, vector<2x128xf32> -> vector<2x128xf32>
    %198 = arith.addf %49, %197 : vector<2x128xf32>
    %199 = arith.negf %198 : vector<2x128xf32>
    %200 = math.exp %199 : vector<2x128xf32>
    %cst_35 = arith.constant 1.000000e+00 : f32
    %201 = vector.broadcast %cst_35 : f32 to vector<2x128xf32>
    %202 = arith.addf %201, %200 : vector<2x128xf32>
    %203 = arith.divf %201, %202 : vector<2x128xf32>
    %204 = vector.extract_strided_slice %203 {offsets = [0, 0], sizes = [2, 32], strides = [1, 1]} : vector<2x128xf32> to vector<2x32xf32>
    %205 = vector.extract_strided_slice %203 {offsets = [0, 32], sizes = [2, 32], strides = [1, 1]} : vector<2x128xf32> to vector<2x32xf32>
    %206 = vector.extract_strided_slice %198 {offsets = [0, 64], sizes = [2, 32], strides = [1, 1]} : vector<2x128xf32> to vector<2x32xf32>
    %207 = math.tanh %206 : vector<2x32xf32>
    %208 = vector.extract_strided_slice %203 {offsets = [0, 96], sizes = [2, 32], strides = [1, 1]} : vector<2x128xf32> to vector<2x32xf32>
    %209 = arith.mulf %205, %196 : vector<2x32xf32>
    %210 = arith.mulf %204, %207 : vector<2x32xf32>
    %211 = arith.addf %209, %210 : vector<2x32xf32>
    %212 = math.tanh %211 : vector<2x32xf32>
    %213 = arith.mulf %208, %212 : vector<2x32xf32>
    %214 = arith.mulf %58, %213 : vector<2x32xf32>
    %cst_36 = arith.constant 1.000000e+00 : f32
    %215 = vector.broadcast %cst_36 : f32 to vector<2x32xf32>
    %216 = arith.subf %215, %58 : vector<2x32xf32>
    %217 = arith.mulf %216, %191 : vector<2x32xf32>
    %218 = arith.addf %214, %217 : vector<2x32xf32>
    %219 = arith.mulf %58, %211 : vector<2x32xf32>
    %cst_37 = arith.constant 1.000000e+00 : f32
    %220 = vector.broadcast %cst_37 : f32 to vector<2x32xf32>
    %221 = arith.subf %220, %58 : vector<2x32xf32>
    %222 = arith.mulf %221, %196 : vector<2x32xf32>
    %223 = arith.addf %219, %222 : vector<2x32xf32>
    %cst_38 = arith.constant dense<0.000000e+00> : vector<2x128xf32>
    %224 = tpu.matmul %218, %167, %cst_38 {dimension_numbers = #tpu.dot_dimension_numbers<[1], [0], [0], [1], [0, 0, 1, 1], [], []>} : vector<2x32xf32>, vector<32x128xf32>, vector<2x128xf32> -> vector<2x128xf32>
    %225 = arith.addf %67, %224 : vector<2x128xf32>
    %226 = arith.negf %225 : vector<2x128xf32>
    %227 = math.exp %226 : vector<2x128xf32>
    %cst_39 = arith.constant 1.000000e+00 : f32
    %228 = vector.broadcast %cst_39 : f32 to vector<2x128xf32>
    %229 = arith.addf %228, %227 : vector<2x128xf32>
    %230 = arith.divf %228, %229 : vector<2x128xf32>
    %231 = vector.extract_strided_slice %230 {offsets = [0, 0], sizes = [2, 32], strides = [1, 1]} : vector<2x128xf32> to vector<2x32xf32>
    %232 = vector.extract_strided_slice %230 {offsets = [0, 32], sizes = [2, 32], strides = [1, 1]} : vector<2x128xf32> to vector<2x32xf32>
    %233 = vector.extract_strided_slice %225 {offsets = [0, 64], sizes = [2, 32], strides = [1, 1]} : vector<2x128xf32> to vector<2x32xf32>
    %234 = math.tanh %233 : vector<2x32xf32>
    %235 = vector.extract_strided_slice %230 {offsets = [0, 96], sizes = [2, 32], strides = [1, 1]} : vector<2x128xf32> to vector<2x32xf32>
    %236 = arith.mulf %232, %223 : vector<2x32xf32>
    %237 = arith.mulf %231, %234 : vector<2x32xf32>
    %238 = arith.addf %236, %237 : vector<2x32xf32>
    %239 = math.tanh %238 : vector<2x32xf32>
    %240 = arith.mulf %235, %239 : vector<2x32xf32>
    %241 = arith.mulf %76, %240 : vector<2x32xf32>
    %cst_40 = arith.constant 1.000000e+00 : f32
    %242 = vector.broadcast %cst_40 : f32 to vector<2x32xf32>
    %243 = arith.subf %242, %76 : vector<2x32xf32>
    %244 = arith.mulf %243, %218 : vector<2x32xf32>
    %245 = arith.addf %241, %244 : vector<2x32xf32>
    %246 = arith.mulf %76, %238 : vector<2x32xf32>
    %cst_41 = arith.constant 1.000000e+00 : f32
    %247 = vector.broadcast %cst_41 : f32 to vector<2x32xf32>
    %248 = arith.subf %247, %76 : vector<2x32xf32>
    %249 = arith.mulf %248, %223 : vector<2x32xf32>
    %250 = arith.addf %246, %249 : vector<2x32xf32>
    %cst_42 = arith.constant dense<0.000000e+00> : vector<2x128xf32>
    %251 = tpu.matmul %245, %167, %cst_42 {dimension_numbers = #tpu.dot_dimension_numbers<[1], [0], [0], [1], [0, 0, 1, 1], [], []>} : vector<2x32xf32>, vector<32x128xf32>, vector<2x128xf32> -> vector<2x128xf32>
    %252 = arith.addf %85, %251 : vector<2x128xf32>
    %253 = arith.negf %252 : vector<2x128xf32>
    %254 = math.exp %253 : vector<2x128xf32>
    %cst_43 = arith.constant 1.000000e+00 : f32
    %255 = vector.broadcast %cst_43 : f32 to vector<2x128xf32>
    %256 = arith.addf %255, %254 : vector<2x128xf32>
    %257 = arith.divf %255, %256 : vector<2x128xf32>
    %258 = vector.extract_strided_slice %257 {offsets = [0, 0], sizes = [2, 32], strides = [1, 1]} : vector<2x128xf32> to vector<2x32xf32>
    %259 = vector.extract_strided_slice %257 {offsets = [0, 32], sizes = [2, 32], strides = [1, 1]} : vector<2x128xf32> to vector<2x32xf32>
    %260 = vector.extract_strided_slice %252 {offsets = [0, 64], sizes = [2, 32], strides = [1, 1]} : vector<2x128xf32> to vector<2x32xf32>
    %261 = math.tanh %260 : vector<2x32xf32>
    %262 = vector.extract_strided_slice %257 {offsets = [0, 96], sizes = [2, 32], strides = [1, 1]} : vector<2x128xf32> to vector<2x32xf32>
    %263 = arith.mulf %259, %250 : vector<2x32xf32>
    %264 = arith.mulf %258, %261 : vector<2x32xf32>
    %265 = arith.addf %263, %264 : vector<2x32xf32>
    %266 = math.tanh %265 : vector<2x32xf32>
    %267 = arith.mulf %262, %266 : vector<2x32xf32>
    %268 = arith.mulf %94, %267 : vector<2x32xf32>
    %cst_44 = arith.constant 1.000000e+00 : f32
    %269 = vector.broadcast %cst_44 : f32 to vector<2x32xf32>
    %270 = arith.subf %269, %94 : vector<2x32xf32>
    %271 = arith.mulf %270, %245 : vector<2x32xf32>
    %272 = arith.addf %268, %271 : vector<2x32xf32>
    %273 = arith.mulf %94, %265 : vector<2x32xf32>
    %cst_45 = arith.constant 1.000000e+00 : f32
    %274 = vector.broadcast %cst_45 : f32 to vector<2x32xf32>
    %275 = arith.subf %274, %94 : vector<2x32xf32>
    %276 = arith.mulf %275, %250 : vector<2x32xf32>
    %277 = arith.addf %273, %276 : vector<2x32xf32>
    %cst_46 = arith.constant dense<0.000000e+00> : vector<2x128xf32>
    %278 = tpu.matmul %272, %167, %cst_46 {dimension_numbers = #tpu.dot_dimension_numbers<[1], [0], [0], [1], [0, 0, 1, 1], [], []>} : vector<2x32xf32>, vector<32x128xf32>, vector<2x128xf32> -> vector<2x128xf32>
    %279 = arith.addf %103, %278 : vector<2x128xf32>
    %280 = arith.negf %279 : vector<2x128xf32>
    %281 = math.exp %280 : vector<2x128xf32>
    %cst_47 = arith.constant 1.000000e+00 : f32
    %282 = vector.broadcast %cst_47 : f32 to vector<2x128xf32>
    %283 = arith.addf %282, %281 : vector<2x128xf32>
    %284 = arith.divf %282, %283 : vector<2x128xf32>
    %285 = vector.extract_strided_slice %284 {offsets = [0, 0], sizes = [2, 32], strides = [1, 1]} : vector<2x128xf32> to vector<2x32xf32>
    %286 = vector.extract_strided_slice %284 {offsets = [0, 32], sizes = [2, 32], strides = [1, 1]} : vector<2x128xf32> to vector<2x32xf32>
    %287 = vector.extract_strided_slice %279 {offsets = [0, 64], sizes = [2, 32], strides = [1, 1]} : vector<2x128xf32> to vector<2x32xf32>
    %288 = math.tanh %287 : vector<2x32xf32>
    %289 = vector.extract_strided_slice %284 {offsets = [0, 96], sizes = [2, 32], strides = [1, 1]} : vector<2x128xf32> to vector<2x32xf32>
    %290 = arith.mulf %286, %277 : vector<2x32xf32>
    %291 = arith.mulf %285, %288 : vector<2x32xf32>
    %292 = arith.addf %290, %291 : vector<2x32xf32>
    %293 = math.tanh %292 : vector<2x32xf32>
    %294 = arith.mulf %289, %293 : vector<2x32xf32>
    %295 = arith.mulf %112, %294 : vector<2x32xf32>
    %cst_48 = arith.constant 1.000000e+00 : f32
    %296 = vector.broadcast %cst_48 : f32 to vector<2x32xf32>
    %297 = arith.subf %296, %112 : vector<2x32xf32>
    %298 = arith.mulf %297, %272 : vector<2x32xf32>
    %299 = arith.addf %295, %298 : vector<2x32xf32>
    %300 = arith.mulf %112, %292 : vector<2x32xf32>
    %cst_49 = arith.constant 1.000000e+00 : f32
    %301 = vector.broadcast %cst_49 : f32 to vector<2x32xf32>
    %302 = arith.subf %301, %112 : vector<2x32xf32>
    %303 = arith.mulf %302, %277 : vector<2x32xf32>
    %304 = arith.addf %300, %303 : vector<2x32xf32>
    %cst_50 = arith.constant dense<0.000000e+00> : vector<2x128xf32>
    %305 = tpu.matmul %299, %167, %cst_50 {dimension_numbers = #tpu.dot_dimension_numbers<[1], [0], [0], [1], [0, 0, 1, 1], [], []>} : vector<2x32xf32>, vector<32x128xf32>, vector<2x128xf32> -> vector<2x128xf32>
    %306 = arith.addf %121, %305 : vector<2x128xf32>
    %307 = arith.negf %306 : vector<2x128xf32>
    %308 = math.exp %307 : vector<2x128xf32>
    %cst_51 = arith.constant 1.000000e+00 : f32
    %309 = vector.broadcast %cst_51 : f32 to vector<2x128xf32>
    %310 = arith.addf %309, %308 : vector<2x128xf32>
    %311 = arith.divf %309, %310 : vector<2x128xf32>
    %312 = vector.extract_strided_slice %311 {offsets = [0, 0], sizes = [2, 32], strides = [1, 1]} : vector<2x128xf32> to vector<2x32xf32>
    %313 = vector.extract_strided_slice %311 {offsets = [0, 32], sizes = [2, 32], strides = [1, 1]} : vector<2x128xf32> to vector<2x32xf32>
    %314 = vector.extract_strided_slice %306 {offsets = [0, 64], sizes = [2, 32], strides = [1, 1]} : vector<2x128xf32> to vector<2x32xf32>
    %315 = math.tanh %314 : vector<2x32xf32>
    %316 = vector.extract_strided_slice %311 {offsets = [0, 96], sizes = [2, 32], strides = [1, 1]} : vector<2x128xf32> to vector<2x32xf32>
    %317 = arith.mulf %313, %304 : vector<2x32xf32>
    %318 = arith.mulf %312, %315 : vector<2x32xf32>
    %319 = arith.addf %317, %318 : vector<2x32xf32>
    %320 = math.tanh %319 : vector<2x32xf32>
    %321 = arith.mulf %316, %320 : vector<2x32xf32>
    %322 = arith.mulf %130, %321 : vector<2x32xf32>
    %cst_52 = arith.constant 1.000000e+00 : f32
    %323 = vector.broadcast %cst_52 : f32 to vector<2x32xf32>
    %324 = arith.subf %323, %130 : vector<2x32xf32>
    %325 = arith.mulf %324, %299 : vector<2x32xf32>
    %326 = arith.addf %322, %325 : vector<2x32xf32>
    %327 = arith.mulf %130, %319 : vector<2x32xf32>
    %cst_53 = arith.constant 1.000000e+00 : f32
    %328 = vector.broadcast %cst_53 : f32 to vector<2x32xf32>
    %329 = arith.subf %328, %130 : vector<2x32xf32>
    %330 = arith.mulf %329, %304 : vector<2x32xf32>
    %331 = arith.addf %327, %330 : vector<2x32xf32>
    %cst_54 = arith.constant dense<0.000000e+00> : vector<2x128xf32>
    %332 = tpu.matmul %326, %167, %cst_54 {dimension_numbers = #tpu.dot_dimension_numbers<[1], [0], [0], [1], [0, 0, 1, 1], [], []>} : vector<2x32xf32>, vector<32x128xf32>, vector<2x128xf32> -> vector<2x128xf32>
    %333 = arith.addf %139, %332 : vector<2x128xf32>
    %334 = arith.negf %333 : vector<2x128xf32>
    %335 = math.exp %334 : vector<2x128xf32>
    %cst_55 = arith.constant 1.000000e+00 : f32
    %336 = vector.broadcast %cst_55 : f32 to vector<2x128xf32>
    %337 = arith.addf %336, %335 : vector<2x128xf32>
    %338 = arith.divf %336, %337 : vector<2x128xf32>
    %339 = vector.extract_strided_slice %338 {offsets = [0, 0], sizes = [2, 32], strides = [1, 1]} : vector<2x128xf32> to vector<2x32xf32>
    %340 = vector.extract_strided_slice %338 {offsets = [0, 32], sizes = [2, 32], strides = [1, 1]} : vector<2x128xf32> to vector<2x32xf32>
    %341 = vector.extract_strided_slice %333 {offsets = [0, 64], sizes = [2, 32], strides = [1, 1]} : vector<2x128xf32> to vector<2x32xf32>
    %342 = math.tanh %341 : vector<2x32xf32>
    %343 = vector.extract_strided_slice %338 {offsets = [0, 96], sizes = [2, 32], strides = [1, 1]} : vector<2x128xf32> to vector<2x32xf32>
    %344 = arith.mulf %340, %331 : vector<2x32xf32>
    %345 = arith.mulf %339, %342 : vector<2x32xf32>
    %346 = arith.addf %344, %345 : vector<2x32xf32>
    %347 = math.tanh %346 : vector<2x32xf32>
    %348 = arith.mulf %343, %347 : vector<2x32xf32>
    %349 = arith.mulf %148, %348 : vector<2x32xf32>
    %cst_56 = arith.constant 1.000000e+00 : f32
    %350 = vector.broadcast %cst_56 : f32 to vector<2x32xf32>
    %351 = arith.subf %350, %148 : vector<2x32xf32>
    %352 = arith.mulf %351, %326 : vector<2x32xf32>
    %353 = arith.addf %349, %352 : vector<2x32xf32>
    %354 = arith.mulf %148, %346 : vector<2x32xf32>
    %cst_57 = arith.constant 1.000000e+00 : f32
    %355 = vector.broadcast %cst_57 : f32 to vector<2x32xf32>
    %356 = arith.subf %355, %148 : vector<2x32xf32>
    %357 = arith.mulf %356, %331 : vector<2x32xf32>
    %358 = arith.addf %354, %357 : vector<2x32xf32>
    %cst_58 = arith.constant dense<0.000000e+00> : vector<2x128xf32>
    %359 = tpu.matmul %353, %167, %cst_58 {dimension_numbers = #tpu.dot_dimension_numbers<[1], [0], [0], [1], [0, 0, 1, 1], [], []>} : vector<2x32xf32>, vector<32x128xf32>, vector<2x128xf32> -> vector<2x128xf32>
    %360 = arith.addf %157, %359 : vector<2x128xf32>
    %361 = arith.negf %360 : vector<2x128xf32>
    %362 = math.exp %361 : vector<2x128xf32>
    %cst_59 = arith.constant 1.000000e+00 : f32
    %363 = vector.broadcast %cst_59 : f32 to vector<2x128xf32>
    %364 = arith.addf %363, %362 : vector<2x128xf32>
    %365 = arith.divf %363, %364 : vector<2x128xf32>
    %366 = vector.extract_strided_slice %365 {offsets = [0, 0], sizes = [2, 32], strides = [1, 1]} : vector<2x128xf32> to vector<2x32xf32>
    %367 = vector.extract_strided_slice %365 {offsets = [0, 32], sizes = [2, 32], strides = [1, 1]} : vector<2x128xf32> to vector<2x32xf32>
    %368 = vector.extract_strided_slice %360 {offsets = [0, 64], sizes = [2, 32], strides = [1, 1]} : vector<2x128xf32> to vector<2x32xf32>
    %369 = math.tanh %368 : vector<2x32xf32>
    %370 = vector.extract_strided_slice %365 {offsets = [0, 96], sizes = [2, 32], strides = [1, 1]} : vector<2x128xf32> to vector<2x32xf32>
    %371 = arith.mulf %367, %358 : vector<2x32xf32>
    %372 = arith.mulf %366, %369 : vector<2x32xf32>
    %373 = arith.addf %371, %372 : vector<2x32xf32>
    %374 = math.tanh %373 : vector<2x32xf32>
    %375 = arith.mulf %370, %374 : vector<2x32xf32>
    %376 = arith.mulf %166, %375 : vector<2x32xf32>
    %377 = vector.extract_strided_slice %187 {offsets = [0, 0], sizes = [2, 16], strides = [1, 1]} : vector<2x32xf32> to vector<2x16xf32>
    %378 = vector.extract_strided_slice %376 {offsets = [0, 16], sizes = [2, 16], strides = [1, 1]} : vector<2x32xf32> to vector<2x16xf32>
    %379 = tpu.concatenate %377, %378 in 1 : vector<2x16xf32>, vector<2x16xf32> -> vector<2x32xf32>
    %c0_60 = arith.constant 0 : index
    %c0_61 = arith.constant 0 : index
    %c0_62 = arith.constant 0 : index
    %380 = vector.load %arg16[%c0_60, %c0_61, %c0_62] : memref<2x8x32xf32, #tpu.memory_space<vmem>>, vector<2x1x32xf32>
    %381 = vector.shape_cast %380 : vector<2x1x32xf32> to vector<2x32xf32>
    %382 = vector.shape_cast %379 : vector<2x32xf32> to vector<2x1x32xf32>
    tpu.vector_store %arg16[%c0_60, %c0_61, %c0_62], %382 {strides = array<i32>} : memref<2x8x32xf32, #tpu.memory_space<vmem>>, vector<2x1x32xf32>,
    %383 = vector.extract_strided_slice %214 {offsets = [0, 0], sizes = [2, 16], strides = [1, 1]} : vector<2x32xf32> to vector<2x16xf32>
    %384 = vector.extract_strided_slice %349 {offsets = [0, 16], sizes = [2, 16], strides = [1, 1]} : vector<2x32xf32> to vector<2x16xf32>
    %385 = tpu.concatenate %383, %384 in 1 : vector<2x16xf32>, vector<2x16xf32> -> vector<2x32xf32>
    %c0_63 = arith.constant 0 : index
    %c1 = arith.constant 1 : index
    %c0_64 = arith.constant 0 : index
    %386 = vector.load %arg16[%c0_63, %c1, %c0_64] : memref<2x8x32xf32, #tpu.memory_space<vmem>>, vector<2x1x32xf32>
    %387 = vector.shape_cast %386 : vector<2x1x32xf32> to vector<2x32xf32>
    %388 = vector.shape_cast %385 : vector<2x32xf32> to vector<2x1x32xf32>
    tpu.vector_store %arg16[%c0_63, %c1, %c0_64], %388 {strides = array<i32>} : memref<2x8x32xf32, #tpu.memory_space<vmem>>, vector<2x1x32xf32>,
    %389 = vector.extract_strided_slice %241 {offsets = [0, 0], sizes = [2, 16], strides = [1, 1]} : vector<2x32xf32> to vector<2x16xf32>
    %390 = vector.extract_strided_slice %322 {offsets = [0, 16], sizes = [2, 16], strides = [1, 1]} : vector<2x32xf32> to vector<2x16xf32>
    %391 = tpu.concatenate %389, %390 in 1 : vector<2x16xf32>, vector<2x16xf32> -> vector<2x32xf32>
    %c0_65 = arith.constant 0 : index
    %c2 = arith.constant 2 : index
    %c0_66 = arith.constant 0 : index
    %392 = vector.load %arg16[%c0_65, %c2, %c0_66] : memref<2x8x32xf32, #tpu.memory_space<vmem>>, vector<2x1x32xf32>
    %393 = vector.shape_cast %392 : vector<2x1x32xf32> to vector<2x32xf32>
    %394 = vector.shape_cast %391 : vector<2x32xf32> to vector<2x1x32xf32>
    tpu.vector_store %arg16[%c0_65, %c2, %c0_66], %394 {strides = array<i32>} : memref<2x8x32xf32, #tpu.memory_space<vmem>>, vector<2x1x32xf32>,
    %395 = vector.extract_strided_slice %268 {offsets = [0, 0], sizes = [2, 16], strides = [1, 1]} : vector<2x32xf32> to vector<2x16xf32>
    %396 = vector.extract_strided_slice %295 {offsets = [0, 16], sizes = [2, 16], strides = [1, 1]} : vector<2x32xf32> to vector<2x16xf32>
    %397 = tpu.concatenate %395, %396 in 1 : vector<2x16xf32>, vector<2x16xf32> -> vector<2x32xf32>
    %c0_67 = arith.constant 0 : index
    %c3 = arith.constant 3 : index
    %c0_68 = arith.constant 0 : index
    %398 = vector.load %arg16[%c0_67, %c3, %c0_68] : memref<2x8x32xf32, #tpu.memory_space<vmem>>, vector<2x1x32xf32>
    %399 = vector.shape_cast %398 : vector<2x1x32xf32> to vector<2x32xf32>
    %400 = vector.shape_cast %397 : vector<2x32xf32> to vector<2x1x32xf32>
    tpu.vector_store %arg16[%c0_67, %c3, %c0_68], %400 {strides = array<i32>} : memref<2x8x32xf32, #tpu.memory_space<vmem>>, vector<2x1x32xf32>,
    %401 = vector.extract_strided_slice %295 {offsets = [0, 0], sizes = [2, 16], strides = [1, 1]} : vector<2x32xf32> to vector<2x16xf32>
    %402 = vector.extract_strided_slice %268 {offsets = [0, 16], sizes = [2, 16], strides = [1, 1]} : vector<2x32xf32> to vector<2x16xf32>
    %403 = tpu.concatenate %401, %402 in 1 : vector<2x16xf32>, vector<2x16xf32> -> vector<2x32xf32>
    %c0_69 = arith.constant 0 : index
    %c4 = arith.constant 4 : index
    %c0_70 = arith.constant 0 : index
    %404 = vector.load %arg16[%c0_69, %c4, %c0_70] : memref<2x8x32xf32, #tpu.memory_space<vmem>>, vector<2x1x32xf32>
    %405 = vector.shape_cast %404 : vector<2x1x32xf32> to vector<2x32xf32>
    %406 = vector.shape_cast %403 : vector<2x32xf32> to vector<2x1x32xf32>
    tpu.vector_store %arg16[%c0_69, %c4, %c0_70], %406 {strides = array<i32>} : memref<2x8x32xf32, #tpu.memory_space<vmem>>, vector<2x1x32xf32>,
    %407 = vector.extract_strided_slice %322 {offsets = [0, 0], sizes = [2, 16], strides = [1, 1]} : vector<2x32xf32> to vector<2x16xf32>
    %408 = vector.extract_strided_slice %241 {offsets = [0, 16], sizes = [2, 16], strides = [1, 1]} : vector<2x32xf32> to vector<2x16xf32>
    %409 = tpu.concatenate %407, %408 in 1 : vector<2x16xf32>, vector<2x16xf32> -> vector<2x32xf32>
    %c0_71 = arith.constant 0 : index
    %c5 = arith.constant 5 : index
    %c0_72 = arith.constant 0 : index
    %410 = vector.load %arg16[%c0_71, %c5, %c0_72] : memref<2x8x32xf32, #tpu.memory_space<vmem>>, vector<2x1x32xf32>
    %411 = vector.shape_cast %410 : vector<2x1x32xf32> to vector<2x32xf32>
    %412 = vector.shape_cast %409 : vector<2x32xf32> to vector<2x1x32xf32>
    tpu.vector_store %arg16[%c0_71, %c5, %c0_72], %412 {strides = array<i32>} : memref<2x8x32xf32, #tpu.memory_space<vmem>>, vector<2x1x32xf32>,
    %413 = vector.extract_strided_slice %349 {offsets = [0, 0], sizes = [2, 16], strides = [1, 1]} : vector<2x32xf32> to vector<2x16xf32>
    %414 = vector.extract_strided_slice %214 {offsets = [0, 16], sizes = [2, 16], strides = [1, 1]} : vector<2x32xf32> to vector<2x16xf32>
    %415 = tpu.concatenate %413, %414 in 1 : vector<2x16xf32>, vector<2x16xf32> -> vector<2x32xf32>
    %c0_73 = arith.constant 0 : index
    %c6 = arith.constant 6 : index
    %c0_74 = arith.constant 0 : index
    %416 = vector.load %arg16[%c0_73, %c6, %c0_74] : memref<2x8x32xf32, #tpu.memory_space<vmem>>, vector<2x1x32xf32>
    %417 = vector.shape_cast %416 : vector<2x1x32xf32> to vector<2x32xf32>
    %418 = vector.shape_cast %415 : vector<2x32xf32> to vector<2x1x32xf32>
    tpu.vector_store %arg16[%c0_73, %c6, %c0_74], %418 {strides = array<i32>} : memref<2x8x32xf32, #tpu.memory_space<vmem>>, vector<2x1x32xf32>,
    %419 = vector.extract_strided_slice %376 {offsets = [0, 0], sizes = [2, 16], strides = [1, 1]} : vector<2x32xf32> to vector<2x16xf32>
    %420 = vector.extract_strided_slice %187 {offsets = [0, 16], sizes = [2, 16], strides = [1, 1]} : vector<2x32xf32> to vector<2x16xf32>
    %421 = tpu.concatenate %419, %420 in 1 : vector<2x16xf32>, vector<2x16xf32> -> vector<2x32xf32>
    %c0_75 = arith.constant 0 : index
    %c7 = arith.constant 7 : index
    %c0_76 = arith.constant 0 : index
    %422 = vector.load %arg16[%c0_75, %c7, %c0_76] : memref<2x8x32xf32, #tpu.memory_space<vmem>>, vector<2x1x32xf32>
    %423 = vector.shape_cast %422 : vector<2x1x32xf32> to vector<2x32xf32>
    %424 = vector.shape_cast %421 : vector<2x32xf32> to vector<2x1x32xf32>
    tpu.vector_store %arg16[%c0_75, %c7, %c0_76], %424 {strides = array<i32>} : memref<2x8x32xf32, #tpu.memory_space<vmem>>, vector<2x1x32xf32>,
    %c0_77 = arith.constant 0 : index
    %c0_78 = arith.constant 0 : index
    %c0_79 = arith.constant 0 : index
    %425 = vector.load %arg16[%c0_77, %c0_78, %c0_79] : memref<2x8x32xf32, #tpu.memory_space<vmem>>, vector<2x8x32xf32>
    %cst_80 = arith.constant dense<0.000000e+00> : vector<2x8xf32>
    %426 = vector.multi_reduction <add>, %425, %cst_80 [2] : vector<2x8x32xf32> to vector<2x8xf32>
    %427 = vector.shape_cast %426 : vector<2x8xf32> to vector<2x8x1xf32>
    %cst_81 = arith.constant 3.200000e+01 : f32
    %428 = vector.broadcast %cst_81 : f32 to vector<2x8x1xf32>
    %429 = arith.divf %427, %428 : vector<2x8x1xf32>
    %430 = vector.broadcast %429 : vector<2x8x1xf32> to vector<2x8x32xf32>
    %431 = arith.subf %425, %430 : vector<2x8x32xf32>
    %432 = arith.mulf %431, %431 : vector<2x8x32xf32>
    %cst_82 = arith.constant dense<0.000000e+00> : vector<2x8xf32>
    %433 = vector.multi_reduction <add>, %432, %cst_82 [2] : vector<2x8x32xf32> to vector<2x8xf32>
    %434 = vector.shape_cast %433 : vector<2x8xf32> to vector<2x8x1xf32>
    %cst_83 = arith.constant 3.200000e+01 : f32
    %435 = vector.broadcast %cst_83 : f32 to vector<2x8x1xf32>
    %436 = arith.divf %434, %435 : vector<2x8x1xf32>
    %437 = vector.broadcast %429 : vector<2x8x1xf32> to vector<2x8x32xf32>
    %438 = arith.subf %425, %437 : vector<2x8x32xf32>
    %cst_84 = arith.constant 9.99999974E-6 : f32
    %439 = vector.broadcast %cst_84 : f32 to vector<2x8x1xf32>
    %440 = arith.addf %436, %439 : vector<2x8x1xf32>
    %441 = math.rsqrt %440 : vector<2x8x1xf32>
    %442 = vector.broadcast %441 : vector<2x8x1xf32> to vector<2x8x32xf32>
    %443 = arith.mulf %438, %442 : vector<2x8x32xf32>
    %c0_85 = arith.constant 0 : index
    %c0_86 = arith.constant 0 : index
    %444 = vector.load %arg7[%c0_85, %c0_86] : memref<1x32xf32, #tpu.memory_space<vmem>>, vector<1x32xf32>
    %445 = vector.shape_cast %444 : vector<1x32xf32> to vector<1x1x32xf32>
    %446 = vector.broadcast %445 : vector<1x1x32xf32> to vector<2x8x32xf32>
    %447 = arith.mulf %443, %446 : vector<2x8x32xf32>
    %c0_87 = arith.constant 0 : index
    %c0_88 = arith.constant 0 : index
    %448 = vector.load %arg8[%c0_87, %c0_88] : memref<1x32xf32, #tpu.memory_space<vmem>>, vector<1x32xf32>
    %449 = vector.shape_cast %448 : vector<1x32xf32> to vector<1x1x32xf32>
    %450 = vector.broadcast %449 : vector<1x1x32xf32> to vector<2x8x32xf32>
    %451 = arith.addf %447, %450 : vector<2x8x32xf32>
    %452 = vector.shape_cast %451 : vector<2x8x32xf32> to vector<16x32xf32>
    %c0_89 = arith.constant 0 : index
    %c0_90 = arith.constant 0 : index
    %453 = vector.load %arg9[%c0_89, %c0_90] : memref<32x32xf32, #tpu.memory_space<vmem>>, vector<32x32xf32>
    %cst_91 = arith.constant dense<0.000000e+00> : vector<16x32xf32>
    %454 = tpu.matmul %452, %453, %cst_91 {dimension_numbers = #tpu.dot_dimension_numbers<[1], [0], [0], [1], [0, 0, 1, 1], [], []>} : vector<16x32xf32>, vector<32x32xf32>, vector<16x32xf32> -> vector<16x32xf32>
    %455 = vector.shape_cast %454 : vector<16x32xf32> to vector<2x8x32xf32>
    %c0_92 = arith.constant 0 : index
    %c0_93 = arith.constant 0 : index
    %456 = vector.load %arg10[%c0_92, %c0_93] : memref<32x32xf32, #tpu.memory_space<vmem>>, vector<32x32xf32>
    %cst_94 = arith.constant dense<0.000000e+00> : vector<16x32xf32>
    %457 = tpu.matmul %452, %456, %cst_94 {dimension_numbers = #tpu.dot_dimension_numbers<[1], [0], [0], [1], [0, 0, 1, 1], [], []>} : vector<16x32xf32>, vector<32x32xf32>, vector<16x32xf32> -> vector<16x32xf32>
    %458 = vector.shape_cast %457 : vector<16x32xf32> to vector<2x8x32xf32>
    %c0_95 = arith.constant 0 : index
    %c0_96 = arith.constant 0 : index
    %459 = vector.load %arg11[%c0_95, %c0_96] : memref<32x32xf32, #tpu.memory_space<vmem>>, vector<32x32xf32>
    %cst_97 = arith.constant dense<0.000000e+00> : vector<16x32xf32>
    %460 = tpu.matmul %452, %459, %cst_97 {dimension_numbers = #tpu.dot_dimension_numbers<[1], [0], [0], [1], [0, 0, 1, 1], [], []>} : vector<16x32xf32>, vector<32x32xf32>, vector<16x32xf32> -> vector<16x32xf32>
    %461 = vector.shape_cast %460 : vector<16x32xf32> to vector<2x8x32xf32>
    %462 = tpu.iota {dimensions = array<i32: 2>} : vector<1x1x32xi32>
    %c0_i32 = arith.constant 0 : i32
    %463 = vector.broadcast %c0_i32 : i32 to vector<1x1x32xi32>
    %464 = arith.cmpi sge, %462, %463 : vector<1x1x32xi32>
    %465 = arith.extui %464 : vector<1x1x32xi1> to vector<1x1x32xi32>
    %466 = arith.sitofp %465 : vector<1x1x32xi32> to vector<1x1x32xf32>
    %c8_i32 = arith.constant 8 : i32
    %467 = vector.broadcast %c8_i32 : i32 to vector<1x1x32xi32>
    %468 = arith.cmpi slt, %462, %467 : vector<1x1x32xi32>
    %469 = arith.extui %468 : vector<1x1x32xi1> to vector<1x1x32xi32>
    %470 = arith.sitofp %469 : vector<1x1x32xi32> to vector<1x1x32xf32>
    %471 = arith.mulf %466, %470 : vector<1x1x32xf32>
    %c8_i32_98 = arith.constant 8 : i32
    %472 = vector.broadcast %c8_i32_98 : i32 to vector<1x1x32xi32>
    %473 = arith.cmpi sge, %462, %472 : vector<1x1x32xi32>
    %474 = arith.extui %473 : vector<1x1x32xi1> to vector<1x1x32xi32>
    %475 = arith.sitofp %474 : vector<1x1x32xi32> to vector<1x1x32xf32>
    %c16_i32_99 = arith.constant 16 : i32
    %476 = vector.broadcast %c16_i32_99 : i32 to vector<1x1x32xi32>
    %477 = arith.cmpi slt, %462, %476 : vector<1x1x32xi32>
    %478 = arith.extui %477 : vector<1x1x32xi1> to vector<1x1x32xi32>
    %479 = arith.sitofp %478 : vector<1x1x32xi32> to vector<1x1x32xf32>
    %480 = arith.mulf %475, %479 : vector<1x1x32xf32>
    %c16_i32_100 = arith.constant 16 : i32
    %481 = vector.broadcast %c16_i32_100 : i32 to vector<1x1x32xi32>
    %482 = arith.cmpi sge, %462, %481 : vector<1x1x32xi32>
    %483 = arith.extui %482 : vector<1x1x32xi1> to vector<1x1x32xi32>
    %484 = arith.sitofp %483 : vector<1x1x32xi32> to vector<1x1x32xf32>
    %c24_i32 = arith.constant 24 : i32
    %485 = vector.broadcast %c24_i32 : i32 to vector<1x1x32xi32>
    %486 = arith.cmpi slt, %462, %485 : vector<1x1x32xi32>
    %487 = arith.extui %486 : vector<1x1x32xi1> to vector<1x1x32xi32>
    %488 = arith.sitofp %487 : vector<1x1x32xi32> to vector<1x1x32xf32>
    %489 = arith.mulf %484, %488 : vector<1x1x32xf32>
    %c24_i32_101 = arith.constant 24 : i32
    %490 = vector.broadcast %c24_i32_101 : i32 to vector<1x1x32xi32>
    %491 = arith.cmpi sge, %462, %490 : vector<1x1x32xi32>
    %492 = arith.extui %491 : vector<1x1x32xi1> to vector<1x1x32xi32>
    %493 = arith.sitofp %492 : vector<1x1x32xi32> to vector<1x1x32xf32>
    %c32_i32 = arith.constant 32 : i32
    %494 = vector.broadcast %c32_i32 : i32 to vector<1x1x32xi32>
    %495 = arith.cmpi slt, %462, %494 : vector<1x1x32xi32>
    %496 = arith.extui %495 : vector<1x1x32xi1> to vector<1x1x32xi32>
    %497 = arith.sitofp %496 : vector<1x1x32xi32> to vector<1x1x32xf32>
    %498 = arith.mulf %493, %497 : vector<1x1x32xf32>
    %499 = vector.broadcast %471 : vector<1x1x32xf32> to vector<2x8x32xf32>
    %500 = arith.mulf %455, %499 : vector<2x8x32xf32>
    %501 = vector.broadcast %480 : vector<1x1x32xf32> to vector<2x8x32xf32>
    %502 = arith.mulf %455, %501 : vector<2x8x32xf32>
    %503 = vector.broadcast %489 : vector<1x1x32xf32> to vector<2x8x32xf32>
    %504 = arith.mulf %455, %503 : vector<2x8x32xf32>
    %505 = vector.broadcast %498 : vector<1x1x32xf32> to vector<2x8x32xf32>
    %506 = arith.mulf %455, %505 : vector<2x8x32xf32>
    %507 = tpu.concatenate %500, %502, %504, %506 in 0 : vector<2x8x32xf32>, vector<2x8x32xf32>, vector<2x8x32xf32>, vector<2x8x32xf32> -> vector<8x8x32xf32>
    %508 = tpu.concatenate %458, %458, %458, %458 in 0 : vector<2x8x32xf32>, vector<2x8x32xf32>, vector<2x8x32xf32>, vector<2x8x32xf32> -> vector<8x8x32xf32>
    %509 = tpu.concatenate %461, %461, %461, %461 in 0 : vector<2x8x32xf32>, vector<2x8x32xf32>, vector<2x8x32xf32>, vector<2x8x32xf32> -> vector<8x8x32xf32>
    "tpu.trace_start"() <{level = 10 : i32, message = "xtd,xsd->xts"}> : () -> ()
    %cst_102 = arith.constant dense<0.000000e+00> : vector<8x8x8xf32>
    %510 = tpu.matmul %507, %508, %cst_102 {dimension_numbers = #tpu.dot_dimension_numbers<[2], [2], [1], [1], [0, 0, 0, 1, 1, 1], [0], [0]>} : vector<8x8x32xf32>, vector<8x8x32xf32>, vector<8x8x8xf32> -> vector<8x8x8xf32>
    "tpu.trace_stop"() : () -> ()
    %cst_103 = arith.constant 0.353553385 : f32
    %511 = vector.broadcast %cst_103 : f32 to vector<8x8x8xf32>
    %512 = arith.mulf %510, %511 : vector<8x8x8xf32>
    %cst_104 = arith.constant dense<0xFF800000> : vector<8x8xf32>
    %513 = vector.multi_reduction <maximumf>, %512, %cst_104 [2] : vector<8x8x8xf32> to vector<8x8xf32>
    %514 = vector.shape_cast %513 : vector<8x8xf32> to vector<8x8x1xf32>
    %515 = vector.broadcast %514 : vector<8x8x1xf32> to vector<8x8x8xf32>
    %516 = arith.subf %512, %515 : vector<8x8x8xf32>
    %517 = math.exp %516 : vector<8x8x8xf32>
    %cst_105 = arith.constant dense<0.000000e+00> : vector<8x8xf32>
    %518 = vector.multi_reduction <add>, %517, %cst_105 [2] : vector<8x8x8xf32> to vector<8x8xf32>
    %519 = vector.shape_cast %518 : vector<8x8xf32> to vector<8x8x1xf32>
    %520 = tpu.reciprocal %519 {approx = true} : vector<8x8x1xf32> -> vector<8x8x1xf32>
    %521 = vector.broadcast %520 : vector<8x8x1xf32> to vector<8x8x8xf32>
    %522 = arith.mulf %517, %521 : vector<8x8x8xf32>
    "tpu.trace_start"() <{level = 10 : i32, message = "xts,xsd->xtd"}> : () -> ()
    %cst_106 = arith.constant dense<0.000000e+00> : vector<8x8x32xf32>
    %523 = tpu.matmul %522, %509, %cst_106 {dimension_numbers = #tpu.dot_dimension_numbers<[2], [1], [1], [2], [0, 0, 0, 1, 1, 2], [0], [0]>} : vector<8x8x8xf32>, vector<8x8x32xf32>, vector<8x8x32xf32> -> vector<8x8x32xf32>
    "tpu.trace_stop"() : () -> ()
    %524 = vector.extract_strided_slice %523 {offsets = [0, 0, 0], sizes = [2, 8, 32], strides = [1, 1, 1]} : vector<8x8x32xf32> to vector<2x8x32xf32>
    %525 = vector.broadcast %471 : vector<1x1x32xf32> to vector<2x8x32xf32>
    %526 = arith.mulf %525, %524 : vector<2x8x32xf32>
    %527 = vector.extract_strided_slice %523 {offsets = [2, 0, 0], sizes = [2, 8, 32], strides = [1, 1, 1]} : vector<8x8x32xf32> to vector<2x8x32xf32>
    %528 = vector.broadcast %480 : vector<1x1x32xf32> to vector<2x8x32xf32>
    %529 = arith.mulf %528, %527 : vector<2x8x32xf32>
    %530 = arith.addf %526, %529 : vector<2x8x32xf32>
    %531 = vector.extract_strided_slice %523 {offsets = [4, 0, 0], sizes = [2, 8, 32], strides = [1, 1, 1]} : vector<8x8x32xf32> to vector<2x8x32xf32>
    %532 = vector.broadcast %489 : vector<1x1x32xf32> to vector<2x8x32xf32>
    %533 = arith.mulf %532, %531 : vector<2x8x32xf32>
    %534 = arith.addf %530, %533 : vector<2x8x32xf32>
    %535 = vector.extract_strided_slice %523 {offsets = [6, 0, 0], sizes = [2, 8, 32], strides = [1, 1, 1]} : vector<8x8x32xf32> to vector<2x8x32xf32>
    %536 = vector.broadcast %498 : vector<1x1x32xf32> to vector<2x8x32xf32>
    %537 = arith.mulf %536, %535 : vector<2x8x32xf32>
    %538 = arith.addf %534, %537 : vector<2x8x32xf32>
    %c0_107 = arith.constant 0 : index
    %c0_108 = arith.constant 0 : index
    %539 = vector.load %arg12[%c0_107, %c0_108] : memref<32x16xf32, #tpu.memory_space<vmem>>, vector<32x16xf32>
    "tpu.trace_start"() <{level = 10 : i32, message = "bth,hn->btn"}> : () -> ()
    %cst_109 = arith.constant dense<0.000000e+00> : vector<2x8x16xf32>
    %540 = tpu.matmul %538, %539, %cst_109 {dimension_numbers = #tpu.dot_dimension_numbers<[2], [0], [0, 1], [1], [0, 0, 0, 1, 1, 1], [], []>} : vector<2x8x32xf32>, vector<32x16xf32>, vector<2x8x16xf32> -> vector<2x8x16xf32>
    "tpu.trace_stop"() : () -> ()
    %c0_110 = arith.constant 0 : index
    %c0_111 = arith.constant 0 : index
    %541 = vector.load %arg13[%c0_110, %c0_111] : memref<1x16xf32, #tpu.memory_space<vmem>>, vector<1x16xf32>
    %542 = vector.shape_cast %541 : vector<1x16xf32> to vector<1x1x16xf32>
    %543 = vector.broadcast %542 : vector<1x1x16xf32> to vector<2x8x16xf32>
    %544 = arith.addf %540, %543 : vector<2x8x16xf32>
    %cst_112 = arith.constant 1.000000e+00 : f32
    %545 = vector.broadcast %cst_112 : f32 to vector<2x8xf32>
    %546 = arith.subf %545, %0 : vector<2x8xf32>
    %547 = vector.shape_cast %546 : vector<2x8xf32> to vector<2x8x1xf32>
    %cst_113 = arith.constant -1.000000e+32 : f32
    %548 = vector.broadcast %cst_113 : f32 to vector<2x8x1xf32>
    %549 = arith.mulf %547, %548 : vector<2x8x1xf32>
    %550 = vector.broadcast %549 : vector<2x8x1xf32> to vector<2x8x16xf32>
    %551 = arith.addf %544, %550 : vector<2x8x16xf32>
    %cst_114 = arith.constant dense<0xFF800000> : vector<2x8xf32>
    %552 = vector.multi_reduction <maximumf>, %551, %cst_114 [2] : vector<2x8x16xf32> to vector<2x8xf32>
    %553 = vector.shape_cast %552 : vector<2x8xf32> to vector<2x8x1xf32>
    %554 = vector.broadcast %553 : vector<2x8x1xf32> to vector<2x8x16xf32>
    %555 = arith.subf %551, %554 : vector<2x8x16xf32>
    %556 = math.exp %555 : vector<2x8x16xf32>
    %cst_115 = arith.constant dense<0.000000e+00> : vector<2x8xf32>
    %557 = vector.multi_reduction <add>, %556, %cst_115 [2] : vector<2x8x16xf32> to vector<2x8xf32>
    %558 = vector.shape_cast %557 : vector<2x8xf32> to vector<2x8x1xf32>
    %559 = vector.broadcast %558 : vector<2x8x1xf32> to vector<2x8x16xf32>
    %560 = arith.divf %556, %559 : vector<2x8x16xf32>
    %561 = vector.extract_strided_slice %560 {offsets = [0, 0, 0], sizes = [2, 1, 16], strides = [1, 1, 1]} : vector<2x8x16xf32> to vector<2x1x16xf32>
    %562 = vector.shape_cast %561 : vector<2x1x16xf32> to vector<2x16xf32>
    %563 = vector.extract_strided_slice %560 {offsets = [0, 1, 0], sizes = [2, 1, 16], strides = [1, 1, 1]} : vector<2x8x16xf32> to vector<2x1x16xf32>
    %564 = vector.shape_cast %563 : vector<2x1x16xf32> to vector<2x16xf32>
    %565 = vector.extract_strided_slice %560 {offsets = [0, 2, 0], sizes = [2, 1, 16], strides = [1, 1, 1]} : vector<2x8x16xf32> to vector<2x1x16xf32>
    %566 = vector.shape_cast %565 : vector<2x1x16xf32> to vector<2x16xf32>
    %567 = vector.extract_strided_slice %560 {offsets = [0, 3, 0], sizes = [2, 1, 16], strides = [1, 1, 1]} : vector<2x8x16xf32> to vector<2x1x16xf32>
    %568 = vector.shape_cast %567 : vector<2x1x16xf32> to vector<2x16xf32>
    %569 = vector.extract_strided_slice %560 {offsets = [0, 4, 0], sizes = [2, 1, 16], strides = [1, 1, 1]} : vector<2x8x16xf32> to vector<2x1x16xf32>
    %570 = vector.shape_cast %569 : vector<2x1x16xf32> to vector<2x16xf32>
    %571 = vector.extract_strided_slice %560 {offsets = [0, 5, 0], sizes = [2, 1, 16], strides = [1, 1, 1]} : vector<2x8x16xf32> to vector<2x1x16xf32>
    %572 = vector.shape_cast %571 : vector<2x1x16xf32> to vector<2x16xf32>
    %573 = vector.extract_strided_slice %560 {offsets = [0, 6, 0], sizes = [2, 1, 16], strides = [1, 1, 1]} : vector<2x8x16xf32> to vector<2x1x16xf32>
    %574 = vector.shape_cast %573 : vector<2x1x16xf32> to vector<2x16xf32>
    %575 = vector.extract_strided_slice %560 {offsets = [0, 7, 0], sizes = [2, 1, 16], strides = [1, 1, 1]} : vector<2x8x16xf32> to vector<2x1x16xf32>
    %576 = vector.shape_cast %575 : vector<2x1x16xf32> to vector<2x16xf32>
    %577 = tpu.concatenate %562, %564, %566, %568, %570, %572, %574, %576 in 1 : vector<2x16xf32>, vector<2x16xf32>, vector<2x16xf32>, vector<2x16xf32>, vector<2x16xf32>, vector<2x16xf32>, vector<2x16xf32>, vector<2x16xf32> -> vector<2x128xf32>
    %c0_116 = arith.constant 0 : index
    %c0_117 = arith.constant 0 : index
    %578 = vector.load %arg14[%c0_116, %c0_117] : memref<2x128xf32, #tpu.memory_space<vmem>>, vector<2x128xf32>
    tpu.vector_store %arg14[%c0_116, %c0_117], %577 {strides = array<i32>} : memref<2x128xf32, #tpu.memory_space<vmem>>, vector<2x128xf32>,
    %579 = vector.shape_cast %553 : vector<2x8x1xf32> to vector<2x8xf32>
    %580 = vector.shape_cast %558 : vector<2x8x1xf32> to vector<2x8xf32>
    %581 = math.log %580 : vector<2x8xf32>
    %582 = arith.addf %579, %581 : vector<2x8xf32>
    %c0_118 = arith.constant 0 : index
    %c0_119 = arith.constant 0 : index
    %583 = vector.load %arg2[%c0_118, %c0_119] : memref<2x8xi32, #tpu.memory_space<vmem>>, vector<2x8xi32>
    %584 = tpu.iota {dimensions = array<i32: 2>} : vector<2x8x16xi32>
    %585 = vector.shape_cast %583 : vector<2x8xi32> to vector<2x8x1xi32>
    %586 = vector.broadcast %585 : vector<2x8x1xi32> to vector<2x8x16xi32>
    %587 = arith.cmpi eq, %586, %584 : vector<2x8x16xi32>
    %588 = arith.extui %587 : vector<2x8x16xi1> to vector<2x8x16xi32>
    %589 = arith.sitofp %588 : vector<2x8x16xi32> to vector<2x8x16xf32>
    %590 = arith.mulf %551, %589 : vector<2x8x16xf32>
    %cst_120 = arith.constant dense<0.000000e+00> : vector<2x8xf32>
    %591 = vector.multi_reduction <add>, %590, %cst_120 [2] : vector<2x8x16xf32> to vector<2x8xf32>
    %592 = arith.subf %582, %591 : vector<2x8xf32>
    %c0_i32_121 = arith.constant 0 : i32
    %593 = vector.broadcast %c0_i32_121 : i32 to vector<2x8xi32>
    %594 = arith.cmpi ne, %583, %593 : vector<2x8xi32>
    %595 = arith.extui %594 : vector<2x8xi1> to vector<2x8xi32>
    %596 = arith.sitofp %595 : vector<2x8xi32> to vector<2x8xf32>
    %597 = arith.mulf %592, %596 : vector<2x8xf32>
    %598 = vector.shape_cast %597 : vector<2x8xf32> to vector<1x2x8xf32>
    %cst_122 = arith.constant dense<0.000000e+00> : vector<1xf32>
    %599 = vector.multi_reduction <add>, %598, %cst_122 [1, 2] : vector<1x2x8xf32> to vector<1xf32>
    %600 = vector.shape_cast %599 : vector<1xf32> to vector<1x1x1xf32>
    %601 = vector.extract %600[0, 0, 0] : f32 from vector<1x1x1xf32>
    %602 = vector.shape_cast %596 : vector<2x8xf32> to vector<1x2x8xf32>
    %cst_123 = arith.constant dense<0.000000e+00> : vector<1xf32>
    %603 = vector.multi_reduction <add>, %602, %cst_123 [1, 2] : vector<1x2x8xf32> to vector<1xf32>
    %604 = vector.shape_cast %603 : vector<1xf32> to vector<1x1x1xf32>
    %605 = vector.extract %604[0, 0, 0] : f32 from vector<1x1x1xf32>
    %606 = arith.divf %601, %605 : f32
    %c0_124 = arith.constant 0 : index
    %c0_125 = arith.constant 0 : index
    %607 = memref.load %arg15[%c0_124, %c0_125] : memref<1x1xf32, #tpu.memory_space<smem>>
    memref.store %606, %arg15[%c0_124, %c0_125] : memref<1x1xf32, #tpu.memory_space<smem>>
    return
  }
}

</mosaic_0001>

<bundles_post_ra>
// kernel: slu_forward.1
= control target key start
LH: loop header
LB: loop body
LE: loop exit
PB: predicated region body
PF: predicated region fallthrough
CT: control target
= control target key end

     0   :  { %21 = vsyncpa [#allocation4], 0  ;;  %s5096_s0 = inlined_call_operand.vmem [shape: s32[2,8], index: 0, kind: input, shape index: {}]   ;;  %s5097_s1 = inlined_call_operand.vmem [shape: f32[2,8], index: 1, kind: input, shape index: {}]   ;;  %s5098_s2 = inlined_call_operand.vmem [shape: s32[2,8], index: 2, kind: input, shape index: {}]   ;;  %s5099_s3 = inlined_call_operand.vmem [shape: f32[64,32], index: 3, kind: input, shape index: {}]   ;;  %s5100_s4 = inlined_call_operand.vmem [shape: f32[32,128], index: 4, kind: input, shape index: {}]   ;;  %s5101_s5 = inlined_call_operand.hbm [shape: f32[1,128], index: 5, kind: input, shape index: {}]   ;;  %s5102_s6 = inlined_call_operand.vmem [shape: f32[32,128], index: 6, kind: input, shape index: {}]   ;;  %s5103_s7 = inlined_call_operand.hbm [shape: f32[1,32], index: 7, kind: input, shape index: {}]   ;;  %s5104_s8 = inlined_call_operand.hbm [shape: f32[1,32], index: 8, kind: input, shape index: {}]   ;;  %s5105_s9 = inlined_call_operand.vmem [shape: f32[32,32], index: 9, kind: input, shape index: {}]   ;;  %s5106_s10 = inlined_call_operand.vmem [shape: f32[32,32], index: 10, kind: input, shape index: {}]   ;;  %s5107_s11 = inlined_call_operand.hbm [shape: f32[32,32], index: 11, kind: input, shape index: {}]   ;;  %s5108_s12 = inlined_call_operand.vmem [shape: f32[32,16], index: 12, kind: input, shape index: {}]   ;;  %s5109_s13 = inlined_call_operand.hbm [shape: f32[1,16], index: 13, kind: input, shape index: {}]   ;;  %s5110_s14 = inlined_call_operand.vmem [shape: f32[2,128], index: 14, kind: output, shape index: {0}]   ;;  %s5111_s15 = inlined_call_operand.hbm [shape: f32[1,1], index: 15, kind: output, shape index: {1}]  }
   0x1   :  { %22 = vsyncpa [#allocation7], 0 }
   0x2   :  { %23 = vsyncpa [#allocation10], 0 }
   0x3   :  { %24 = vsyncpa [#allocation5], 0  ;;  %s4334_s18 = smov [#allocation6]   ;;  %s4335_s20 = smov [#allocation9]  }
   0x4   :  { %s53_s19 = sshll.u32 %s4334_s18, 4  ;;  %s76_s21 = sshll.u32 %s4335_s20, 4  ;;  %s54_s19 = int_to_ptr.vmem [resolvable:$true] %s53_s19  ;;  %s4441_s21 = int_to_ptr.vmem [resolvable:$true] %s76_s21 }
   0x5   :  { %s4206_s24 = scalar_lea.hbm %s5103_s7, 16 }
   0x6   :  { %p4207_p0 = scmp.ne.s32.totalorder %s5103_s7, %s4206_s24  ;;  %p4210_p1 = scmp.lt.u32.totalorder %s4206_s24, %s5103_s7 }
   0x8   :  { %p4212_p2 = pnand %p4210_p1, %p4207_p0 }
   0xa   :  { %4215 = shalt.err (!%p4212_p2)
}
   0xb   :  { %s4216_s29 = scalar_lea.vmem %s54_s19, 16  ;;  %s4220_s30 = scalar_lea.vmem %s54_s19, 32 }
   0xc   :  { %p4217_p3 = scmp.ne.s32.totalorder %s54_s19, %s4216_s29  ;;  %p4221_p4 = scmp.lt.s32.totalorder %s54_s19, %s54_s19 }
   0xd   :  { %p4222_p5 = scmp.lt.s32.totalorder %s4220_s30, %s4216_s29 }
   0xf   :  { %p4223_p6 = por %p4222_p5, %p4221_p4 }
  0x11   :  { %p4224_p7 = pnand %p4223_p6, %p4217_p3 }
  0x13   :  { %4227 = shalt.err (!%p4224_p7)
}
  0x14   :  { %56 = dma.hbm_to_vmem [thread:$0]  %s5103_s7, 16, %s54_s19, [#allocation7]  }
  0x15   :  { %s4228_s22 = scalar_lea.hbm %s5107_s11, 512 }
  0x16   :  { %p4229_p8 = scmp.ne.s32.totalorder %s5107_s11, %s4228_s22  ;;  %p4232_p9 = scmp.lt.u32.totalorder %s4228_s22, %s5107_s11 }
  0x18   :  { %p4234_p10 = pnand %p4232_p9, %p4229_p8 }
  0x1a   :  { %4237 = shalt.err (!%p4234_p10)
}
  0x1b   :  { %s4238_s27 = scalar_lea.vmem %s4441_s21, 512  ;;  %p4243_p12 = scmp.lt.s32.totalorder %s4441_s21, %s4441_s21 }
  0x1c   :  { %p4239_p11 = scmp.ne.s32.totalorder %s4441_s21, %s4238_s27  ;;  %p4244_p13 = scmp.lt.s32.totalorder %s4238_s27, %s4238_s27 }
  0x1e   :  { %p4245_p0 = por %p4244_p13, %p4243_p12 }
  0x20   :  { %p4246_p1 = pnand %p4245_p0, %p4239_p11 }
  0x22   :  { %4249 = shalt.err (!%p4246_p1)
}
  0x23   :  { %s4336_s7 = smov 128   ;;  %s4337_s19 = smov 8  }
  0x24   :  { %82 = dma.hbm_to_vmem [thread:$0]  %s5107_s11, 512, %s4441_s21, [#allocation10], %s4336_s7, %s4336_s7, %s4337_s19  }
  0x25   :  { %s4338_s30 = smov [#allocation3]   ;;  %s4339_s17 = smov [#allocation8]  }
  0x26   :  { %s41_s16 = sshll.u32 %s4338_s30, 4  ;;  %s63_s18 = sshll.u32 %s4339_s17, 4  ;;  %s42_s16 = int_to_ptr.vmem [resolvable:$true] %s41_s16  ;;  %s64_s18 = int_to_ptr.vmem [resolvable:$true] %s63_s18 }
  0x27   :  { %s4250_s23 = scalar_lea.hbm %s5101_s5, 16 }
  0x28   :  { %p4251_p2 = scmp.ne.s32.totalorder %s5101_s5, %s4250_s23  ;;  %p4254_p3 = scmp.lt.u32.totalorder %s4250_s23, %s5101_s5 }
  0x2a   :  { %p4256_p4 = pnand %p4254_p3, %p4251_p2 }
  0x2c   :  { %4259 = shalt.err (!%p4256_p4)
}
  0x2d   :  { %s4260_s11 = scalar_lea.vmem %s42_s16, 16  ;;  %s4264_s21 = scalar_lea.vmem %s42_s16, 32 }
  0x2e   :  { %p4261_p5 = scmp.ne.s32.totalorder %s42_s16, %s4260_s11  ;;  %p4265_p6 = scmp.lt.s32.totalorder %s42_s16, %s42_s16 }
  0x2f   :  { %p4266_p7 = scmp.lt.s32.totalorder %s4264_s21, %s4260_s11 }
  0x31   :  { %p4267_p8 = por %p4266_p7, %p4265_p6 }
  0x33   :  { %p4268_p9 = pnand %p4267_p8, %p4261_p5 }
  0x35   :  { %4271 = shalt.err (!%p4268_p9)
}
  0x36   :  { %44 = dma.hbm_to_vmem [thread:$0]  %s5101_s5, 16, %s42_s16, [#allocation4]  }
  0x37   :  { %s4272_s30 = scalar_lea.hbm %s5104_s8, 16 }
  0x38   :  { %p4273_p10 = scmp.ne.s32.totalorder %s5104_s8, %s4272_s30  ;;  %p4276_p11 = scmp.lt.u32.totalorder %s4272_s30, %s5104_s8 }
  0x3a   :  { %p4278_p12 = pnand %p4276_p11, %p4273_p10 }
  0x3c   :  { %4281 = shalt.err (!%p4278_p12)
}
  0x3d   :  { %s4282_s24 = scalar_lea.vmem %s64_s18, 16  ;;  %s4286_s25 = scalar_lea.vmem %s64_s18, 32 }
  0x3e   :  { %p4283_p13 = scmp.ne.s32.totalorder %s64_s18, %s4282_s24  ;;  %p4287_p0 = scmp.lt.s32.totalorder %s64_s18, %s64_s18 }
  0x3f   :  { %p4288_p1 = scmp.lt.s32.totalorder %s4286_s25, %s4282_s24 }
  0x41   :  { %p4289_p2 = por %p4288_p1, %p4287_p0 }
  0x43   :  { %p4290_p3 = pnand %p4289_p2, %p4283_p13 }
  0x45   :  { %4293 = shalt.err (!%p4290_p3)
}
  0x46   :  { %66 = dma.hbm_to_vmem [thread:$0]  %s5104_s8, 16, %s64_s18, [#allocation7]  }
  0x47   :  { %s4340_s26 = smov [#allocation11]   ;;  %s4294_s7 = scalar_lea.hbm %s5109_s13, 16 }
  0x48   :  { %s91_s27 = sshll.u32 %s4340_s26, 4  ;;  %p4295_p4 = scmp.ne.s32.totalorder %s5109_s13, %s4294_s7  ;;  %s92_s27 = int_to_ptr.vmem [resolvable:$true] %s91_s27 }
  0x49   :  { %p4298_p5 = scmp.lt.u32.totalorder %s4294_s7, %s5109_s13 }
  0x4b   :  { %p4300_p6 = pnand %p4298_p5, %p4295_p4 }
  0x4d   :  { %4303 = shalt.err (!%p4300_p6)
}
  0x4e   :  { %s4304_s17 = scalar_lea.vmem %s92_s27, 16  ;;  %s4308_s8 = scalar_lea.vmem %s92_s27, 32 }
  0x4f   :  { %p4305_p7 = scmp.ne.s32.totalorder %s92_s27, %s4304_s17  ;;  %p4309_p8 = scmp.lt.s32.totalorder %s92_s27, %s92_s27 }
  0x50   :  { %p4310_p9 = scmp.lt.s32.totalorder %s4308_s8, %s4304_s17 }
  0x52   :  { %p4311_p10 = por %p4310_p9, %p4309_p8 }
  0x54   :  { %p4312_p11 = pnand %p4311_p10, %p4305_p7 }
  0x56   :  { %4315 = shalt.err (!%p4312_p11)
}
  0x57   :  { %94 = dma.hbm_to_vmem [thread:$0]  %s5109_s13, 16, %s92_s27, [#allocation10]  }
  0x58   :  { %4326 = dma.done.wait [#allocation4], 16  }
  0x59   :  { %4327 = vsyncadd [#allocation4], 4294967280 }
  0x5a   :  { %4328 = dma.done.wait [#allocation7], 32  }
  0x5b   :  { %4329 = vsyncadd [#allocation7], 4294967264 }
  0x5c   :  { %4330 = dma.done.wait [#allocation10], 528  }
  0x5d   :  { %4331 = vsyncadd [#allocation10], 4294966768  ;;  %v112_v0 = vlaneseq  ;;  %v111_v4 = vld [vmem:[%s5096_s0] sm:$0x3]  ;;  %v135_v6 = vld [vmem:[%s5099_s3 + $0x8] sm:$0xff]  ;;  %vm142_vm0 = vcmask 523264  }
  0x5e   :  { %v134_v5 = vld [vmem:[%s5099_s3] sm:$0xff]  ;;  %v136_v9 = vld [vmem:[%s5099_s3 + $0x10] sm:$0xff]  ;;  %v137_v10 = vld [vmem:[%s5099_s3 + $0x18] sm:$0xff]  ;;  %v4341_v27 = vmov 0.0   ;;  %v4342_v34 = vmov 0.0|0.0   ;;  %vm4343_vm3 = vmmov 0  }
  0x5f   :  { %v4508_v1 = vshrl.u32 %v112_v0, 7  ;;  %v3944_v8 = vpack.c.bf16 %v135_v6, %v134_v5  ;;  %v3948_v11 = vpack.c.bf16 %v137_v10, %v136_v9  ;;  %v138_v12 = vld [vmem:[%s5099_s3 + $0x20] sm:$0xff]  ;;  %v139_v13 = vld [vmem:[%s5099_s3 + $0x28] sm:$0xff]  ;;  %v226_v17 = vld [vmem:[%s5100_s4 + $0x10] sm:$0xff]  ;;  %v4557_v25 = vand.u32 127, %v112_v0  ;;  %s4345_s21 = smov 96  }
  0x60   :  { %v224_v15 = vld [vmem:[%s5100_s4] sm:$0xff]  ;;  %v225_v16 = vld [vmem:[%s5100_s4 + $0x8] sm:$0xff]  ;;  %v227_v19 = vld [vmem:[%s5100_s4 + $0x18] sm:$0xff]  ;;  %v3952_v20 = vpack.c.bf16 %v139_v13, %v138_v12  ;;  %s4346_s7 = smov 64   ;;  %vm235_vm5 = vcmask 261120   ;;  %vm332_vm6 = vcmask 785408  }
  0x61   :  { %v4511_v2 = vsub.s32 0, %v4508_v1  ;;  %v4514_v3 = vsub.s32 1, %v4508_v1  ;;  %3945 = vmatprep.subr.bf16.mxu0 %v3944_v8  ;;  %v3960_v18 = vpack.c.bf16 %v225_v16, %v224_v15  ;;  %v3964_v21 = vpack.c.bf16 %v227_v19, %v226_v17  ;;  %v140_v22 = vld [vmem:[%s5099_s3 + $0x30] sm:$0xff]  ;;  %v141_v23 = vld [vmem:[%s5099_s3 + $0x38] sm:$0xff]  ;;  %v450_v31 = vld [vmem:[%s5102_s6] sm:$0xff]  ;;  %s4357_s8 = smov 112  }
  0x62   :  { %3947 = vmatpush3.bf16.msra.mxu0 %v3944_v8  ;;  %v3956_v24 = vpack.c.bf16 %v141_v23, %v140_v22  ;;  %v451_v32 = vld [vmem:[%s5102_s6 + $0x8] sm:$0xff]  ;;  %v452_v35 = vld [vmem:[%s5102_s6 + $0x10] sm:$0xff]  ;;  %v453_v36 = vld [vmem:[%s5102_s6 + $0x18] sm:$0xff]  ;;  %vm317_vm4 = vcmp.lt.s32.totalorder %v4557_v25, 16  ;;  %s4344_s6 = smov 32   ;;  %vm337_vm7 = vcmask 1041409  }
  0x63   :  { %v117_v7 = vrot.slane %v111_v4, %v4511_v2  ;;  %v124_v14 = vrot.slane %v111_v4, %v4514_v3  ;;  %3949 = vmatprep.subr.bf16.mxu0 %v3948_v11  ;;  %3961 = vmatprep.subr.bf16.mxu1 %v3960_v18  ;;  %v4571_v33 = vpack.c.bf16 %v451_v32, %v450_v31  ;;  %v4591_v38 = vsel %vm317_vm4, 1.0, %v4341_v27  ;;  %v3527_v46 = vld [vmem:[#allocation3] ss:$0 sm:$0xff]  ;;  %s4359_s18 = smov 48   ;;  %s4316_s3 = scalar_lea.hbm %s5111_s15, 16 }
  0x64   :  { %3963 = vmatpush3.bf16.msra.mxu1 %v3960_v18  ;;  %v4583_v37 = vpack.c.bf16 %v453_v36, %v452_v35  ;;  %321 = vrot.lane.b32.xlu1 %v4591_v38, %s4344_s6  ;;  %vm1375_vm8 = vcmask 130048   ;;  %vm1402_vm9 = vcmask 253952   ;;  %vm1898_vm10 = vcmp.ge.s32.totalorder %v4557_v25, 8  ;;  %p4317_p12 = scmp.ne.s32.totalorder %s5111_s15, %s4316_s3  ;;  %p4320_p13 = scmp.lt.u32.totalorder %s4316_s3, %s5111_s15 }
  0x65   :  { %119 = vbcast.lane.b32.xlu0 %v117_v7, 256  ;;  %3965 = vmatprep.subr.bf16.mxu1 %v3964_v21  ;;  %vm1894_vm11 = vcmp.lt.s32.totalorder %v4557_v25, 8  ;;  %vm1902_vm12 = vcmp.ge.s32.totalorder %v4557_v25, 16  ;;  %vm1905_vm13 = vcmp.lt.s32.totalorder %v4557_v25, 24  ;;  %vm1909_vm14 = vcmp.ge.s32.totalorder %v4557_v25, 24 }
  0x66   :  { %3951 = vmatpush3.bf16.msra.mxu0 %v3948_v11  ;;  %vm1912_vm15 = vcmp.lt.s32.totalorder %v4557_v25, 32  ;;  %p4322_p0 = pnand %p4320_p13, %p4317_p12 }
  0x67   :  { %3953 = vmatprep.subr.bf16.mxu0 %v3952_v20 }
  0x68   :  { %3967 = vmatpush3.bf16.msra.mxu1 %v3964_v21  ;;  %324 = vrot.lane.b32.xlu1 %v4591_v38, %s4346_s7 }
  0x69   :  { %126 = vbcast.lane.b32.xlu0 %v124_v14, 256  ;;  %3968 = vmatprep.subr.bf16.mxu1 %v4342_v34 }
  0x6a   :  { %3955 = vmatpush3.bf16.msra.mxu0 %v3952_v20 }
  0x6b   :  { %3957 = vmatprep.subr.bf16.mxu0 %v3956_v24 }
  0x6d   :  { %327 = vrot.lane.b32.xlu0 %v4591_v38, %s4345_s21 }
  0x6e   :  { %3959 = vmatpush3.bf16.msra.mxu0 %v3956_v24 }
  0x6f   :  { %3974 = vmatprep.subr.bf16.mxu0 %v4342_v34 }
  0xd6   :  { %v322_v41 = vpop.permute.xlu1 %321 }
  0xd7   :  { %v120_v26 = vpop.permute.xlu0 %119  ;;  %v330_v42 = vsel %vm235_vm5, %v4591_v38, %v322_v41  ;;  %v4347_v41 = vmov 0  }
  0xd8   :  { %vm128_vm1 = vcmp.eq.s32.totalorder %v120_v26, %v4557_v25  ;;  %4081 = vset.pattern.permute.xlu0 %v4347_v41 }
  0xd9   :  { %v3523_v28 = vsel %vm128_vm1, 1.0, %v4341_v27  ;;  %vm2522_vm1 = vcmask 64512  }
  0xda   :  { %3718 = vmatprep.mubr.msk.f32.mxu0 %vm142_vm0, %v3523_v28  ;;  %v325_v43 = vpop.permute.xlu1 %324 }
  0xdb   :  { %v127_v29 = vpop.permute.xlu0 %126  ;;  %v331_v44 = vsel %vm142_vm0, %v330_v42, %v325_v43 }
  0xdc   :  { %vm129_vm2 = vcmp.eq.s32.totalorder %v127_v29, %v4557_v25 }
  0xdd   :  { %v3524_v30 = vsel %vm129_vm2, 1.0, %v4341_v27 }
  0xde   :  { %3719 = vmatmul.mubr.msk.f32.vlgmr.msra.gmra.mrb[0].mxu0 %vm142_vm0, %v3524_v30 }
  0xdf   :  { %3976 = vmatpush3.bf16.msra.mxu0 %v4571_v33  ;;  %3751 = vmatprep.mubr.msk.f32.mxu0 %vm4343_vm3, %v4341_v27  ;;  %v328_v45 = vpop.permute.xlu0 %327 }
  0xe0   :  { %3977 = vmatprep.subr.bf16.mxu0 %v4342_v34  ;;  %v333_v47 = vsel %vm332_vm6, %v331_v44, %v328_v45 }
  0xe1   :  { %v341_v51 = vsub.f32 1.0, %v333_v47 }
  0xe3   :  { %3979 = vmatpush3.bf16.msra.mxu0 %v4583_v37 }
  0xe4   :  { %3986 = vmatprep.subr.bf16.mxu0 %v4342_v34 }
 0x1b1   :  { %v3720_v39 = vpop.f32.mrb[0].mxu0 }
 0x1b2   :  { %v215_v40 = vpop.f32.mrb[1].mxu0 }
 0x1b3   :  { %3729 = vmatprep.mubr.msk.f32.mxu1 %vm235_vm5, %v215_v40 }
 0x1b4   :  { %3730 = vmatmul.mubr.msk.f32.vlgmr.msra.gmra.mrb[0].mxu1 %vm235_vm5, %v3720_v39 }
 0x1b5   :  { %3970 = vmatpush3.bf16.msra.mxu1 %v4571_v33  ;;  %3740 = vmatprep.mubr.msk.f32.mxu1 %vm4343_vm3, %v4341_v27 }
 0x1b6   :  { %3971 = vmatprep.subr.bf16.mxu1 %v4342_v34 }
 0x1b9   :  { %3973 = vmatpush3.bf16.msra.mxu1 %v4583_v37 }
 0x1ba   :  { %3980 = vmatprep.subr.bf16.mxu1 %v4342_v34 }
 0x1bc   :  { %3741 = vmatmul.mubr.f32.vlgmr.msra.gmra.mrb[2].mxu1 %v4341_v27 }
 0x1bd   :  { %3982 = vmatpush3.bf16.msra.mxu1 %v4571_v33  ;;  %3762 = vmatprep.mubr.msk.f32.mxu1 %vm4343_vm3, %v4341_v27 }
 0x1be   :  { %3983 = vmatprep.subr.bf16.mxu1 %v4342_v34 }
 0x1c1   :  { %3985 = vmatpush3.bf16.msra.mxu1 %v4583_v37 }
 0x1c2   :  { %3992 = vmatprep.subr.bf16.mxu1 %v4342_v34 }
 0x287   :  { %v3731_v48 = vpop.f32.mrb[0].mxu1 }
 0x288   :  { %v314_v49 = vadd.f32 %v3731_v48, %v3527_v46  ;;  %v308_v50 = vpop.f32.mrb[1].mxu1 }
 0x289   :  { %v309_v52 = vadd.f32 %v3527_v46, %v308_v50 }
 0x28a   :  { %v336_v53 = vrot.slane %v314_v49, 7  ;;  %v343_v54 = vrot.slane %v314_v49, 6  ;;  %v366_v55 = vrot.slane %v314_v49, 5  ;;  %v383_v56 = vrot.slane %v314_v49, 1 }
 0x28b   :  { %v342_v57 = vrot.slane %v309_v52, 7  ;;  %v361_v58 = vrot.slane %v309_v52, 1  ;;  %v365_v59 = vrot.slane %v309_v52, 6  ;;  %v382_v60 = vrot.slane %v309_v52, 2 }
 0x28c   :  { %v338_v61 = vsel %vm337_vm7, %v336_v53, %v309_v52  ;;  %v387_v62 = vrot.slane %v309_v52, 5  ;;  %v388_v63 = vrot.slane %v314_v49, 4  ;;  %v404_v0 = vrot.slane %v309_v52, 3 }
 0x28d   :  { %v340_v4 = vmul.f32 %v338_v61, %v333_v47  ;;  %v344_v5 = vsel %vm337_vm7, %v343_v54, %v342_v57  ;;  %v362_v6 = vsel %vm337_vm7, %v314_v49, %v361_v58  ;;  %v367_v7 = vsel %vm337_vm7, %v366_v55, %v365_v59 }
 0x28e   :  { %v346_v8 = vmul.f32 %v344_v5, %v341_v51  ;;  %v364_v9 = vmul.f32 %v362_v6, %v333_v47  ;;  %v369_v10 = vmul.f32 %v367_v7, %v341_v51  ;;  %v384_v11 = vsel %vm337_vm7, %v383_v56, %v382_v60 }
 0x28f   :  { %v523_v12 = vpop.f32.mrb[2].mxu1  ;;  %v386_v13 = vmul.f32 %v384_v11, %v333_v47  ;;  %v389_v14 = vsel %vm337_vm7, %v388_v63, %v387_v62  ;;  %v405_v15 = vrot.slane %v314_v49, 2  ;;  %v409_v16 = vrot.slane %v309_v52, 4 }
 0x290   :  { %v347_v17 = vadd.f32 %v346_v8, %v340_v4  ;;  %v3742_v18 = vpop.f32.mrb[3].mxu1  ;;  %v4624_v19 = vadd.f32 %v369_v10, %v364_v9  ;;  %v391_v20 = vmul.f32 %v389_v14, %v341_v51  ;;  %v410_v21 = vrot.slane %v314_v49, 3 }
 0x291   :  { %v406_v22 = vsel %vm337_vm7, %v405_v15, %v404_v0  ;;  %v432_v23 = vmul.f32 %v389_v14, %v333_v47  ;;  %v433_v24 = vmul.f32 %v384_v11, %v341_v51  ;;  %v438_v26 = vmul.f32 %v367_v7, %v333_v47 }
 0x292   :  { %v527_v28 = vadd.f32 %v523_v12, %v347_v17  ;;  %v4627_v29 = vadd.f32 %v391_v20, %v386_v13  ;;  %v408_v30 = vmul.f32 %v406_v22, %v333_v47  ;;  %v411_v31 = vsel %vm337_vm7, %v410_v21, %v409_v16 }
 0x293   :  { %v413_v32 = vmul.f32 %v411_v31, %v341_v51  ;;  %v426_v35 = vmul.f32 %v411_v31, %v333_v47  ;;  %v427_v36 = vmul.f32 %v406_v22, %v341_v51  ;;  %v4630_v39 = vadd.f32 %v433_v24, %v432_v23 }
 0x294   :  { %4091 = vtanh.f32 %v527_v28  ;;  %v439_v40 = vmul.f32 %v362_v6, %v341_v51  ;;  %v444_v44 = vmul.f32 %v344_v5, %v333_v47  ;;  %v445_v45 = vmul.f32 %v341_v51, %v338_v61  ;;  %v4646_v47 = vld [vmem:[%s5097_s1] sm:$0x3] }
 0x295   :  { %v4633_v42 = vadd.f32 %v413_v32, %v408_v30  ;;  %v4635_v43 = vadd.f32 %v427_v36, %v426_v35  ;;  %v3531_v50 = vmul.f32 -1.442695, %v527_v28  ;;  %v4348_v51 = vmov 7  }
 0x296   :  { %v4637_v46 = vadd.f32 %v439_v40, %v438_v26  ;;  %v4639_v48 = vadd.f32 %v445_v45, %v444_v44  ;;  %4082 = vset.pattern.permute.xlu1 %v4348_v51  ;;  %v4654_v63 = vsub.f32 1.0, %v4591_v38  ;;  %v4349_v30 = vmov 1  }
 0x297   :  { %4093 = vpow2.f32 %v3531_v50  ;;  %v4350_v31 = vmov 6  }
 0x29e   :  { %v4092_v49 = vpop.eup %4091 }
 0x29f   :  { %537 = vrot.lane.b32.xlu1 %v4092_v49, %s4346_s7 }
 0x2a1   :  { %v4094_v52 = vpop.eup %4093 }
 0x2a2   :  { %v531_v53 = vadd.f32 1.0, %v4094_v52 }
 0x2a4   :  { %4095 = vrcp.f32 %v531_v53 }
 0x2ae   :  { %v4096_v54 = vpop.eup %4095 }
 0x2af   :  { %v535_v57 = vmul.f32 0.0, %v4096_v54 }
 0x311   :  { %v538_v55 = vpop.permute.xlu1 %537 }
 0x312   :  { %v540_v56 = vmul.f32 %v4096_v54, %v538_v55 }
 0x314   :  { %542 = vrot.lane.b32.xlu0 %v540_v56, %s4344_s6 }
 0x318   :  { %350 = vperm.xlu0 %4081, %v4646_v47  }
 0x31c   :  { %4084 = vset.pattern.permute.xlu0 %v4350_v31 }
 0x386   :  { %v543_v58 = vpop.permute.xlu0 %542 }
 0x387   :  { %v545_v59 = vadd.f32 %v543_v58, %v535_v57 }
 0x389   :  { %4097 = vtanh.f32 %v545_v59  ;;  %561 = vrot.lane.b32.xlu0 %v545_v59, %s4345_s21 }
 0x393   :  { %v4098_v60 = vpop.eup %4097 }
 0x394   :  { %548 = vrot.lane.b32.xlu1 %v4098_v60, %s4346_s7 }
 0x397   :  { %v4656_v0 = vpop.permute.xlu0 %350 }
 0x398   :  { %356 = vperm.xlu1 %4082, %v4646_v47   ;;  %v353_v4 = vmul.f32 %v4591_v38, %v4656_v0 }
 0x39c   :  { %4083 = vset.pattern.permute.xlu1 %v4349_v30 }
 0x3fb   :  { %v562_v9 = vpop.permute.xlu0 %561 }
 0x406   :  { %v549_v61 = vpop.permute.xlu1 %548 }
 0x407   :  { %v551_v62 = vmul.f32 %v4096_v54, %v549_v61 }
 0x409   :  { %553 = vrot.lane.b32.xlu1 %v551_v62, %s4344_s6 }
 0x417   :  { %v4660_v5 = vpop.permute.xlu1 %356 }
 0x418   :  { %v359_v6 = vmul.f32 %v4660_v5, %v4654_v63 }
 0x41a   :  { %v360_v7 = vadd.f32 %v359_v6, %v353_v4 }
 0x41c   :  { %v557_v8 = vsub.f32 1.0, %v360_v7  ;;  %v564_v11 = vmul.f32 %v562_v9, %v360_v7 }
 0x41e   :  { %v558_v10 = vmul.f32 0.0, %v557_v8  ;;  %v4351_v8 = vmov 2  }
 0x420   :  { %v565_v12 = vadd.f32 %v564_v11, %v558_v10 }
 0x422   :  { %648 = vrot.lane.b32.xlu0 %v565_v12, %s4344_s6 }
 0x47b   :  { %v554_v13 = vpop.permute.xlu1 %553 }
 0x47c   :  { %v4665_v14 = vmul.f32 %v554_v13, %v360_v7 }
 0x47e   :  { %v559_v15 = vadd.f32 %v558_v10, %v4665_v14 }
 0x480   :  { %3752 = vmatmul.mubr.msk.f32.vlgmr.msra.gmra.mrb[2].mxu0 %vm235_vm5, %v559_v15 }
 0x481   :  { %3988 = vmatpush3.bf16.msra.mxu0 %v4571_v33  ;;  %3773 = vmatprep.mubr.msk.f32.mxu0 %vm4343_vm3, %v4341_v27 }
 0x482   :  { %3989 = vmatprep.subr.bf16.mxu0 %v4342_v34 }
 0x485   :  { %3991 = vmatpush3.bf16.msra.mxu0 %v4583_v37 }
 0x486   :  { %3998 = vmatprep.subr.bf16.mxu0 %v4342_v34 }
 0x553   :  { %v635_v16 = vpop.f32.mrb[2].mxu0 }
 0x554   :  { %v639_v17 = vadd.f32 %v635_v16, %v4624_v19  ;;  %v3753_v18 = vpop.f32.mrb[3].mxu0  ;;  %v649_v19 = vpop.permute.xlu0 %648 }
 0x556   :  { %4099 = vtanh.f32 %v639_v17  ;;  %v3533_v21 = vmul.f32 -1.442695, %v639_v17  ;;  %v4352_v17 = vmov 5  }
 0x558   :  { %4101 = vpow2.f32 %v3533_v21 }
 0x560   :  { %v4100_v20 = vpop.eup %4099 }
 0x561   :  { %653 = vrot.lane.b32.xlu1 %v4100_v20, %s4346_s7 }
 0x562   :  { %v4102_v22 = vpop.eup %4101 }
 0x563   :  { %v643_v23 = vadd.f32 1.0, %v4102_v22 }
 0x565   :  { %4103 = vrcp.f32 %v643_v23 }
 0x56f   :  { %v4104_v24 = vpop.eup %4103 }
 0x570   :  { %v651_v32 = vmul.f32 %v4104_v24, %v649_v19 }
 0x5d3   :  { %v654_v26 = vpop.permute.xlu1 %653 }
 0x5d4   :  { %v656_v28 = vmul.f32 %v4104_v24, %v654_v26 }
 0x5d6   :  { %658 = vrot.lane.b32.xlu1 %v656_v28, %s4344_s6 }
 0x5da   :  { %372 = vperm.xlu1 %4083, %v4646_v47  }
 0x5de   :  { %4086 = vset.pattern.permute.xlu1 %v4352_v17 }
 0x648   :  { %v659_v35 = vpop.permute.xlu1 %658 }
 0x649   :  { %v661_v36 = vadd.f32 %v659_v35, %v651_v32 }
 0x64b   :  { %4105 = vtanh.f32 %v661_v36 }
 0x655   :  { %v4106_v40 = vpop.eup %4105 }
 0x656   :  { %664 = vrot.lane.b32.xlu0 %v4106_v40, %s4346_s7 }
 0x659   :  { %v4683_v49 = vpop.permute.xlu1 %372 }
 0x65a   :  { %377 = vperm.xlu0 %4084, %v4646_v47   ;;  %v375_v52 = vmul.f32 %v4591_v38, %v4683_v49 }
 0x65e   :  { %4085 = vset.pattern.permute.xlu0 %v4351_v8  ;;  %v4354_v8 = vmov 3  }
 0x6c8   :  { %v665_v44 = vpop.permute.xlu0 %664 }
 0x6c9   :  { %v667_v45 = vmul.f32 %v4104_v24, %v665_v44 }
 0x6cb   :  { %669 = vrot.lane.b32.xlu1 %v667_v45, %s4344_s6 }
 0x6cf   :  { %677 = vrot.lane.b32.xlu1 %v661_v36, %s4345_s21 }
 0x6d9   :  { %v4685_v50 = vpop.permute.xlu0 %377 }
 0x6da   :  { %v380_v53 = vmul.f32 %v4685_v50, %v4654_v63 }
 0x6dc   :  { %v381_v54 = vadd.f32 %v380_v53, %v375_v52 }
 0x6de   :  { %v673_v55 = vsub.f32 1.0, %v381_v54 }
 0x6e0   :  { %v674_v57 = vmul.f32 %v673_v55, %v559_v15  ;;  %v681_v61 = vmul.f32 %v673_v55, %v565_v12 }
 0x73d   :  { %v670_v56 = vpop.permute.xlu1 %669 }
 0x73e   :  { %v4691_v51 = vmul.f32 %v670_v56, %v381_v54 }
 0x740   :  { %v675_v58 = vadd.f32 %v674_v57, %v4691_v51 }
 0x741   :  { %v678_v59 = vpop.permute.xlu1 %677 }
 0x742   :  { %v680_v60 = vmul.f32 %v678_v59, %v381_v54  ;;  %3763 = vmatmul.mubr.msk.f32.vlgmr.msra.gmra.mrb[4].mxu1 %vm235_vm5, %v675_v58 }
 0x743   :  { %3994 = vmatpush3.bf16.msra.mxu1 %v4571_v33  ;;  %3784 = vmatprep.mubr.msk.f32.mxu1 %vm4343_vm3, %v4341_v27 }
 0x744   :  { %v682_v62 = vadd.f32 %v681_v61, %v680_v60  ;;  %3995 = vmatprep.subr.bf16.mxu1 %v4342_v34 }
 0x746   :  { %765 = vrot.lane.b32.xlu1 %v682_v62, %s4344_s6 }
 0x747   :  { %3997 = vmatpush3.bf16.msra.mxu1 %v4583_v37 }
 0x748   :  { %4004 = vmatprep.subr.bf16.mxu1 %v4342_v34 }
 0x815   :  { %v752_v4 = vpop.f32.mrb[4].mxu1 }
 0x816   :  { %v756_v6 = vadd.f32 %v752_v4, %v4627_v29  ;;  %v3764_v7 = vpop.f32.mrb[5].mxu1  ;;  %v766_v29 = vpop.permute.xlu1 %765 }
 0x817   :  { %v4353_v7 = vmov 4  }
 0x818   :  { %4107 = vtanh.f32 %v756_v6  ;;  %v3535_v10 = vmul.f32 -1.442695, %v756_v6 }
 0x81a   :  { %4109 = vpow2.f32 %v3535_v10 }
 0x822   :  { %v4108_v9 = vpop.eup %4107 }
 0x823   :  { %770 = vrot.lane.b32.xlu0 %v4108_v9, %s4346_s7 }
 0x824   :  { %v4110_v11 = vpop.eup %4109 }
 0x825   :  { %v760_v12 = vadd.f32 1.0, %v4110_v11 }
 0x827   :  { %4111 = vrcp.f32 %v760_v12 }
 0x831   :  { %v4112_v13 = vpop.eup %4111 }
 0x832   :  { %v768_v18 = vmul.f32 %v4112_v13, %v766_v29 }
 0x895   :  { %v771_v15 = vpop.permute.xlu0 %770 }
 0x896   :  { %v773_v16 = vmul.f32 %v4112_v13, %v771_v15 }
 0x898   :  { %775 = vrot.lane.b32.xlu0 %v773_v16, %s4344_s6 }
 0x89c   :  { %394 = vperm.xlu0 %4085, %v4646_v47  }
 0x8a0   :  { %4088 = vset.pattern.permute.xlu0 %v4353_v7 }
 0x90a   :  { %v776_v20 = vpop.permute.xlu0 %775 }
 0x90b   :  { %v778_v21 = vadd.f32 %v776_v20, %v768_v18 }
 0x90d   :  { %4113 = vtanh.f32 %v778_v21  ;;  %794 = vrot.lane.b32.xlu0 %v778_v21, %s4345_s21 }
 0x917   :  { %v4114_v22 = vpop.eup %4113 }
 0x918   :  { %781 = vrot.lane.b32.xlu1 %v4114_v22, %s4346_s7 }
 0x91b   :  { %v4710_v26 = vpop.permute.xlu0 %394 }
 0x91c   :  { %399 = vperm.xlu1 %4086, %v4646_v47   ;;  %v397_v28 = vmul.f32 %v4591_v38, %v4710_v26 }
 0x920   :  { %4087 = vset.pattern.permute.xlu1 %v4354_v8 }
 0x97f   :  { %v795_v35 = vpop.permute.xlu0 %794 }
 0x98a   :  { %v782_v23 = vpop.permute.xlu1 %781 }
 0x98b   :  { %v784_v24 = vmul.f32 %v4112_v13, %v782_v23 }
 0x98d   :  { %786 = vrot.lane.b32.xlu1 %v784_v24, %s4344_s6 }
 0x99b   :  { %v4714_v30 = vpop.permute.xlu1 %399 }
 0x99c   :  { %v402_v31 = vmul.f32 %v4714_v30, %v4654_v63 }
 0x99e   :  { %v403_v19 = vadd.f32 %v402_v31, %v397_v28 }
 0x9a0   :  { %v790_v32 = vsub.f32 1.0, %v403_v19  ;;  %v797_v36 = vmul.f32 %v795_v35, %v403_v19 }
 0x9a2   :  { %v798_v40 = vmul.f32 %v790_v32, %v682_v62  ;;  %v791_v52 = vmul.f32 %v790_v32, %v675_v58 }
 0x9a4   :  { %v799_v44 = vadd.f32 %v798_v40, %v797_v36 }
 0x9a6   :  { %882 = vrot.lane.b32.xlu0 %v799_v44, %s4344_s6 }
 0x9ff   :  { %v787_v45 = vpop.permute.xlu1 %786 }
 0xa00   :  { %v4719_v53 = vmul.f32 %v787_v45, %v403_v19 }
 0xa02   :  { %v792_v54 = vadd.f32 %v791_v52, %v4719_v53 }
 0xa04   :  { %3774 = vmatmul.mubr.msk.f32.vlgmr.msra.gmra.mrb[4].mxu0 %vm235_vm5, %v792_v54 }
 0xa05   :  { %4000 = vmatpush3.bf16.msra.mxu0 %v4571_v33  ;;  %3795 = vmatprep.mubr.msk.f32.mxu0 %vm4343_vm3, %v4341_v27 }
 0xa06   :  { %4001 = vmatprep.subr.bf16.mxu0 %v4342_v34 }
 0xa09   :  { %4003 = vmatpush3.bf16.msra.mxu0 %v4583_v37 }
 0xa0a   :  { %4010 = vmatprep.subr.bf16.mxu0 %v4342_v34 }
 0xad7   :  { %v869_v55 = vpop.f32.mrb[4].mxu0 }
 0xad8   :  { %v873_v56 = vadd.f32 %v869_v55, %v4633_v42  ;;  %v3775_v57 = vpop.f32.mrb[5].mxu0  ;;  %v883_v42 = vpop.permute.xlu0 %882 }
 0xada   :  { %4115 = vtanh.f32 %v873_v56  ;;  %v3537_v59 = vmul.f32 -1.442695, %v873_v56 }
 0xadc   :  { %4117 = vpow2.f32 %v3537_v59 }
 0xae4   :  { %v4116_v58 = vpop.eup %4115 }
 0xae5   :  { %887 = vrot.lane.b32.xlu1 %v4116_v58, %s4346_s7 }
 0xae6   :  { %v4118_v60 = vpop.eup %4117 }
 0xae7   :  { %v877_v61 = vadd.f32 1.0, %v4118_v60 }
 0xae9   :  { %4119 = vrcp.f32 %v877_v61 }
 0xaf3   :  { %v4120_v62 = vpop.eup %4119 }
 0xaf4   :  { %v885_v9 = vmul.f32 %v4120_v62, %v883_v42 }
 0xb57   :  { %v888_v4 = vpop.permute.xlu1 %887 }
 0xb58   :  { %v890_v6 = vmul.f32 %v4120_v62, %v888_v4 }
 0xb5a   :  { %892 = vrot.lane.b32.xlu1 %v890_v6, %s4344_s6 }
 0xb5e   :  { %416 = vperm.xlu1 %4087, %v4646_v47  }
 0xb62   :  { %4089 = vset.pattern.permute.xlu1 %v4347_v41 }
 0xbcc   :  { %v893_v10 = vpop.permute.xlu1 %892 }
 0xbcd   :  { %v895_v11 = vadd.f32 %v893_v10, %v885_v9 }
 0xbcf   :  { %4121 = vtanh.f32 %v895_v11 }
 0xbd9   :  { %v4122_v12 = vpop.eup %4121 }
 0xbda   :  { %898 = vrot.lane.b32.xlu0 %v4122_v12, %s4346_s7 }
 0xbdd   :  { %v417_v16 = vpop.permute.xlu1 %416 }
 0xbde   :  { %421 = vperm.xlu0 %4088, %v4646_v47   ;;  %v419_v29 = vmul.f32 %v4591_v38, %v417_v16  ;;  %v430_v21 = vmul.f32 %v417_v16, %v4654_v63 }
 0xbe2   :  { %4090 = vset.pattern.permute.xlu0 %v4347_v41 }
 0xc4c   :  { %v899_v13 = vpop.permute.xlu0 %898 }
 0xc4d   :  { %v901_v15 = vmul.f32 %v4120_v62, %v899_v13  ;;  %v4355_v13 = vmov 1966171168  }
 0xc4f   :  { %903 = vrot.lane.b32.xlu1 %v901_v15, %s4344_s6  ;;  %v1379_v15 = vunpack.c.l.s4 %v4355_v13 }
 0xc51   :  { %v1380_v16 = vunpack.c.0.s8 %v1379_v15 }
 0xc53   :  { %911 = vrot.lane.b32.xlu1 %v895_v11, %s4345_s21 }
 0xc5d   :  { %v422_v17 = vpop.permute.xlu0 %421 }
 0xc5e   :  { %v424_v18 = vmul.f32 %v422_v17, %v4654_v63  ;;  %v429_v22 = vmul.f32 %v4591_v38, %v422_v17  ;;  %v4758_v17 = vsub.s32 %v1380_v16, %v4508_v1 }
 0xc60   :  { %v425_v20 = vadd.f32 %v424_v18, %v419_v29  ;;  %v431_v23 = vadd.f32 %v430_v21, %v429_v22 }
 0xc62   :  { %v907_v47 = vsub.f32 1.0, %v425_v20  ;;  %v1024_v19 = vsub.f32 1.0, %v431_v23 }
 0xc64   :  { %v908_v28 = vmul.f32 %v907_v47, %v792_v54  ;;  %v915_v36 = vmul.f32 %v907_v47, %v799_v44 }
 0xcc1   :  { %v904_v41 = vpop.permute.xlu1 %903 }
 0xcc2   :  { %v906_v24 = vmul.f32 %v904_v41, %v425_v20 }
 0xcc4   :  { %v909_v31 = vadd.f32 %v908_v28, %v906_v24 }
 0xcc5   :  { %v912_v32 = vpop.permute.xlu1 %911 }
 0xcc6   :  { %v914_v35 = vmul.f32 %v912_v32, %v425_v20  ;;  %3785 = vmatmul.mubr.msk.f32.vlgmr.msra.gmra.mrb[6].mxu1 %vm235_vm5, %v909_v31  ;;  %v1025_v40 = vmul.f32 %v1024_v19, %v909_v31 }
 0xcc7   :  { %4006 = vmatpush3.bf16.msra.mxu1 %v4571_v33  ;;  %3806 = vmatprep.mubr.msk.f32.mxu1 %vm4343_vm3, %v4341_v27 }
 0xcc8   :  { %v916_v45 = vadd.f32 %v915_v36, %v914_v35  ;;  %4007 = vmatprep.subr.bf16.mxu1 %v4342_v34 }
 0xcca   :  { %999 = vrot.lane.b32.xlu1 %v916_v45, %s4344_s6  ;;  %v1032_v10 = vmul.f32 %v1024_v19, %v916_v45 }
 0xccb   :  { %4009 = vmatpush3.bf16.msra.mxu1 %v4583_v37 }
 0xd3c   :  { %v1000_v62 = vpop.permute.xlu1 %999 }
 0xd99   :  { %v986_v52 = vpop.f32.mrb[6].mxu1 }
 0xd9a   :  { %v990_v54 = vadd.f32 %v986_v52, %v4635_v43  ;;  %v3786_v55 = vpop.f32.mrb[7].mxu1 }
 0xd9c   :  { %4123 = vtanh.f32 %v990_v54  ;;  %v3539_v56 = vmul.f32 -1.442695, %v990_v54 }
 0xd9e   :  { %4125 = vpow2.f32 %v3539_v56 }
 0xda6   :  { %v4124_v44 = vpop.eup %4123 }
 0xda7   :  { %1004 = vrot.lane.b32.xlu0 %v4124_v44, %s4346_s7 }
 0xda8   :  { %v4126_v57 = vpop.eup %4125 }
 0xda9   :  { %v994_v58 = vadd.f32 1.0, %v4126_v57 }
 0xdab   :  { %4127 = vrcp.f32 %v994_v58 }
 0xdb5   :  { %v4128_v59 = vpop.eup %4127 }
 0xdb6   :  { %v1002_v4 = vmul.f32 %v4128_v59, %v1000_v62 }
 0xe19   :  { %v1005_v60 = vpop.permute.xlu0 %1004 }
 0xe1a   :  { %v1007_v61 = vmul.f32 %v4128_v59, %v1005_v60  ;;  %v435_v60 = vmul.f32 %v4591_v38, %v4714_v30 }
 0xe1c   :  { %1009 = vrot.lane.b32.xlu0 %v1007_v61, %s4344_s6 }
 0xe8e   :  { %v1010_v6 = vpop.permute.xlu0 %1009 }
 0xe8f   :  { %v1012_v7 = vadd.f32 %v1010_v6, %v1002_v4 }
 0xe91   :  { %4129 = vtanh.f32 %v1012_v7 }
 0xe9b   :  { %v4130_v43 = vpop.eup %4129 }
 0xe9c   :  { %1015 = vrot.lane.b32.xlu1 %v4130_v43, %s4346_s7 }
 0xea0   :  { %1028 = vrot.lane.b32.xlu1 %v1012_v7, %s4345_s21 }
 0xf0e   :  { %v1016_v8 = vpop.permute.xlu1 %1015 }
 0xf0f   :  { %v1018_v42 = vmul.f32 %v4128_v59, %v1016_v8  ;;  %v436_v59 = vmul.f32 %v4710_v26, %v4654_v63 }
 0xf11   :  { %1020 = vrot.lane.b32.xlu0 %v1018_v42, %s4344_s6  ;;  %v437_v61 = vadd.f32 %v436_v59, %v435_v60 }
 0xf12   :  { %v1029_v9 = vpop.permute.xlu1 %1028 }
 0xf13   :  { %v1031_v11 = vmul.f32 %v1029_v9, %v431_v23  ;;  %v1141_v6 = vsub.f32 1.0, %v437_v61 }
 0xf15   :  { %v1033_v12 = vadd.f32 %v1032_v10, %v1031_v11 }
 0xf17   :  { %1116 = vrot.lane.b32.xlu1 %v1033_v12, %s4344_s6  ;;  %v1149_v8 = vmul.f32 %v1141_v6, %v1033_v12 }
 0xf83   :  { %v1021_v29 = vpop.permute.xlu0 %1020 }
 0xf84   :  { %v1023_v18 = vmul.f32 %v1021_v29, %v431_v23 }
 0xf86   :  { %v1026_v20 = vadd.f32 %v1025_v40, %v1023_v18  ;;  %v1461_v21 = vsel %vm1375_vm8, %v906_v24, %v1023_v18  ;;  %v1489_v22 = vsel %vm1375_vm8, %v1023_v18, %v906_v24 }
 0xf87   :  { %v1469_v47 = vrot.slane %v1461_v21, %v4758_v17  ;;  %v1497_v41 = vrot.slane %v1489_v22, %v4758_v17 }
 0xf88   :  { %3796 = vmatmul.mubr.msk.f32.vlgmr.msra.gmra.mrb[6].mxu0 %vm235_vm5, %v1026_v20  ;;  %v1142_v10 = vmul.f32 %v1141_v6, %v1026_v20 }
 0xf89   :  { %v1470_v28 = vcombine.high %v1469_v47, %v1469_v47  ;;  %v1477_v31 = vrot.slane %v1469_v47, %v4758_v17  ;;  %v1498_v19 = vcombine.high %v1497_v41, %v1497_v41  ;;  %v1505_v32 = vrot.slane %v1497_v41, %v4758_v17  ;;  %4012 = vmatpush3.bf16.msra.mxu0 %v4571_v33  ;;  %v1117_v56 = vpop.permute.xlu1 %1116 }
 0xf8a   :  { %4013 = vmatprep.subr.bf16.mxu0 %v4342_v34  ;;  %3817 = vmatprep.mubr.msk.f32.mxu0 %vm4343_vm3, %v4341_v27 }
 0xf8b   :  { %v1484_v23 = vrot.slane %v1470_v28, %v4758_v17  ;;  %1487 = vst.msk [vmem:[#allocation2 + $0x3] sm:$0x1] %vm1402_vm9, %v1477_v31  ;;  %v1512_v24 = vrot.slane %v1498_v19, %v4758_v17  ;;  %1515 = vst.msk [vmem:[#allocation2 + $0x4] sm:$0x1] %vm1402_vm9, %v1505_v32 }
 0xf8d   :  { %1488 = vst.msk [vmem:[#allocation2 + $0xb] sm:$0x1] %vm1402_vm9, %v1484_v23  ;;  %1516 = vst.msk [vmem:[#allocation2 + $0xc] sm:$0x1] %vm1402_vm9, %v1512_v24  ;;  %4015 = vmatpush3.bf16.msra.mxu0 %v4583_v37 }
0x105b   :  { %v1103_v33 = vpop.f32.mrb[6].mxu0 }
0x105c   :  { %v1107_v34 = vadd.f32 %v1103_v33, %v4630_v39  ;;  %v3797_v35 = vpop.f32.mrb[7].mxu0 }
0x105e   :  { %4131 = vtanh.f32 %v1107_v34  ;;  %v3541_v40 = vmul.f32 -1.442695, %v1107_v34 }
0x1060   :  { %4133 = vpow2.f32 %v3541_v40 }
0x1068   :  { %v4132_v36 = vpop.eup %4131 }
0x1069   :  { %1121 = vrot.lane.b32.xlu0 %v4132_v36, %s4346_s7 }
0x106a   :  { %v4134_v45 = vpop.eup %4133 }
0x106b   :  { %v1111_v52 = vadd.f32 1.0, %v4134_v45  ;;  %v442_v45 = vmul.f32 %v4683_v49, %v4654_v63 }
0x106d   :  { %4135 = vrcp.f32 %v1111_v52  ;;  %v441_v52 = vmul.f32 %v4591_v38, %v4685_v50 }
0x1077   :  { %v4136_v54 = vpop.eup %4135 }
0x1078   :  { %v1119_v37 = vmul.f32 %v4136_v54, %v1117_v56 }
0x10db   :  { %v1122_v55 = vpop.permute.xlu0 %1121 }
0x10dc   :  { %v1124_v44 = vmul.f32 %v4136_v54, %v1122_v55 }
0x10de   :  { %1126 = vrot.lane.b32.xlu0 %v1124_v44, %s4344_s6 }
0x1150   :  { %v1127_v57 = vpop.permute.xlu0 %1126 }
0x1151   :  { %v1129_v58 = vadd.f32 %v1127_v57, %v1119_v37 }
0x1153   :  { %4137 = vtanh.f32 %v1129_v58 }
0x115d   :  { %v4138_v39 = vpop.eup %4137 }
0x115e   :  { %1132 = vrot.lane.b32.xlu1 %v4138_v39, %s4346_s7 }
0x1162   :  { %1145 = vrot.lane.b32.xlu1 %v1129_v58, %s4345_s21 }
0x11d0   :  { %v1133_v62 = vpop.permute.xlu1 %1132 }
0x11d1   :  { %v1135_v4 = vmul.f32 %v4136_v54, %v1133_v62  ;;  %v443_v54 = vadd.f32 %v442_v45, %v441_v52 }
0x11d3   :  { %1137 = vrot.lane.b32.xlu0 %v1135_v4, %s4344_s6  ;;  %v1258_v56 = vsub.f32 1.0, %v443_v54 }
0x11d4   :  { %v1146_v7 = vpop.permute.xlu1 %1145 }
0x11d5   :  { %v1148_v43 = vmul.f32 %v1146_v7, %v437_v61 }
0x11d7   :  { %v1150_v42 = vadd.f32 %v1149_v8, %v1148_v43 }
0x11d9   :  { %1233 = vrot.lane.b32.xlu1 %v1150_v42, %s4344_s6  ;;  %v1266_v58 = vmul.f32 %v1258_v56, %v1150_v42 }
0x1245   :  { %v1138_v9 = vpop.permute.xlu0 %1137 }
0x1246   :  { %v1140_v11 = vmul.f32 %v1138_v9, %v437_v61 }
0x1248   :  { %v1143_v13 = vadd.f32 %v1142_v10, %v1140_v11  ;;  %v1433_v26 = vsel %vm1375_vm8, %v4719_v53, %v1140_v11  ;;  %v1517_v30 = vsel %vm1375_vm8, %v1140_v11, %v4719_v53 }
0x1249   :  { %v1441_v15 = vrot.slane %v1433_v26, %v4758_v17  ;;  %v1525_v16 = vrot.slane %v1517_v30, %v4758_v17 }
0x124a   :  { %3807 = vmatmul.mubr.msk.f32.vlgmr.msra.gmra.mrb[8].mxu1 %vm235_vm5, %v1143_v13  ;;  %v1259_v61 = vmul.f32 %v1258_v56, %v1143_v13 }
0x124b   :  { %v1442_v12 = vcombine.high %v1441_v15, %v1441_v15  ;;  %v1449_v29 = vrot.slane %v1441_v15, %v4758_v17  ;;  %v1526_v18 = vcombine.high %v1525_v16, %v1525_v16  ;;  %v1533_v20 = vrot.slane %v1525_v16, %v4758_v17  ;;  %v1234_v34 = vpop.permute.xlu1 %1233 }
0x124d   :  { %v1456_v21 = vrot.slane %v1442_v12, %v4758_v17  ;;  %1459 = vst.msk [vmem:[#allocation2 + $0x2] sm:$0x1] %vm1402_vm9, %v1449_v29  ;;  %v1540_v22 = vrot.slane %v1526_v18, %v4758_v17  ;;  %1543 = vst.msk [vmem:[#allocation2 + $0x5] sm:$0x1] %vm1402_vm9, %v1533_v20 }
0x124f   :  { %1460 = vst.msk [vmem:[#allocation2 + $0xa] sm:$0x1] %vm1402_vm9, %v1456_v21  ;;  %1544 = vst.msk [vmem:[#allocation2 + $0xd] sm:$0x1] %vm1402_vm9, %v1540_v22 }
0x131d   :  { %v1220_v53 = vpop.f32.mrb[8].mxu1 }
0x131e   :  { %v1224_v47 = vadd.f32 %v1220_v53, %v4637_v46  ;;  %v3808_v41 = vpop.f32.mrb[9].mxu1 }
0x1320   :  { %4139 = vtanh.f32 %v1224_v47  ;;  %v3543_v31 = vmul.f32 -1.442695, %v1224_v47 }
0x1322   :  { %4141 = vpow2.f32 %v3543_v31  ;;  %v447_v31 = vmul.f32 %v4591_v38, %v4660_v5 }
0x132a   :  { %v4140_v28 = vpop.eup %4139 }
0x132b   :  { %1238 = vrot.lane.b32.xlu0 %v4140_v28, %s4346_s7  ;;  %v448_v28 = vmul.f32 %v4654_v63, %v4656_v0 }
0x132c   :  { %v4142_v19 = vpop.eup %4141 }
0x132d   :  { %v1228_v32 = vadd.f32 1.0, %v4142_v19  ;;  %v449_v19 = vadd.f32 %v448_v28, %v447_v31  ;;  %v1815_v28 = vld [vmem:[#allocation9 + $0x18] sm:$0xff] }
0x132f   :  { %4143 = vrcp.f32 %v1228_v32 }
0x1339   :  { %v4144_v23 = vpop.eup %4143 }
0x133a   :  { %v1236_v35 = vmul.f32 %v4144_v23, %v1234_v34 }
0x139d   :  { %v1239_v24 = vpop.permute.xlu0 %1238 }
0x139e   :  { %v1241_v33 = vmul.f32 %v4144_v23, %v1239_v24 }
0x13a0   :  { %1243 = vrot.lane.b32.xlu0 %v1241_v33, %s4344_s6 }
0x1412   :  { %v1244_v36 = vpop.permute.xlu0 %1243 }
0x1413   :  { %v1246_v40 = vadd.f32 %v1244_v36, %v1236_v35 }
0x1415   :  { %4145 = vtanh.f32 %v1246_v40 }
0x141f   :  { %v4146_v46 = vpop.eup %4145 }
0x1420   :  { %1249 = vrot.lane.b32.xlu1 %v4146_v46, %s4346_s7 }
0x1424   :  { %1262 = vrot.lane.b32.xlu1 %v1246_v40, %s4345_s21 }
0x1492   :  { %v1250_v55 = vpop.permute.xlu1 %1249 }
0x1493   :  { %v1252_v44 = vmul.f32 %v4144_v23, %v1250_v55 }
0x1495   :  { %1254 = vrot.lane.b32.xlu0 %v1252_v44, %s4344_s6 }
0x1496   :  { %v1263_v37 = vpop.permute.xlu1 %1262 }
0x1497   :  { %v1265_v57 = vmul.f32 %v1263_v37, %v443_v54 }
0x1499   :  { %v1267_v39 = vadd.f32 %v1266_v58, %v1265_v57 }
0x149b   :  { %1350 = vrot.lane.b32.xlu1 %v1267_v39, %s4344_s6 }
0x1507   :  { %v1255_v59 = vpop.permute.xlu0 %1254 }
0x1508   :  { %v1257_v60 = vmul.f32 %v1255_v59, %v443_v54 }
0x150a   :  { %v1260_v62 = vadd.f32 %v1259_v61, %v1257_v60  ;;  %v1405_v49 = vsel %vm1375_vm8, %v4691_v51, %v1257_v60  ;;  %v1545_v50 = vsel %vm1375_vm8, %v1257_v60, %v4691_v51  ;;  %v1648_v61 = vld [vmem:[%s5105_s9] sm:$0xff] }
0x150b   :  { %v1413_v4 = vrot.slane %v1405_v49, %v4758_v17  ;;  %v1553_v6 = vrot.slane %v1545_v50, %v4758_v17  ;;  %v1733_v49 = vld [vmem:[%s5106_s10] sm:$0xff] }
0x150c   :  { %3818 = vmatmul.mubr.msk.f32.vlgmr.msra.gmra.mrb[8].mxu0 %vm235_vm5, %v1260_v62  ;;  %v1649_v62 = vld [vmem:[%s5105_s9 + $0x8] sm:$0xff] }
0x150d   :  { %v1414_v7 = vcombine.high %v1413_v4, %v1413_v4  ;;  %v1421_v43 = vrot.slane %v1413_v4, %v4758_v17  ;;  %v1554_v8 = vcombine.high %v1553_v6, %v1553_v6  ;;  %v1561_v42 = vrot.slane %v1553_v6, %v4758_v17  ;;  %v1351_v20 = vpop.permute.xlu1 %1350  ;;  %v1734_v4 = vld [vmem:[%s5106_s10 + $0x8] sm:$0xff]  ;;  %v1650_v6 = vld [vmem:[%s5105_s9 + $0x10] sm:$0xff] }
0x150e   :  { %v4016_v50 = vpack.c.bf16 %v1649_v62, %v1648_v61 }
0x150f   :  { %v1428_v9 = vrot.slane %v1414_v7, %v4758_v17  ;;  %1431 = vst.msk [vmem:[#allocation2 + $0x1] sm:$0x1] %vm1402_vm9, %v1421_v43  ;;  %v1568_v10 = vrot.slane %v1554_v8, %v4758_v17  ;;  %1571 = vst.msk [vmem:[#allocation2 + $0x6] sm:$0x1] %vm1402_vm9, %v1561_v42  ;;  %v1651_v7 = vld [vmem:[%s5105_s9 + $0x18] sm:$0xff]  ;;  %v4024_v43 = vpack.c.bf16 %v1734_v4, %v1733_v49  ;;  %v1735_v42 = vld [vmem:[%s5106_s10 + $0x10] sm:$0xff] }
0x1510   :  { %v4020_v8 = vpack.c.bf16 %v1651_v7, %v1650_v6  ;;  %4017 = vmatprep.subr.bf16.mxu1 %v4016_v50 }
0x1511   :  { %1432 = vst.msk [vmem:[#allocation2 + $0x9] sm:$0x1] %vm1402_vm9, %v1428_v9  ;;  %1572 = vst.msk [vmem:[#allocation2 + $0xe] sm:$0x1] %vm1402_vm9, %v1568_v10  ;;  %v1736_v9 = vld [vmem:[%s5106_s10 + $0x18] sm:$0xff]  ;;  %4019 = vmatpush3.bf16.msra.mxu1 %v4016_v50  ;;  %4025 = vmatprep.subr.bf16.mxu0 %v4024_v43 }
0x1512   :  { %v4028_v10 = vpack.c.bf16 %v1736_v9, %v1735_v42  ;;  %4027 = vmatpush3.bf16.msra.mxu0 %v4024_v43  ;;  %4021 = vmatprep.subr.bf16.mxu1 %v4020_v8 }
0x1514   :  { %4029 = vmatprep.subr.bf16.mxu0 %v4028_v10 }
0x1515   :  { %4023 = vmatpush3.bf16.msra.mxu1 %v4020_v8 }
0x1516   :  { %4031 = vmatpush3.bf16.msra.mxu0 %v4028_v10 }
0x1517   :  { %3863 = vmatprep.subr.mxu0 %v4341_v27 }
0x15df   :  { %v1337_v51 = vpop.f32.mrb[8].mxu0 }
0x15e0   :  { %v1341_v11 = vadd.f32 %v1337_v51, %v4639_v48  ;;  %v3819_v13 = vpop.f32.mrb[9].mxu0  ;;  %v1812_v51 = vld [vmem:[#allocation9] sm:$0xff] }
0x15e2   :  { %4147 = vtanh.f32 %v1341_v11  ;;  %v3545_v30 = vmul.f32 -1.442695, %v1341_v11  ;;  %v1813_v11 = vld [vmem:[#allocation9 + $0x8] sm:$0xff] }
0x15e3   :  { %v4032_v13 = vpack.c.bf16 %v1813_v11, %v1812_v51 }
0x15e4   :  { %4149 = vpow2.f32 %v3545_v30 }
0x15e5   :  { %4033 = vmatprep.subr.bf16.mxu1 %v4032_v13 }
0x15ec   :  { %v4148_v26 = vpop.eup %4147 }
0x15ed   :  { %1355 = vrot.lane.b32.xlu0 %v4148_v26, %s4346_s7 }
0x15ee   :  { %v4150_v15 = vpop.eup %4149 }
0x15ef   :  { %v1345_v16 = vadd.f32 1.0, %v4150_v15 }
0x15f1   :  { %4151 = vrcp.f32 %v1345_v16 }
0x15fb   :  { %v4152_v12 = vpop.eup %4151 }
0x15fc   :  { %v1353_v21 = vmul.f32 %v4152_v12, %v1351_v20  ;;  %v3546_v20 = vld [vmem:[#allocation6] ss:$0 sm:$0xff] }
0x165f   :  { %v1356_v29 = vpop.permute.xlu0 %1355 }
0x1660   :  { %v1358_v18 = vmul.f32 %v4152_v12, %v1356_v29 }
0x1662   :  { %1360 = vrot.lane.b32.xlu0 %v1358_v18, %s4344_s6 }
0x16d4   :  { %v1361_v22 = vpop.permute.xlu0 %1360 }
0x16d5   :  { %v1363_v53 = vadd.f32 %v1361_v22, %v1353_v21 }
0x16d7   :  { %4153 = vtanh.f32 %v1363_v53  ;;  %v3547_v53 = vld [vmem:[#allocation8] ss:$0 sm:$0xff] }
0x16e1   :  { %v4154_v48 = vpop.eup %4153 }
0x16e2   :  { %1366 = vrot.lane.b32.xlu1 %v4154_v48, %s4346_s7 }
0x1754   :  { %v1367_v47 = vpop.permute.xlu1 %1366 }
0x1755   :  { %v1369_v41 = vmul.f32 %v4152_v12, %v1367_v47 }
0x1757   :  { %1371 = vrot.lane.b32.xlu0 %v1369_v41, %s4344_s6  ;;  %v1814_v41 = vld [vmem:[#allocation9 + $0x10] sm:$0xff] }
0x17c9   :  { %v1372_v32 = vpop.permute.xlu0 %1371 }
0x17ca   :  { %v1374_v23 = vmul.f32 %v1372_v32, %v449_v19 }
0x17cc   :  { %v1376_v24 = vsel %vm1375_vm8, %v4665_v14, %v1374_v23  ;;  %v1573_v33 = vsel %vm1375_vm8, %v1374_v23, %v4665_v14  ;;  %v4036_v23 = vpack.c.bf16 %v1815_v28, %v1814_v41 }
0x17cd   :  { %v1384_v34 = vrot.slane %v1376_v24, %v4758_v17  ;;  %v1581_v35 = vrot.slane %v1573_v33, %v4758_v17  ;;  %v3555_v24 = vsel %vm1898_vm10, 1.0, %v4341_v27  ;;  %vm3393_vm10 = vcmask 654336  }
0x17ce   :  { %v4897_v33 = vmul.f32 %v3555_v24, %v4591_v38 }
0x17cf   :  { %v1385_v36 = vcombine.high %v1384_v34, %v1384_v34  ;;  %v1392_v40 = vrot.slane %v1384_v34, %v4758_v17  ;;  %v1582_v63 = vcombine.high %v1581_v35, %v1581_v35  ;;  %v1589_v0 = vrot.slane %v1581_v35, %v4758_v17 }
0x17d0   :  { %v4902_v34 = vsel %vm1894_vm11, 1.0, %v4341_v27  ;;  %vm3396_vm11 = vcmask 916480  }
0x17d1   :  { %v1399_v5 = vrot.slane %v1385_v36, %v4758_v17  ;;  %1403 = vst.msk [vmem:[#allocation2] sm:$0x1] %vm1402_vm9, %v1392_v40  ;;  %v1596_v46 = vrot.slane %v1582_v63, %v4758_v17  ;;  %1599 = vst.msk [vmem:[#allocation2 + $0x7] sm:$0x1] %vm1402_vm9, %v1589_v0  ;;  %v3556_v40 = vsel %vm1902_vm12, 1.0, %v4341_v27  ;;  %v3557_v63 = vsel %vm1905_vm13, 1.0, %v4341_v27 }
0x17d3   :  { %1404 = vst.msk [vmem:[#allocation2 + $0x8] sm:$0x1] %vm1402_vm9, %v1399_v5  ;;  %1600 = vst.msk [vmem:[#allocation2 + $0xf] sm:$0x1] %vm1402_vm9, %v1596_v46  ;;  %vm3476_vm9 = vcmask 58368  }
0x17d8   :  { %v1601_v14 = vld [vmem:[#allocation2] sm:$0xff] }
0x17d9   :  { %v1603_v45 = vsel %vm235_vm5, %v1601_v14, 0.0 }
0x17da   :  { %1604 = vadd.xlane.f32.xlu1 %v1603_v45  ;;  %v1602_v52 = vld [vmem:[#allocation2 + $0x8] sm:$0xff]  ;;  %v3558_v45 = vsel %vm1909_vm14, 1.0, %v4341_v27 }
0x17db   :  { %v1606_v54 = vsel %vm235_vm5, %v1602_v52, 0.0 }
0x17dc   :  { %1607 = vadd.xlane.f32.xlu0 %v1606_v54 }
0x1867   :  { %v1605_v55 = vpop.xlane.xlu1 %1604 }
0x1868   :  { %v1610_v44 = vmul.f32 0.03125, %v1605_v55 }
0x1869   :  { %v1608_v56 = vpop.xlane.xlu0 %1607 }
0x186a   :  { %v1612_v37 = vsub.f32 %v1601_v14, %v1610_v44  ;;  %v1611_v57 = vmul.f32 0.03125, %v1608_v56  ;;  %v4913_v14 = vmul.f32 %v3557_v63, %v3556_v40 }
0x186c   :  { %v1613_v17 = vsub.f32 %v1602_v52, %v1611_v57  ;;  %v1614_v58 = vmul.f32 %v1612_v37, %v1612_v37  ;;  %v3559_v52 = vsel %vm1912_vm15, 1.0, %v4341_v27 }
0x186d   :  { %v4925_v55 = vmul.f32 %v3559_v52, %v3558_v45 }
0x186e   :  { %v1616_v39 = vsel %vm235_vm5, %v1614_v58, 0.0  ;;  %v1615_v59 = vmul.f32 %v1613_v17, %v1613_v17 }
0x186f   :  { %1617 = vadd.xlane.f32.xlu0 %v1616_v39 }
0x1870   :  { %v1619_v60 = vsel %vm235_vm5, %v1615_v59, 0.0 }
0x1871   :  { %1620 = vadd.xlane.f32.xlu1 %v1619_v60 }
0x18fc   :  { %v1618_v26 = vpop.xlane.xlu0 %1617 }
0x18fd   :  { %v1622_v30 = vmul.f32 0.03125, %v1618_v26 }
0x18fe   :  { %v1621_v15 = vpop.xlane.xlu1 %1620 }
0x18ff   :  { %v1624_v16 = vadd.f32 1e-05, %v1622_v30  ;;  %v1623_v12 = vmul.f32 0.03125, %v1621_v15 }
0x1901   :  { %4155 = vrsqrt.f32 %v1624_v16  ;;  %v1625_v29 = vadd.f32 1e-05, %v1623_v12 }
0x1903   :  { %4157 = vrsqrt.f32 %v1625_v29 }
0x190b   :  { %v4156_v18 = vpop.eup %4155 }
0x190c   :  { %v1628_v21 = vmul.f32 %v4156_v18, %v1612_v37 }
0x190d   :  { %v4158_v22 = vpop.eup %4157 }
0x190e   :  { %v1629_v48 = vmul.f32 %v4158_v22, %v1613_v17  ;;  %v1637_v47 = vmul.f32 %v3546_v20, %v1628_v21 }
0x1910   :  { %v1638_v31 = vmul.f32 %v3546_v20, %v1629_v48  ;;  %v1646_v19 = vadd.f32 %v3547_v53, %v1637_v47 }
0x1912   :  { %v1647_v32 = vadd.f32 %v3547_v53, %v1638_v31  ;;  %3828 = vmatprep.mubr.msk.f32.mxu1 %vm235_vm5, %v1646_v19  ;;  %3839 = vmatprep.mubr.msk.f32.mxu0 %vm235_vm5, %v1646_v19 }
0x1914   :  { %3829 = vmatmul.mubr.msk.f32.vlgmr.msra.gmra.mrb[10].mxu1 %vm235_vm5, %v1647_v32  ;;  %3840 = vmatmul.mubr.msk.f32.vlgmr.msra.gmra.mrb[10].mxu0 %vm235_vm5, %v1647_v32 }
0x1915   :  { %4035 = vmatpush3.bf16.msra.mxu1 %v4032_v13  ;;  %3850 = vmatprep.mubr.msk.f32.mxu1 %vm235_vm5, %v1646_v19 }
0x1916   :  { %4037 = vmatprep.subr.bf16.mxu1 %v4036_v23  ;;  %3865 = vmatprep.mubr.msk.f32.mxu0 %vm4343_vm3, %v4341_v27 }
0x1919   :  { %4039 = vmatpush3.bf16.msra.mxu1 %v4036_v23 }
0x191a   :  { %3853 = vmatprep.subr.mxu1 %v4341_v27 }
0x191c   :  { %3851 = vmatmul.mubr.msk.f32.vlgmr.msra.gmra.mrb[12].mxu1 %vm235_vm5, %v1647_v32 }
0x191d   :  { %3855 = vmatprep.mubr.msk.f32.mxu1 %vm4343_vm3, %v4341_v27 }
0x19e7   :  { %v3830_v35 = vpop.f32.mrb[10].mxu1  ;;  %v3841_v36 = vpop.f32.mrb[10].mxu0 }
0x19e8   :  { %v1724_v0 = vpop.f32.mrb[11].mxu1  ;;  %v1803_v5 = vpop.f32.mrb[11].mxu0  ;;  %v1917_v54 = vmul.f32 %v3830_v35, %v4902_v34  ;;  %v1919_v57 = vmul.f32 %v3830_v35, %v4897_v33  ;;  %v1921_v58 = vmul.f32 %v3830_v35, %v4913_v14  ;;  %v1923_v39 = vmul.f32 %v3830_v35, %v4925_v55 }
0x19e9   :  { %v1916_v38 = vmul.f32 %v4902_v34, %v1724_v0  ;;  %v1918_v46 = vmul.f32 %v4897_v33, %v1724_v0  ;;  %3854 = vmatpush3.xpose.msk.msra.mxu1 %vm235_vm5, %v1803_v5  ;;  %3864 = vmatpush3.xpose.msk.msra.mxu0 %vm235_vm5, %v1803_v5  ;;  %v1920_v44 = vmul.f32 %v4913_v14, %v1724_v0 }
0x19ea   :  { %3858 = vmatprep.subr.mxu1 %v4341_v27  ;;  %3873 = vmatprep.subr.mxu0 %v4341_v27  ;;  %v1922_v17 = vmul.f32 %v4925_v55, %v1724_v0 }
0x19ec   :  { %3856 = vmatmul.mubr.msk.f32.vlgmr.msra.gmra.mrb[14].mxu1 %vm235_vm5, %v1916_v38  ;;  %3866 = vmatmul.mubr.msk.f32.vlgmr.msra.gmra.mrb[12].mxu0 %vm235_vm5, %v1918_v46 }
0x19ed   :  { %3859 = vmatpush3.xpose.msk.msra.mxu1 %vm235_vm5, %v3841_v36  ;;  %3874 = vmatpush3.xpose.msk.msra.mxu0 %vm235_vm5, %v1803_v5 }
0x19ee   :  { %3860 = vmatprep.mubr.msk.f32.mxu1 %vm4343_vm3, %v4341_v27  ;;  %3875 = vmatprep.mubr.msk.f32.mxu0 %vm4343_vm3, %v4341_v27 }
0x19ef   :  { %v4928_v56 = vpop.f32.mrb[12].mxu1  ;;  %3868 = vmatprep.subr.mxu1 %v4341_v27  ;;  %3883 = vmatprep.subr.mxu0 %v4341_v27 }
0x19f0   :  { %v4933_v37 = vpop.f32.mrb[13].mxu1  ;;  %3861 = vmatmul.mubr.msk.f32.vlgmr.msra.gmra.mrb[16].mxu1 %vm235_vm5, %v1917_v54  ;;  %3876 = vmatmul.mubr.msk.f32.vlgmr.msra.gmra.mrb[14].mxu0 %vm235_vm5, %v1920_v44 }
0x19f1   :  { %3869 = vmatpush3.xpose.msk.msra.mxu1 %vm235_vm5, %v3841_v36  ;;  %3884 = vmatpush3.xpose.msk.msra.mxu0 %vm235_vm5, %v1803_v5 }
0x19f2   :  { %3870 = vmatprep.mubr.msk.f32.mxu1 %vm4343_vm3, %v4341_v27  ;;  %3885 = vmatprep.mubr.msk.f32.mxu0 %vm4343_vm3, %v4341_v27 }
0x19f3   :  { %3878 = vmatprep.subr.mxu1 %v4341_v27  ;;  %3893 = vmatprep.subr.mxu0 %v4341_v27 }
0x19f4   :  { %3871 = vmatmul.mubr.msk.f32.vlgmr.msra.gmra.mrb[18].mxu1 %vm235_vm5, %v1919_v57  ;;  %3886 = vmatmul.mubr.msk.f32.vlgmr.msra.gmra.mrb[16].mxu0 %vm235_vm5, %v1922_v17 }
0x19f5   :  { %3879 = vmatpush3.xpose.msk.msra.mxu1 %vm235_vm5, %v3841_v36  ;;  %3894 = vmatpush3.msra.mxu0 %v4933_v37 }
0x19f6   :  { %3880 = vmatprep.mubr.msk.f32.mxu1 %vm4343_vm3, %v4341_v27  ;;  %3888 = vmatprep.subr.mxu1 %v4341_v27 }
0x19f7   :  { %3895 = vmatprep.mubr.msk.f32.mxu0 %vm4343_vm3, %v4341_v27  ;;  %3903 = vmatprep.subr.mxu0 %v4341_v27 }
0x19f8   :  { %3881 = vmatmul.mubr.msk.f32.vlgmr.msra.gmra.mrb[20].mxu1 %vm235_vm5, %v1921_v58 }
0x19f9   :  { %3889 = vmatpush3.xpose.msk.msra.mxu1 %vm235_vm5, %v3841_v36  ;;  %3890 = vmatprep.mubr.msk.f32.mxu1 %vm4343_vm3, %v4341_v27 }
0x19fa   :  { %3898 = vmatprep.subr.mxu1 %v4341_v27 }
0x19fc   :  { %3891 = vmatmul.mubr.msk.f32.vlgmr.msra.gmra.mrb[22].mxu1 %vm235_vm5, %v1923_v39 }
0x19fd   :  { %3899 = vmatpush3.msra.mxu1 %v4928_v56  ;;  %3900 = vmatprep.mubr.msk.f32.mxu1 %vm4343_vm3, %v4341_v27 }
0x19fe   :  { %3908 = vmatprep.subr.mxu1 %v4341_v27 }
0x1abf   :  { %v1996_v59 = vpop.f32.mrb[14].mxu1  ;;  %v2145_v61 = vpop.f32.mrb[12].mxu0 }
0x1ac0   :  { %v2514_v60 = vmul.f32 0.35355338, %v1996_v59  ;;  %v3857_v62 = vpop.f32.mrb[15].mxu1  ;;  %v3867_v49 = vpop.f32.mrb[13].mxu0  ;;  %v2516_v50 = vmul.f32 0.35355338, %v2145_v61 }
0x1ac2   :  { %v2523_v4 = vsel %vm2522_vm1, %v2514_v60, -inf  ;;  %v2529_v10 = vsel %vm2522_vm1, %v2516_v50, -inf }
0x1ac3   :  { %2524 = vmax.xlane.f32.xlu0 %v2523_v4  ;;  %v2072_v6 = vpop.f32.mrb[16].mxu1  ;;  %v2291_v7 = vpop.f32.mrb[14].mxu0 }
0x1ac4   :  { %v2515_v43 = vmul.f32 0.35355338, %v2072_v6  ;;  %v3862_v8 = vpop.f32.mrb[17].mxu1  ;;  %v3877_v42 = vpop.f32.mrb[15].mxu0  ;;  %v2518_v9 = vmul.f32 0.35355338, %v2291_v7 }
0x1ac6   :  { %v2526_v51 = vsel %vm2522_vm1, %v2515_v43, -inf  ;;  %v2535_v12 = vsel %vm2522_vm1, %v2518_v9, -inf }
0x1ac7   :  { %2530 = vmax.xlane.f32.xlu0 %v2529_v10  ;;  %2527 = vmax.xlane.f32.xlu1 %v2526_v51  ;;  %v2218_v11 = vpop.f32.mrb[18].mxu1  ;;  %v2437_v13 = vpop.f32.mrb[16].mxu0 }
0x1ac8   :  { %v2517_v26 = vmul.f32 0.35355338, %v2218_v11  ;;  %v3872_v30 = vpop.f32.mrb[19].mxu1  ;;  %v3887_v15 = vpop.f32.mrb[17].mxu0  ;;  %v2520_v16 = vmul.f32 0.35355338, %v2437_v13 }
0x1aca   :  { %v2532_v29 = vsel %vm2522_vm1, %v2517_v26, -inf  ;;  %v2541_v22 = vsel %vm2522_vm1, %v2520_v16, -inf }
0x1acb   :  { %2536 = vmax.xlane.f32.xlu0 %v2535_v12  ;;  %2533 = vmax.xlane.f32.xlu1 %v2532_v29  ;;  %v2364_v18 = vpop.f32.mrb[20].mxu1 }
0x1acc   :  { %v2519_v20 = vmul.f32 0.35355338, %v2364_v18  ;;  %v3882_v21 = vpop.f32.mrb[21].mxu1 }
0x1ace   :  { %v2538_v53 = vsel %vm2522_vm1, %v2519_v20, -inf }
0x1acf   :  { %2542 = vmax.xlane.f32.xlu0 %v2541_v22  ;;  %2539 = vmax.xlane.f32.xlu1 %v2538_v53  ;;  %v2510_v48 = vpop.f32.mrb[22].mxu1 }
0x1ad0   :  { %v2521_v47 = vmul.f32 0.35355338, %v2510_v48  ;;  %v3892_v41 = vpop.f32.mrb[23].mxu1 }
0x1ad2   :  { %v2544_v28 = vsel %vm2522_vm1, %v2521_v47, -inf }
0x1ad3   :  { %2545 = vmax.xlane.f32.xlu1 %v2544_v28 }
0x1b50   :  { %v2525_v31 = vpop.xlane.xlu0 %2524 }
0x1b51   :  { %v2547_v19 = vsub.f32 %v2514_v60, %v2525_v31 }
0x1b53   :  { %v2555_v32 = vmul.f32 1.442695, %v2547_v19 }
0x1b54   :  { %v2531_v23 = vpop.xlane.xlu0 %2530  ;;  %v2528_v24 = vpop.xlane.xlu1 %2527 }
0x1b55   :  { %4159 = vpow2.f32 %v2555_v32  ;;  %v2549_v35 = vsub.f32 %v2516_v50, %v2531_v23  ;;  %v2548_v36 = vsub.f32 %v2515_v43, %v2528_v24 }
0x1b57   :  { %v2559_v40 = vmul.f32 1.442695, %v2549_v35  ;;  %v2557_v63 = vmul.f32 1.442695, %v2548_v36 }
0x1b58   :  { %v2537_v0 = vpop.xlane.xlu0 %2536  ;;  %v2534_v5 = vpop.xlane.xlu1 %2533 }
0x1b59   :  { %4161 = vpow2.f32 %v2559_v40  ;;  %v2551_v38 = vsub.f32 %v2518_v9, %v2537_v0  ;;  %v2550_v46 = vsub.f32 %v2517_v26, %v2534_v5  ;;  %v3209_v5 = vld [vmem:[%s5108_s12] sm:$0xff] }
0x1b5a   :  { %4163 = vpow2.f32 %v2557_v63 }
0x1b5b   :  { %v2563_v45 = vmul.f32 1.442695, %v2551_v38  ;;  %v2561_v52 = vmul.f32 1.442695, %v2550_v46  ;;  %v3210_v38 = vld [vmem:[%s5108_s12 + $0x8] sm:$0xff] }
0x1b5c   :  { %v2543_v54 = vpop.xlane.xlu0 %2542  ;;  %v2540_v44 = vpop.xlane.xlu1 %2539  ;;  %v4040_v46 = vpack.c.bf16 %v3210_v38, %v3209_v5 }
0x1b5d   :  { %4165 = vpow2.f32 %v2563_v45  ;;  %v2553_v57 = vsub.f32 %v2520_v16, %v2543_v54  ;;  %v2552_v17 = vsub.f32 %v2519_v20, %v2540_v44  ;;  %v3212_v45 = vld [vmem:[%s5108_s12 + $0x18] sm:$0xff]  ;;  %v4205_v54 = vld [vmem:[%s5097_s1] sm:$0x3] }
0x1b5e   :  { %4167 = vpow2.f32 %v2561_v52  ;;  %v3301_v44 = vsub.f32 1.0, %v4205_v54 }
0x1b5f   :  { %v4160_v58 = vpop.eup %4159  ;;  %v2567_v39 = vmul.f32 1.442695, %v2553_v57  ;;  %v2565_v59 = vmul.f32 1.442695, %v2552_v17 }
0x1b60   :  { %v2546_v60 = vpop.xlane.xlu1 %2545  ;;  %v2571_v61 = vsel %vm2522_vm1, %v4160_v58, 0.0  ;;  %v3312_v57 = vrot.slane %v3301_v44, %v4514_v3  ;;  %v3305_v17 = vrot.slane %v3301_v44, %v4511_v2 }
0x1b61   :  { %4169 = vpow2.f32 %v2567_v39  ;;  %v2554_v62 = vsub.f32 %v2521_v47, %v2546_v60  ;;  %2572 = vadd.xlane.f32.xlu0 %v2571_v61 }
0x1b62   :  { %4171 = vpow2.f32 %v2565_v59 }
0x1b63   :  { %v4162_v49 = vpop.eup %4161  ;;  %v2569_v50 = vmul.f32 1.442695, %v2554_v62 }
0x1b64   :  { %v4164_v4 = vpop.eup %4163  ;;  %v2577_v6 = vsel %vm2522_vm1, %v4162_v49, 0.0 }
0x1b65   :  { %4173 = vpow2.f32 %v2569_v50  ;;  %2578 = vadd.xlane.f32.xlu0 %v2577_v6  ;;  %v2574_v7 = vsel %vm2522_vm1, %v4164_v4, 0.0 }
0x1b66   :  { %2575 = vadd.xlane.f32.xlu1 %v2574_v7 }
0x1b67   :  { %v4166_v43 = vpop.eup %4165 }
0x1b68   :  { %v4168_v8 = vpop.eup %4167  ;;  %v2583_v42 = vsel %vm2522_vm1, %v4166_v43, 0.0 }
0x1b69   :  { %2584 = vadd.xlane.f32.xlu0 %v2583_v42  ;;  %v2580_v9 = vsel %vm2522_vm1, %v4168_v8, 0.0 }
0x1b6a   :  { %2581 = vadd.xlane.f32.xlu1 %v2580_v9 }
0x1b6b   :  { %v4170_v10 = vpop.eup %4169 }
0x1b6c   :  { %v4172_v51 = vpop.eup %4171  ;;  %v2589_v11 = vsel %vm2522_vm1, %v4170_v10, 0.0 }
0x1b6d   :  { %2590 = vadd.xlane.f32.xlu0 %v2589_v11  ;;  %v2586_v13 = vsel %vm2522_vm1, %v4172_v51, 0.0 }
0x1b6e   :  { %2587 = vadd.xlane.f32.xlu1 %v2586_v13 }
0x1b6f   :  { %v4174_v26 = vpop.eup %4173 }
0x1b70   :  { %v2592_v30 = vsel %vm2522_vm1, %v4174_v26, 0.0 }
0x1b72   :  { %2593 = vadd.xlane.f32.xlu1 %v2592_v30 }
0x1b83   :  { %3314 = vbcast.lane.b32.xlu1 %v3312_v57, 256  ;;  %3307 = vbcast.lane.b32.xlu0 %v3305_v17, 256 }
0x1bee   :  { %v2573_v15 = vpop.xlane.xlu0 %2572 }
0x1bef   :  { %4175 = vrcp.f32 %v2573_v15 }
0x1bf2   :  { %v2579_v16 = vpop.xlane.xlu0 %2578 }
0x1bf3   :  { %4177 = vrcp.f32 %v2579_v16  ;;  %v2576_v12 = vpop.xlane.xlu1 %2575 }
0x1bf4   :  { %4179 = vrcp.f32 %v2576_v12 }
0x1bf6   :  { %v2585_v29 = vpop.xlane.xlu0 %2584 }
0x1bf7   :  { %4181 = vrcp.f32 %v2585_v29  ;;  %v2582_v18 = vpop.xlane.xlu1 %2581 }
0x1bf8   :  { %4183 = vrcp.f32 %v2582_v18 }
0x1bf9   :  { %v4176_v20 = vpop.eup %4175 }
0x1bfa   :  { %v2603_v21 = vmul.f32 %v4176_v20, %v4160_v58  ;;  %v2591_v22 = vpop.xlane.xlu0 %2590 }
0x1bfb   :  { %4185 = vrcp.f32 %v2591_v22  ;;  %v2588_v53 = vpop.xlane.xlu1 %2587 }
0x1bfc   :  { %4187 = vrcp.f32 %v2588_v53  ;;  %3896 = vmatmul.mubr.msk.f32.vlgmr.msra.gmra.mrb[18].mxu0 %vm2522_vm1, %v2603_v21 }
0x1bfd   :  { %v4178_v48 = vpop.eup %4177  ;;  %3904 = vmatpush3.msra.mxu0 %v4933_v37  ;;  %3905 = vmatprep.mubr.msk.f32.mxu0 %vm4343_vm3, %v4341_v27 }
0x1bfe   :  { %v4180_v47 = vpop.eup %4179  ;;  %v2605_v41 = vmul.f32 %v4178_v48, %v4162_v49  ;;  %3913 = vmatprep.subr.mxu0 %v4341_v27  ;;  %v3308_v53 = vpop.permute.xlu0 %3307  ;;  %v3584_v48 = vld [vmem:[#allocation11] ss:$0 sm:$0xff] }
0x1bff   :  { %v2604_v28 = vmul.f32 %v4180_v47, %v4164_v4  ;;  %v2594_v31 = vpop.xlane.xlu1 %2593 }
0x1c00   :  { %4189 = vrcp.f32 %v2594_v31  ;;  %3906 = vmatmul.mubr.msk.f32.vlgmr.msra.gmra.mrb[20].mxu0 %vm2522_vm1, %v2605_v41 }
0x1c01   :  { %v4182_v19 = vpop.eup %4181  ;;  %3901 = vmatmul.mubr.msk.f32.vlgmr.msra.gmra.mrb[24].mxu1 %vm2522_vm1, %v2604_v28  ;;  %3914 = vmatpush3.msra.mxu0 %v4933_v37  ;;  %v3316_v28 = vmul.f32 -1e+32, %v3308_v53 }
0x1c02   :  { %v4184_v32 = vpop.eup %4183  ;;  %v2607_v23 = vmul.f32 %v4182_v19, %v4166_v43  ;;  %3909 = vmatpush3.msra.mxu1 %v4928_v56  ;;  %3910 = vmatprep.mubr.msk.f32.mxu1 %vm4343_vm3, %v4341_v27 }
0x1c03   :  { %v2606_v24 = vmul.f32 %v4184_v32, %v4168_v8  ;;  %3915 = vmatprep.mubr.msk.f32.mxu0 %vm4343_vm3, %v4341_v27  ;;  %3918 = vmatprep.subr.mxu1 %v4341_v27  ;;  %v3315_v22 = vpop.permute.xlu1 %3314 }
0x1c04   :  { %3923 = vmatprep.subr.mxu0 %v4341_v27  ;;  %3916 = vmatmul.mubr.msk.f32.vlgmr.msra.gmra.mrb[22].mxu0 %vm2522_vm1, %v2607_v23  ;;  %v3317_v47 = vmul.f32 -1e+32, %v3315_v22 }
0x1c05   :  { %v4186_v35 = vpop.eup %4185  ;;  %3911 = vmatmul.mubr.msk.f32.vlgmr.msra.gmra.mrb[26].mxu1 %vm2522_vm1, %v2606_v24  ;;  %3924 = vmatpush3.msra.mxu0 %v4933_v37 }
0x1c06   :  { %v4188_v36 = vpop.eup %4187  ;;  %v2609_v40 = vmul.f32 %v4186_v35, %v4170_v10  ;;  %3919 = vmatpush3.msra.mxu1 %v4928_v56  ;;  %3920 = vmatprep.mubr.msk.f32.mxu1 %vm4343_vm3, %v4341_v27  ;;  %v3405_v35 = vld [vmem:[%s5098_s2] sm:$0x3]  ;;  %s4356_s2 = smov 80  }
0x1c07   :  { %v2608_v63 = vmul.f32 %v4188_v36, %v4172_v51  ;;  %3925 = vmatprep.mubr.msk.f32.mxu0 %vm4343_vm3, %v4341_v27  ;;  %3928 = vmatprep.subr.mxu1 %v4341_v27  ;;  %v3416_v36 = vrot.slane %v3405_v35, %v4514_v3  ;;  %vm3436_vm4 = vcmp.ne.s32.totalorder %v3405_v35, 0 }
0x1c08   :  { %3926 = vmatmul.mubr.msk.f32.vlgmr.msra.gmra.mrb[24].mxu0 %vm2522_vm1, %v2609_v40  ;;  %4041 = vmatprep.subr.bf16.mxu0 %v4040_v46  ;;  %v3409_v40 = vrot.slane %v3405_v35, %v4511_v2 }
0x1c09   :  { %3921 = vmatmul.mubr.msk.f32.vlgmr.msra.gmra.mrb[28].mxu1 %vm2522_vm1, %v2608_v63  ;;  %4043 = vmatpush3.bf16.msra.mxu0 %v4040_v46 }
0x1c0a   :  { %v4190_v0 = vpop.eup %4189  ;;  %3929 = vmatpush3.msra.mxu1 %v4928_v56  ;;  %3930 = vmatprep.mubr.msk.f32.mxu1 %vm4343_vm3, %v4341_v27  ;;  %v3211_v56 = vld [vmem:[%s5108_s12 + $0x10] sm:$0xff] }
0x1c0b   :  { %v2610_v37 = vmul.f32 %v4190_v0, %v4174_v26  ;;  %v4044_v52 = vpack.c.bf16 %v3212_v45, %v3211_v56 }
0x1c0d   :  { %3931 = vmatmul.mubr.msk.f32.vlgmr.msra.gmra.mrb[30].mxu1 %vm2522_vm1, %v2610_v37  ;;  %4045 = vmatprep.subr.bf16.mxu0 %v4044_v52 }
0x1c0e   :  { %4047 = vmatpush3.bf16.msra.mxu0 %v4044_v52 }
0x1ccf   :  { %v2680_v58 = vpop.f32.mrb[18].mxu0 }
0x1cd0   :  { %v3897_v39 = vpop.f32.mrb[19].mxu0  ;;  %v3195_v60 = vmul.f32 %v4902_v34, %v2680_v58 }
0x1cd3   :  { %v2826_v59 = vpop.f32.mrb[20].mxu0 }
0x1cd4   :  { %v2753_v61 = vpop.f32.mrb[24].mxu1  ;;  %v3197_v62 = vmul.f32 %v2826_v59, %v4897_v33  ;;  %v3907_v49 = vpop.f32.mrb[21].mxu0 }
0x1cd5   :  { %v3902_v50 = vpop.f32.mrb[25].mxu1  ;;  %v3196_v42 = vmul.f32 %v4902_v34, %v2753_v61 }
0x1cd6   :  { %v3199_v4 = vadd.f32 %v3197_v62, %v3195_v60  ;;  %v3589_v62 = vsel %vm3436_vm4, 1.0, %v4341_v27 }
0x1cd7   :  { %v2972_v6 = vpop.f32.mrb[22].mxu0  ;;  %v3450_v49 = vrot.slane %v3589_v62, %v4514_v3  ;;  %v3443_v50 = vrot.slane %v3589_v62, %v4511_v2 }
0x1cd8   :  { %v2899_v7 = vpop.f32.mrb[26].mxu1  ;;  %v3201_v43 = vmul.f32 %v2972_v6, %v4913_v14  ;;  %v3917_v8 = vpop.f32.mrb[23].mxu0 }
0x1cd9   :  { %v3198_v9 = vmul.f32 %v2899_v7, %v4897_v33  ;;  %v3912_v10 = vpop.f32.mrb[27].mxu1 }
0x1cda   :  { %v3203_v51 = vadd.f32 %v3201_v43, %v3199_v4 }
0x1cdb   :  { %v3200_v11 = vadd.f32 %v3198_v9, %v3196_v42  ;;  %v3118_v13 = vpop.f32.mrb[24].mxu0 }
0x1cdc   :  { %v3045_v26 = vpop.f32.mrb[28].mxu1  ;;  %v3205_v30 = vmul.f32 %v3118_v13, %v4925_v55  ;;  %v3927_v15 = vpop.f32.mrb[25].mxu0 }
0x1cdd   :  { %v3202_v16 = vmul.f32 %v3045_v26, %v4913_v14  ;;  %v3922_v12 = vpop.f32.mrb[29].mxu1 }
0x1cde   :  { %v3207_v29 = vadd.f32 %v3205_v30, %v3203_v51 }
0x1cdf   :  { %v3204_v18 = vadd.f32 %v3202_v16, %v3200_v11 }
0x1ce0   :  { %v3191_v20 = vpop.f32.mrb[30].mxu1  ;;  %3941 = vmatprep.mubr.msk.f32.mxu0 %vm235_vm5, %v3207_v29 }
0x1ce1   :  { %v3206_v34 = vmul.f32 %v3191_v20, %v4925_v55  ;;  %v3932_v21 = vpop.f32.mrb[31].mxu1 }
0x1ce3   :  { %v3208_v33 = vadd.f32 %v3206_v34, %v3204_v18 }
0x1ce5   :  { %3942 = vmatmul.mubr.msk.f32.vlgmr.msra.gmra.mrb[26].mxu0 %vm235_vm5, %v3208_v33 }
0x1db8   :  { %v3943_v41 = vpop.f32.mrb[26].mxu0 }
0x1db9   :  { %v3298_v31 = vadd.f32 %v3943_v41, %v3584_v48  ;;  %v3292_v14 = vpop.f32.mrb[27].mxu0 }
0x1dba   :  { %v3293_v19 = vadd.f32 %v3584_v48, %v3292_v14 }
0x1dbb   :  { %v3319_v32 = vadd.f32 %v3317_v47, %v3298_v31 }
0x1dbc   :  { %v3318_v23 = vadd.f32 %v3316_v28, %v3293_v19  ;;  %v3487_v19 = vsel %vm3476_vm9, %v3589_v62, 0.0 }
0x1dbd   :  { %v3323_v24 = vsel %vm1375_vm8, %v3319_v32, -inf }
0x1dbe   :  { %3324 = vmax.xlane.f32.xlu0 %v3323_v24  ;;  %v3320_v55 = vsel %vm1375_vm8, %v3318_v23, -inf }
0x1dbf   :  { %3321 = vmax.xlane.f32.xlu1 %v3320_v55 }
0x1dd0   :  { %3418 = vbcast.lane.b32.xlu1 %v3416_v36, 256 }
0x1dd4   :  { %3411 = vbcast.lane.b32.xlu0 %v3409_v40, 256 }
0x1e4b   :  { %v3325_v63 = vpop.xlane.xlu0 %3324 }
0x1e4c   :  { %v3327_v0 = vsub.f32 %v3319_v32, %v3325_v63  ;;  %v3322_v37 = vpop.xlane.xlu1 %3321 }
0x1e4d   :  { %v3326_v5 = vsub.f32 %v3318_v23, %v3322_v37 }
0x1e4e   :  { %v3330_v38 = vmul.f32 1.442695, %v3327_v0 }
0x1e4f   :  { %v3328_v46 = vmul.f32 1.442695, %v3326_v5  ;;  %v3412_v56 = vpop.permute.xlu0 %3411 }
0x1e50   :  { %4191 = vpow2.f32 %v3330_v38  ;;  %vm3420_vm2 = vcmp.eq.s32.totalorder %v3412_v56, %v4557_v25  ;;  %v3419_v45 = vpop.permute.xlu1 %3418 }
0x1e51   :  { %4193 = vpow2.f32 %v3328_v46  ;;  %v3587_v52 = vsel %vm3420_vm2, 1.0, %v4341_v27  ;;  %vm3421_vm3 = vcmp.eq.s32.totalorder %v3419_v45, %v4557_v25 }
0x1e52   :  { %v3588_v54 = vsel %vm3421_vm3, 1.0, %v4341_v27  ;;  %v3426_v44 = vmul.f32 %v3587_v52, %v3318_v23 }
0x1e53   :  { %v3427_v57 = vmul.f32 %v3588_v54, %v3319_v32 }
0x1e54   :  { %v3428_v17 = vsel %vm1375_vm8, %v3426_v44, 0.0 }
0x1e55   :  { %3429 = vadd.xlane.f32.xlu0 %v3428_v17  ;;  %v3431_v58 = vsel %vm1375_vm8, %v3427_v57, 0.0 }
0x1e56   :  { %3432 = vadd.xlane.f32.xlu1 %v3431_v58 }
0x1e5a   :  { %v4192_v39 = vpop.eup %4191 }
0x1e5b   :  { %v4194_v59 = vpop.eup %4193  ;;  %v3335_v60 = vsel %vm1375_vm8, %v4192_v39, 0.0 }
0x1e5c   :  { %3336 = vadd.xlane.f32.xlu0 %v3335_v60  ;;  %v3332_v61 = vsel %vm1375_vm8, %v4194_v59, 0.0 }
0x1e5d   :  { %3333 = vadd.xlane.f32.xlu1 %v3332_v61 }
0x1e6e   :  { %3452 = vbcast.lane.b32.xlu1 %v3450_v49, 256 }
0x1e72   :  { %3445 = vbcast.lane.b32.xlu0 %v3443_v50, 256 }
0x1ee2   :  { %v3430_v4 = vpop.xlane.xlu0 %3429 }
0x1ee3   :  { %v3433_v6 = vpop.xlane.xlu1 %3432 }
0x1ee9   :  { %v3337_v7 = vpop.xlane.xlu0 %3336 }
0x1eea   :  { %4195 = vrcp.f32 %v3337_v7  ;;  %v3334_v43 = vpop.xlane.xlu1 %3333 }
0x1eeb   :  { %4197 = vlog2.f32 %v3337_v7 }
0x1eec   :  { %4199 = vrcp.f32 %v3334_v43 }
0x1eed   :  { %4201 = vlog2.f32 %v3334_v43  ;;  %v3446_v20 = vpop.permute.xlu0 %3445 }
0x1eee   :  { %v3453_v30 = vpop.permute.xlu1 %3452 }
0x1ef4   :  { %v4196_v8 = vpop.eup %4195 }
0x1ef5   :  { %v4198_v42 = vpop.eup %4197  ;;  %v3341_v9 = vmul.f32 %v4196_v8, %v4192_v39 }
0x1ef6   :  { %v4200_v10 = vpop.eup %4199  ;;  %v3402_v51 = vmul.f32 0.6931472, %v4198_v42 }
0x1ef7   :  { %v4202_v27 = vpop.eup %4201  ;;  %v3339_v11 = vmul.f32 %v4200_v10, %v4194_v59  ;;  %v3359_v26 = vrot.slane %v3341_v9, 2  ;;  %v3365_v2 = vrot.slane %v3341_v9, 3  ;;  %v3377_v47 = vrot.slane %v3341_v9, 5 }
0x1ef8   :  { %v3400_v3 = vmul.f32 0.6931472, %v4202_v27  ;;  %v3404_v13 = vadd.f32 %v3402_v51, %v3325_v63  ;;  %v3344_v41 = vrot.slane %v3341_v9, 7  ;;  %v3353_v23 = vrot.slane %v3341_v9, 1 }
0x1ef9   :  { %v3347_v15 = vrot.slane %v3339_v11, 1  ;;  %v3358_v29 = vrot.slane %v3339_v11, 3  ;;  %v3364_v18 = vrot.slane %v3339_v11, 4  ;;  %v3376_v48 = vrot.slane %v3339_v11, 6 }
0x1efa   :  { %v3435_v16 = vsub.f32 %v3404_v13, %v3433_v6  ;;  %v3403_v12 = vadd.f32 %v3400_v3, %v3322_v37  ;;  %v3345_v14 = vsel %vm337_vm7, %v3344_v41, %v3339_v11  ;;  %v3352_v32 = vrot.slane %v3339_v11, 2 }
0x1efb   :  { %v3348_v34 = vsel %vm337_vm7, %v3341_v9, %v3347_v15  ;;  %v3360_v22 = vsel %vm337_vm7, %v3359_v26, %v3358_v29  ;;  %v3366_v53 = vsel %vm337_vm7, %v3365_v2, %v3364_v18  ;;  %v3378_v31 = vsel %vm337_vm7, %v3377_v47, %v3376_v48 }
0x1efc   :  { %v3457_v21 = vmul.f32 %v3453_v30, %v3435_v16  ;;  %v3434_v33 = vsub.f32 %v3403_v12, %v3430_v4  ;;  %v3354_v24 = vsel %vm337_vm7, %v3353_v23, %v3352_v32  ;;  %v3370_v55 = vrot.slane %v3339_v11, 5 }
0x1efd   :  { %v3371_v35 = vrot.slane %v3341_v9, 4  ;;  %v3382_v40 = vrot.slane %v3339_v11, 7  ;;  %v3383_v63 = vrot.slane %v3341_v9, 6  ;;  %v3468_v37 = vsub.s32 %v4557_v25, %v4508_v1 }
0x1efe   :  { %v3456_v28 = vmul.f32 %v3446_v20, %v3434_v33  ;;  %3464 = vperm.xlu0 %4090, %v3457_v21  }
0x1eff   :  { %v3372_v36 = vsel %vm337_vm7, %v3371_v35, %v3370_v55  ;;  %v3384_v0 = vsel %vm337_vm7, %v3383_v63, %v3382_v40 }
0x1f00   :  { %3461 = vperm.xlu1 %4089, %v3456_v28  }
0x1f1d   :  { %3488 = vadd.xlane.f32.xlu0 %v3487_v19 }
0x1f33   :  { %3355 = vrot.lane.b32.xlu0 %v3354_v24, %s4344_s6  ;;  %s4358_s6 = smov 16  }
0x1f37   :  { %3373 = vrot.lane.b32.xlu0 %v3372_v36, %s4356_s2 }
0x1f3b   :  { %3385 = vrot.lane.b32.xlu0 %v3384_v0, %s4357_s8 }
0x1f7d   :  { %v3465_v5 = vpop.permute.xlu0 %3464 }
0x1f7e   :  { %v3473_v38 = vrot.slane %v3465_v5, %v3468_v37 }
0x1f7f   :  { %v3462_v46 = vpop.permute.xlu1 %3461 }
0x1f80   :  { %v3469_v56 = vrot.slane %v3462_v46, %v3468_v37 }
0x1f82   :  { %v3474_v45 = vsel %vm337_vm7, %v3473_v38, %v3469_v56  ;;  %vm3390_vm7 = vcmask 392192  }
0x1f83   :  { %v3477_v52 = vsel %vm3476_vm9, %v3474_v45, 0.0 }
0x1f84   :  { %3478 = vadd.xlane.f32.xlu1 %v3477_v52 }
0x1f95   :  { %3349 = vrot.lane.b32.xlu1 %v3348_v34, %s4358_s6 }
0x1f99   :  { %3361 = vrot.lane.b32.xlu1 %v3360_v22, %s4359_s18 }
0x1f9d   :  { %3367 = vrot.lane.b32.xlu1 %v3366_v53, %s4346_s7 }
0x1fa1   :  { %3379 = vrot.lane.b32.xlu1 %v3378_v31, %s4345_s21 }
0x1faa   :  { %v3489_v54 = vpop.xlane.xlu0 %3488 }
0x1fab   :  { %v3490_v44 = vrot.slane %v3489_v54, 4 }
0x1fad   :  { %v3491_v1 = vadd.f32 %v3490_v44, %v3489_v54 }
0x1fae   :  { %v3356_v60 = vpop.permute.xlu0 %3355 }
0x1faf   :  { %v3492_v25 = vrot.slane %v3491_v1, 2 }
0x1fb1   :  { %v3493_v59 = vadd.f32 %v3492_v25, %v3491_v1 }
0x1fb2   :  { %v3374_v7 = vpop.permute.xlu0 %3373 }
0x1fb3   :  { %v3494_v4 = vrot.slane %v3493_v59, 1 }
0x1fb5   :  { %v3495_v10 = vadd.f32 %v3494_v4, %v3493_v59 }
0x1fb6   :  { %v3386_v3 = vpop.permute.xlu0 %3385 }
0x2011   :  { %v3479_v57 = vpop.xlane.xlu1 %3478 }
0x2012   :  { %v3480_v17 = vrot.slane %v3479_v57, 4 }
0x2014   :  { %v3481_v58 = vadd.f32 %v3480_v17, %v3479_v57 }
0x2015   :  { %v3350_v39 = vpop.permute.xlu1 %3349 }
0x2016   :  { %v3482_v61 = vrot.slane %v3481_v58, 2  ;;  %v3388_v49 = vsel %vm1375_vm8, %v3345_v14, %v3350_v39 }
0x2017   :  { %v3389_v43 = vsel %vm235_vm5, %v3388_v49, %v3356_v60 }
0x2018   :  { %v3483_v62 = vadd.f32 %v3482_v61, %v3481_v58 }
0x2019   :  { %v3362_v50 = vpop.permute.xlu1 %3361 }
0x201a   :  { %v3484_v6 = vrot.slane %v3483_v62, 1  ;;  %v3391_v42 = vsel %vm3390_vm7, %v3389_v43, %v3362_v50 }
0x201c   :  { %v3485_v8 = vadd.f32 %v3484_v6, %v3483_v62 }
0x201d   :  { %v3368_v9 = vpop.permute.xlu1 %3367 }
0x201e   :  { %v3392_v51 = vsel %vm142_vm0, %v3391_v42, %v3368_v9  ;;  %4048 = vpush %v3485_v8 }
0x201f   :  { %4050 = vpush %v3495_v10  ;;  %v3394_v11 = vsel %vm3393_vm10, %v3392_v51, %v3374_v7 }
0x2021   :  { %v3380_v27 = vpop.permute.xlu1 %3379 }
0x2022   :  { %v3395_v13 = vsel %vm332_vm6, %v3394_v11, %v3380_v27 }
0x2023   :  { %v3397_v26 = vsel %vm3396_vm11, %v3395_v13, %v3386_v3 }
0x2024   :  { %3398 = vst [vmem:[%s5110_s14] sm:$0x3] %v3397_v26 }
0x204f   :  { %s4049_s20 = spop %4048 }
0x2050   :  { %s4051_s22 = spop %4050 }
0x2051   :  { %v3497_v2 = vstv %s4051_s22 }
0x2052   :  { %4203 = vrcp.f32 %v3497_v2 }
0x205c   :  { %v4204_v30 = vpop.eup %4203 }
0x205d   :  { %4052 = vpush %v4204_v30 }
0x208e   :  { %s4053_s23 = spop %4052 }
0x208f   :  { %s3500_s13 = smul.f32 %s4053_s23, %s4049_s20 }
0x2091   :  { %3502 = sst [smem:[#allocation12]] %s3500_s13 }
0x2092   :  { %4325 = shalt.err (!%p4322_p0)
}
0x2093   :  { %s4360_s14 = smov [#allocation12]  }
0x2094   :  { %3512 = dma.smem_to_hbm %s4360_s14, 16, %s5111_s15, [#allocation5]  }
0x2095   :  { %4332 = dma.done.wait [#allocation5], 16  }
0x2096   :  { %4333 = vsyncadd [#allocation5], 4294967280 }
0x2097   :  { %3518 = sfence }
0x2098   :  { %3519 = vsyncpa [#allocation4], 1 }
0x2099   :  { %3520 = vsyncpa [#allocation7], 1 }
0x209a   :  { %3521 = vsyncpa [#allocation10], 1 }
0x209b   :  { %3522 = vsyncpa [#allocation5], 1 }

</bundles_post_ra>
